<compile_context>
chip_gen: v7x
topology: tpu7x:2x2x1
jax: 0.10.0
libtpu: 0.0.40
codegen_flags: <defaults>
</compile_context>

<pallas_src>
import jax
import jax.numpy as jnp
from jax import lax
from jax.experimental import pallas as pl
from jax.experimental.pallas import tpu as pltpu

# Problem sizes (module: Cin = Cout = 64)
H, W = 16, 16
CIN, COUT = 64, 64
K = 3                      # conv kernel, stride 1, pad 1
PK, PS, PP = 6, 2, 2       # pool kernel, stride, pad
HO = (H + 2 * PP - PK) // PS + 1   # 8
WO = (W + 2 * PP - PK) // PS + 1   # 8


def conv_pool_kernel(x_ref, w_ref, o_ref, xpad_ref, col_ref):
    # x_ref:    (NB, H, W, CIN)       NB images (NHWC)
    # w_ref:    (K*K*CIN, COUT)       conv weights, im2col layout
    # o_ref:    (NB, HO, WO*COUT)     pooled output, lane-dense (8, 512)
    # xpad_ref: (NB, H+2, W+2, CIN)   zero-padded input scratch
    # col_ref:  (NB*H*W, K*K*CIN)     im2col scratch
    NB = x_ref.shape[0]

    # ---- zero only the borders of xpad (interior fully overwritten below) ----
    z_row = jnp.zeros((NB, 1, W + 2, CIN), jnp.float32)
    xpad_ref[:, 0:1, :, :] = z_row
    xpad_ref[:, H + 1:H + 2, :, :] = z_row
    z_col = jnp.zeros((NB, H, 1, CIN), jnp.float32)
    xpad_ref[:, 1:H + 1, 0:1, :] = z_col
    xpad_ref[:, 1:H + 1, W + 1:W + 2, :] = z_col
    xpad_ref[:, 1:H + 1, 1:W + 1, :] = x_ref[...]

    # ---- im2col: 9 shifted copies into (NB*H*W, 9*CIN) ----
    for kh in range(K):
        for kw in range(K):
            tap = kh * K + kw
            patch = xpad_ref[:, kh:kh + H, kw:kw + W, :]          # (NB,H,W,CIN)
            col_ref[:, tap * CIN:(tap + 1) * CIN] = patch.reshape(NB * H * W, CIN)

    # ---- conv: single big-K (576) matmul on the MXU ----
    conv = jnp.dot(col_ref[...], w_ref[...],
                   preferred_element_type=jnp.float32)            # (NB*H*W, COUT)
    conv = conv.reshape(NB, HO, PS, W, COUT)                      # split H -> (HO, 2)

    # ---- max pool, H direction (kernel 6 / stride 2 / pad 2, clamped) ----
    # q[i] = max(conv[2i], conv[2i+1]); output row i covers q[i-1], q[i], q[i+1]
    q = jnp.maximum(conv[:, :, 0, :, :], conv[:, :, 1, :, :])     # (NB,HO,W,COUT)
    neg = jnp.full((NB, 1, W, COUT), -jnp.inf, jnp.float32)
    q_prev = jnp.concatenate([neg, q[:, :HO - 1]], axis=1)
    q_next = jnp.concatenate([q[:, 1:], neg], axis=1)
    rowmax = jnp.maximum(q, jnp.maximum(q_prev, q_next))          # (NB,HO,W,COUT)

    # ---- max pool, W direction + one lane-dense output store ----
    parts = []
    for o in range(WO):
        lo = max(0, o * PS - PP)
        hi = min(W, o * PS - PP + PK)
        parts.append(jnp.max(rowmax[:, :, lo:hi, :], axis=2))     # (NB,HO,COUT)
    o_ref[...] = jnp.concatenate(parts, axis=-1)                  # (NB,HO,WO*COUT)


def _pick_batch_block(n):
    # Biggest per-step batch block (amortizes the ~0.35us/step pipeline
    # overhead) while keeping >= 2 grid steps so v7x can use both TensorCores.
    for nb in (8, 4, 2, 1):
        if n % nb == 0 and n // nb >= 2:
            return nb
    return n


def some_module_forward(x_nchw, w_oihw):
    """x_nchw: (N, 64, 16, 16) float32; w_oihw: (64, 64, 3, 3) float32."""
    N = x_nchw.shape[0]
    x = jnp.transpose(x_nchw, (0, 2, 3, 1)).astype(jnp.float32)          # NHWC
    w2 = jnp.transpose(w_oihw, (2, 3, 1, 0)).astype(jnp.float32)         # HWIO
    w2 = w2.reshape(K * K * CIN, COUT)                                   # im2col layout

    NB = _pick_batch_block(N)

    out = pl.pallas_call(
        conv_pool_kernel,
        out_shape=jax.ShapeDtypeStruct((N, HO, WO * COUT), jnp.float32),
        grid_spec=pltpu.PrefetchScalarGridSpec(
            num_scalar_prefetch=0,
            grid=(N // NB,),
            in_specs=[
                pl.BlockSpec((NB, H, W, CIN), lambda b: (b, 0, 0, 0)),
                pl.BlockSpec((K * K * CIN, COUT), lambda b: (0, 0)),
            ],
            out_specs=pl.BlockSpec((NB, HO, WO * COUT), lambda b: (b, 0, 0)),
            scratch_shapes=[
                pltpu.VMEM((NB, H + 2, W + 2, CIN), jnp.float32),
                pltpu.VMEM((NB * H * W, K * K * CIN), jnp.float32),
            ],
        ),
        compiler_params=pltpu.CompilerParams(dimension_semantics=("parallel",)),
    )(x, w2)

    out = out.reshape(N, HO, WO, COUT)
    return jnp.transpose(out, (0, 3, 1, 2))                              # NCHW


def reference_forward(x_nchw, w_oihw):
    """Pure-JAX reference (lax conv + reduce_window) for verification."""
    conv = lax.conv_general_dilated(
        x_nchw, w_oihw, window_strides=(1, 1), padding=((1, 1), (1, 1)),
        dimension_numbers=("NCHW", "OIHW", "NCHW"))
    pooled = lax.reduce_window(
        conv, -jnp.inf, lax.max,
        window_dimensions=(1, 1, PK, PK),
        window_strides=(1, 1, PS, PS),
        padding=((0, 0), (0, 0), (PP, PP), (PP, PP)))
    return pooled


if __name__ == "__main__":
    key = jax.random.PRNGKey(0)
    kx, kw = jax.random.split(key)

    N = 2
    x = jax.random.normal(kx, (N, CIN, H, W), dtype=jnp.float32)

    # Deterministic Conv2d weight init (PyTorch-style uniform bound = 1/sqrt(fan_in))
    fan_in = CIN * K * K
    bound = 1.0 / (fan_in ** 0.5)
    w = jax.random.uniform(kw, (COUT, CIN, K, K), dtype=jnp.float32,
                           minval=-bound, maxval=bound)

    out = jax.block_until_ready(some_module_forward(x, w))
    ref = jax.block_until_ready(reference_forward(x, w))

    assert out.shape == (N, COUT, HO, WO), out.shape
    assert jnp.allclose(out, ref, atol=1e-4, rtol=1e-4), "mismatch vs reference"

    print("KERNEL_OK")
</pallas_src>

<mosaic_0001>
module attributes {stable_mosaic.version = 11 : i64} {
  func.func @conv_pool_kernel(%arg0: i32, %arg1: memref<1x16x16x64xf32, #tpu.memory_space<vmem>>, %arg2: memref<576x64xf32, #tpu.memory_space<vmem>>, %arg3: memref<1x8x512xf32, #tpu.memory_space<vmem>>, %arg4: memref<1x18x18x64xf32, #tpu.memory_space<vmem>>, %arg5: memref<256x576xf32, #tpu.memory_space<vmem>>) attributes {dimension_semantics = [#tpu.dimension_semantics<parallel>], iteration_bounds = array<i64: 2>, scalar_prefetch = 0 : i64, scratch_operands = 2 : i64, tpu.core_type = #tpu.core_type<tc>, window_params = [{transform_indices = @transform_0, window_bounds = array<i64: 1, 16, 16, 64>}, {pipeline_mode = #tpu.pipeline_mode<synchronous>, transform_indices = @transform_1, window_bounds = array<i64: 576, 64>}, {transform_indices = @transform_2, window_bounds = array<i64: 1, 8, 512>}]} {
    %cst = arith.constant 0.000000e+00 : f32
    %0 = vector.broadcast %cst : f32 to vector<1x1x18x64xf32>
    %c0 = arith.constant 0 : index
    %c0_0 = arith.constant 0 : index
    %c0_1 = arith.constant 0 : index
    %c0_2 = arith.constant 0 : index
    %1 = vector.load %arg4[%c0, %c0_0, %c0_1, %c0_2] : memref<1x18x18x64xf32, #tpu.memory_space<vmem>>, vector<1x1x18x64xf32>
    tpu.vector_store %arg4[%c0, %c0_0, %c0_1, %c0_2], %0 {strides = array<i32>} : memref<1x18x18x64xf32, #tpu.memory_space<vmem>>, vector<1x1x18x64xf32>,
    %c0_3 = arith.constant 0 : index
    %c17 = arith.constant 17 : index
    %c0_4 = arith.constant 0 : index
    %c0_5 = arith.constant 0 : index
    %2 = vector.load %arg4[%c0_3, %c17, %c0_4, %c0_5] : memref<1x18x18x64xf32, #tpu.memory_space<vmem>>, vector<1x1x18x64xf32>
    tpu.vector_store %arg4[%c0_3, %c17, %c0_4, %c0_5], %0 {strides = array<i32>} : memref<1x18x18x64xf32, #tpu.memory_space<vmem>>, vector<1x1x18x64xf32>,
    %cst_6 = arith.constant 0.000000e+00 : f32
    %3 = vector.broadcast %cst_6 : f32 to vector<1x16x1x64xf32>
    %c0_7 = arith.constant 0 : index
    %c1 = arith.constant 1 : index
    %c0_8 = arith.constant 0 : index
    %c0_9 = arith.constant 0 : index
    %4 = vector.load %arg4[%c0_7, %c1, %c0_8, %c0_9] : memref<1x18x18x64xf32, #tpu.memory_space<vmem>>, vector<1x16x1x64xf32>
    tpu.vector_store %arg4[%c0_7, %c1, %c0_8, %c0_9], %3 {strides = array<i32>} : memref<1x18x18x64xf32, #tpu.memory_space<vmem>>, vector<1x16x1x64xf32>,
    %c0_10 = arith.constant 0 : index
    %c1_11 = arith.constant 1 : index
    %c17_12 = arith.constant 17 : index
    %c0_13 = arith.constant 0 : index
    %5 = vector.load %arg4[%c0_10, %c1_11, %c17_12, %c0_13] : memref<1x18x18x64xf32, #tpu.memory_space<vmem>>, vector<1x16x1x64xf32>
    tpu.vector_store %arg4[%c0_10, %c1_11, %c17_12, %c0_13], %3 {strides = array<i32>} : memref<1x18x18x64xf32, #tpu.memory_space<vmem>>, vector<1x16x1x64xf32>,
    %c0_14 = arith.constant 0 : index
    %c0_15 = arith.constant 0 : index
    %c0_16 = arith.constant 0 : index
    %c0_17 = arith.constant 0 : index
    %6 = vector.load %arg1[%c0_14, %c0_15, %c0_16, %c0_17] : memref<1x16x16x64xf32, #tpu.memory_space<vmem>>, vector<1x16x16x64xf32>
    %c0_18 = arith.constant 0 : index
    %c1_19 = arith.constant 1 : index
    %c1_20 = arith.constant 1 : index
    %c0_21 = arith.constant 0 : index
    %7 = vector.load %arg4[%c0_18, %c1_19, %c1_20, %c0_21] : memref<1x18x18x64xf32, #tpu.memory_space<vmem>>, vector<1x16x16x64xf32>
    tpu.vector_store %arg4[%c0_18, %c1_19, %c1_20, %c0_21], %6 {strides = array<i32>} : memref<1x18x18x64xf32, #tpu.memory_space<vmem>>, vector<1x16x16x64xf32>,
    %c0_22 = arith.constant 0 : index
    %c0_23 = arith.constant 0 : index
    %c0_24 = arith.constant 0 : index
    %c0_25 = arith.constant 0 : index
    %8 = vector.load %arg4[%c0_22, %c0_23, %c0_24, %c0_25] : memref<1x18x18x64xf32, #tpu.memory_space<vmem>>, vector<1x16x16x64xf32>
    %9 = vector.shape_cast %8 : vector<1x16x16x64xf32> to vector<256x64xf32>
    %c0_26 = arith.constant 0 : index
    %c0_27 = arith.constant 0 : index
    %10 = vector.load %arg5[%c0_26, %c0_27] : memref<256x576xf32, #tpu.memory_space<vmem>>, vector<256x64xf32>
    tpu.vector_store %arg5[%c0_26, %c0_27], %9 {strides = array<i32>} : memref<256x576xf32, #tpu.memory_space<vmem>>, vector<256x64xf32>,
    %c0_28 = arith.constant 0 : index
    %c0_29 = arith.constant 0 : index
    %c1_30 = arith.constant 1 : index
    %c0_31 = arith.constant 0 : index
    %11 = vector.load %arg4[%c0_28, %c0_29, %c1_30, %c0_31] : memref<1x18x18x64xf32, #tpu.memory_space<vmem>>, vector<1x16x16x64xf32>
    %12 = vector.shape_cast %11 : vector<1x16x16x64xf32> to vector<256x64xf32>
    %c0_32 = arith.constant 0 : index
    %c64 = arith.constant 64 : index
    %13 = vector.load %arg5[%c0_32, %c64] : memref<256x576xf32, #tpu.memory_space<vmem>>, vector<256x64xf32>
    tpu.vector_store %arg5[%c0_32, %c64], %12 {strides = array<i32>} : memref<256x576xf32, #tpu.memory_space<vmem>>, vector<256x64xf32>,
    %c0_33 = arith.constant 0 : index
    %c0_34 = arith.constant 0 : index
    %c2 = arith.constant 2 : index
    %c0_35 = arith.constant 0 : index
    %14 = vector.load %arg4[%c0_33, %c0_34, %c2, %c0_35] : memref<1x18x18x64xf32, #tpu.memory_space<vmem>>, vector<1x16x16x64xf32>
    %15 = vector.shape_cast %14 : vector<1x16x16x64xf32> to vector<256x64xf32>
    %c0_36 = arith.constant 0 : index
    %c128 = arith.constant 128 : index
    %16 = vector.load %arg5[%c0_36, %c128] : memref<256x576xf32, #tpu.memory_space<vmem>>, vector<256x64xf32>
    tpu.vector_store %arg5[%c0_36, %c128], %15 {strides = array<i32>} : memref<256x576xf32, #tpu.memory_space<vmem>>, vector<256x64xf32>,
    %c0_37 = arith.constant 0 : index
    %c1_38 = arith.constant 1 : index
    %c0_39 = arith.constant 0 : index
    %c0_40 = arith.constant 0 : index
    %17 = vector.load %arg4[%c0_37, %c1_38, %c0_39, %c0_40] : memref<1x18x18x64xf32, #tpu.memory_space<vmem>>, vector<1x16x16x64xf32>
    %18 = vector.shape_cast %17 : vector<1x16x16x64xf32> to vector<256x64xf32>
    %c0_41 = arith.constant 0 : index
    %c192 = arith.constant 192 : index
    %19 = vector.load %arg5[%c0_41, %c192] : memref<256x576xf32, #tpu.memory_space<vmem>>, vector<256x64xf32>
    tpu.vector_store %arg5[%c0_41, %c192], %18 {strides = array<i32>} : memref<256x576xf32, #tpu.memory_space<vmem>>, vector<256x64xf32>,
    %c0_42 = arith.constant 0 : index
    %c1_43 = arith.constant 1 : index
    %c1_44 = arith.constant 1 : index
    %c0_45 = arith.constant 0 : index
    %20 = vector.load %arg4[%c0_42, %c1_43, %c1_44, %c0_45] : memref<1x18x18x64xf32, #tpu.memory_space<vmem>>, vector<1x16x16x64xf32>
    %21 = vector.shape_cast %20 : vector<1x16x16x64xf32> to vector<256x64xf32>
    %c0_46 = arith.constant 0 : index
    %c256 = arith.constant 256 : index
    %22 = vector.load %arg5[%c0_46, %c256] : memref<256x576xf32, #tpu.memory_space<vmem>>, vector<256x64xf32>
    tpu.vector_store %arg5[%c0_46, %c256], %21 {strides = array<i32>} : memref<256x576xf32, #tpu.memory_space<vmem>>, vector<256x64xf32>,
    %c0_47 = arith.constant 0 : index
    %c1_48 = arith.constant 1 : index
    %c2_49 = arith.constant 2 : index
    %c0_50 = arith.constant 0 : index
    %23 = vector.load %arg4[%c0_47, %c1_48, %c2_49, %c0_50] : memref<1x18x18x64xf32, #tpu.memory_space<vmem>>, vector<1x16x16x64xf32>
    %24 = vector.shape_cast %23 : vector<1x16x16x64xf32> to vector<256x64xf32>
    %c0_51 = arith.constant 0 : index
    %c320 = arith.constant 320 : index
    %25 = vector.load %arg5[%c0_51, %c320] : memref<256x576xf32, #tpu.memory_space<vmem>>, vector<256x64xf32>
    tpu.vector_store %arg5[%c0_51, %c320], %24 {strides = array<i32>} : memref<256x576xf32, #tpu.memory_space<vmem>>, vector<256x64xf32>,
    %c0_52 = arith.constant 0 : index
    %c2_53 = arith.constant 2 : index
    %c0_54 = arith.constant 0 : index
    %c0_55 = arith.constant 0 : index
    %26 = vector.load %arg4[%c0_52, %c2_53, %c0_54, %c0_55] : memref<1x18x18x64xf32, #tpu.memory_space<vmem>>, vector<1x16x16x64xf32>
    %27 = vector.shape_cast %26 : vector<1x16x16x64xf32> to vector<256x64xf32>
    %c0_56 = arith.constant 0 : index
    %c384 = arith.constant 384 : index
    %28 = vector.load %arg5[%c0_56, %c384] : memref<256x576xf32, #tpu.memory_space<vmem>>, vector<256x64xf32>
    tpu.vector_store %arg5[%c0_56, %c384], %27 {strides = array<i32>} : memref<256x576xf32, #tpu.memory_space<vmem>>, vector<256x64xf32>,
    %c0_57 = arith.constant 0 : index
    %c2_58 = arith.constant 2 : index
    %c1_59 = arith.constant 1 : index
    %c0_60 = arith.constant 0 : index
    %29 = vector.load %arg4[%c0_57, %c2_58, %c1_59, %c0_60] : memref<1x18x18x64xf32, #tpu.memory_space<vmem>>, vector<1x16x16x64xf32>
    %30 = vector.shape_cast %29 : vector<1x16x16x64xf32> to vector<256x64xf32>
    %c0_61 = arith.constant 0 : index
    %c448 = arith.constant 448 : index
    %31 = vector.load %arg5[%c0_61, %c448] : memref<256x576xf32, #tpu.memory_space<vmem>>, vector<256x64xf32>
    tpu.vector_store %arg5[%c0_61, %c448], %30 {strides = array<i32>} : memref<256x576xf32, #tpu.memory_space<vmem>>, vector<256x64xf32>,
    %c0_62 = arith.constant 0 : index
    %c2_63 = arith.constant 2 : index
    %c2_64 = arith.constant 2 : index
    %c0_65 = arith.constant 0 : index
    %32 = vector.load %arg4[%c0_62, %c2_63, %c2_64, %c0_65] : memref<1x18x18x64xf32, #tpu.memory_space<vmem>>, vector<1x16x16x64xf32>
    %33 = vector.shape_cast %32 : vector<1x16x16x64xf32> to vector<256x64xf32>
    %c0_66 = arith.constant 0 : index
    %c512 = arith.constant 512 : index
    %34 = vector.load %arg5[%c0_66, %c512] : memref<256x576xf32, #tpu.memory_space<vmem>>, vector<256x64xf32>
    tpu.vector_store %arg5[%c0_66, %c512], %33 {strides = array<i32>} : memref<256x576xf32, #tpu.memory_space<vmem>>, vector<256x64xf32>,
    %c0_67 = arith.constant 0 : index
    %c0_68 = arith.constant 0 : index
    %35 = vector.load %arg5[%c0_67, %c0_68] : memref<256x576xf32, #tpu.memory_space<vmem>>, vector<256x576xf32>
    %c0_69 = arith.constant 0 : index
    %c0_70 = arith.constant 0 : index
    %36 = vector.load %arg2[%c0_69, %c0_70] : memref<576x64xf32, #tpu.memory_space<vmem>>, vector<576x64xf32>
    %cst_71 = arith.constant dense<0.000000e+00> : vector<256x64xf32>
    %37 = tpu.matmul %35, %36, %cst_71 {dimension_numbers = #tpu.dot_dimension_numbers<[1], [0], [0], [1], [0, 0, 1, 1], [], []>} : vector<256x576xf32>, vector<576x64xf32>, vector<256x64xf32> -> vector<256x64xf32>
    %38 = vector.shape_cast %37 : vector<256x64xf32> to vector<1x8x2x16x64xf32>
    %39 = vector.extract_strided_slice %38 {offsets = [0, 0, 0, 0, 0], sizes = [1, 8, 1, 16, 64], strides = [1, 1, 1, 1, 1]} : vector<1x8x2x16x64xf32> to vector<1x8x1x16x64xf32>
    %40 = vector.shape_cast %39 : vector<1x8x1x16x64xf32> to vector<1x8x16x64xf32>
    %41 = vector.extract_strided_slice %38 {offsets = [0, 0, 1, 0, 0], sizes = [1, 8, 1, 16, 64], strides = [1, 1, 1, 1, 1]} : vector<1x8x2x16x64xf32> to vector<1x8x1x16x64xf32>
    %42 = vector.shape_cast %41 : vector<1x8x1x16x64xf32> to vector<1x8x16x64xf32>
    %43 = arith.maximumf %40, %42 : vector<1x8x16x64xf32>
    %cst_72 = arith.constant 0xFF800000 : f32
    %44 = vector.broadcast %cst_72 : f32 to vector<1x1x16x64xf32>
    %45 = vector.extract_strided_slice %43 {offsets = [0, 0, 0, 0], sizes = [1, 7, 16, 64], strides = [1, 1, 1, 1]} : vector<1x8x16x64xf32> to vector<1x7x16x64xf32>
    %46 = tpu.concatenate %44, %45 in 1 : vector<1x1x16x64xf32>, vector<1x7x16x64xf32> -> vector<1x8x16x64xf32>
    %47 = vector.extract_strided_slice %43 {offsets = [0, 1, 0, 0], sizes = [1, 7, 16, 64], strides = [1, 1, 1, 1]} : vector<1x8x16x64xf32> to vector<1x7x16x64xf32>
    %48 = tpu.concatenate %47, %44 in 1 : vector<1x7x16x64xf32>, vector<1x1x16x64xf32> -> vector<1x8x16x64xf32>
    %49 = arith.maximumf %46, %48 : vector<1x8x16x64xf32>
    %50 = arith.maximumf %43, %49 : vector<1x8x16x64xf32>
    %51 = vector.extract_strided_slice %50 {offsets = [0, 0, 0, 0], sizes = [1, 8, 4, 64], strides = [1, 1, 1, 1]} : vector<1x8x16x64xf32> to vector<1x8x4x64xf32>
    %cst_73 = arith.constant dense<0xFF800000> : vector<1x8x64xf32>
    %52 = vector.multi_reduction <maximumf>, %51, %cst_73 [2] : vector<1x8x4x64xf32> to vector<1x8x64xf32>
    %53 = vector.extract_strided_slice %50 {offsets = [0, 0, 0, 0], sizes = [1, 8, 6, 64], strides = [1, 1, 1, 1]} : vector<1x8x16x64xf32> to vector<1x8x6x64xf32>
    %cst_74 = arith.constant dense<0xFF800000> : vector<1x8x64xf32>
    %54 = vector.multi_reduction <maximumf>, %53, %cst_74 [2] : vector<1x8x6x64xf32> to vector<1x8x64xf32>
    %55 = vector.extract_strided_slice %50 {offsets = [0, 0, 2, 0], sizes = [1, 8, 6, 64], strides = [1, 1, 1, 1]} : vector<1x8x16x64xf32> to vector<1x8x6x64xf32>
    %cst_75 = arith.constant dense<0xFF800000> : vector<1x8x64xf32>
    %56 = vector.multi_reduction <maximumf>, %55, %cst_75 [2] : vector<1x8x6x64xf32> to vector<1x8x64xf32>
    %57 = vector.extract_strided_slice %50 {offsets = [0, 0, 4, 0], sizes = [1, 8, 6, 64], strides = [1, 1, 1, 1]} : vector<1x8x16x64xf32> to vector<1x8x6x64xf32>
    %cst_76 = arith.constant dense<0xFF800000> : vector<1x8x64xf32>
    %58 = vector.multi_reduction <maximumf>, %57, %cst_76 [2] : vector<1x8x6x64xf32> to vector<1x8x64xf32>
    %59 = vector.extract_strided_slice %50 {offsets = [0, 0, 6, 0], sizes = [1, 8, 6, 64], strides = [1, 1, 1, 1]} : vector<1x8x16x64xf32> to vector<1x8x6x64xf32>
    %cst_77 = arith.constant dense<0xFF800000> : vector<1x8x64xf32>
    %60 = vector.multi_reduction <maximumf>, %59, %cst_77 [2] : vector<1x8x6x64xf32> to vector<1x8x64xf32>
    %61 = vector.extract_strided_slice %50 {offsets = [0, 0, 8, 0], sizes = [1, 8, 6, 64], strides = [1, 1, 1, 1]} : vector<1x8x16x64xf32> to vector<1x8x6x64xf32>
    %cst_78 = arith.constant dense<0xFF800000> : vector<1x8x64xf32>
    %62 = vector.multi_reduction <maximumf>, %61, %cst_78 [2] : vector<1x8x6x64xf32> to vector<1x8x64xf32>
    %63 = vector.extract_strided_slice %50 {offsets = [0, 0, 10, 0], sizes = [1, 8, 6, 64], strides = [1, 1, 1, 1]} : vector<1x8x16x64xf32> to vector<1x8x6x64xf32>
    %cst_79 = arith.constant dense<0xFF800000> : vector<1x8x64xf32>
    %64 = vector.multi_reduction <maximumf>, %63, %cst_79 [2] : vector<1x8x6x64xf32> to vector<1x8x64xf32>
    %65 = vector.extract_strided_slice %50 {offsets = [0, 0, 12, 0], sizes = [1, 8, 4, 64], strides = [1, 1, 1, 1]} : vector<1x8x16x64xf32> to vector<1x8x4x64xf32>
    %cst_80 = arith.constant dense<0xFF800000> : vector<1x8x64xf32>
    %66 = vector.multi_reduction <maximumf>, %65, %cst_80 [2] : vector<1x8x4x64xf32> to vector<1x8x64xf32>
    %67 = tpu.concatenate %52, %54, %56, %58, %60, %62, %64, %66 in 2 : vector<1x8x64xf32>, vector<1x8x64xf32>, vector<1x8x64xf32>, vector<1x8x64xf32>, vector<1x8x64xf32>, vector<1x8x64xf32>, vector<1x8x64xf32>, vector<1x8x64xf32> -> vector<1x8x512xf32>
    %c0_81 = arith.constant 0 : index
    %c0_82 = arith.constant 0 : index
    %c0_83 = arith.constant 0 : index
    %68 = vector.load %arg3[%c0_81, %c0_82, %c0_83] : memref<1x8x512xf32, #tpu.memory_space<vmem>>, vector<1x8x512xf32>
    tpu.vector_store %arg3[%c0_81, %c0_82, %c0_83], %67 {strides = array<i32>} : memref<1x8x512xf32, #tpu.memory_space<vmem>>, vector<1x8x512xf32>,
    return
  }
  func.func @transform_0(%arg0: i32) -> (i32, i32, i32, i32) {
    %c0_i32 = arith.constant 0 : i32
    %c0_i32_0 = arith.constant 0 : i32
    %c0_i32_1 = arith.constant 0 : i32
    %c0_i32_2 = arith.constant 0 : i32
    return %arg0, %c0_i32, %c0_i32_0, %c0_i32_1 : i32, i32, i32, i32
  }
  func.func @transform_1(%arg0: i32) -> (i32, i32) {
    %c0_i32 = arith.constant 0 : i32
    %c0_i32_0 = arith.constant 0 : i32
    %c0_i32_1 = arith.constant 0 : i32
    return %c0_i32, %c0_i32_0 : i32, i32
  }
  func.func @transform_2(%arg0: i32) -> (i32, i32, i32) {
    %c0_i32 = arith.constant 0 : i32
    %c0_i32_0 = arith.constant 0 : i32
    %c0_i32_1 = arith.constant 0 : i32
    return %arg0, %c0_i32, %c0_i32_0 : i32, i32, i32
  }
}

</mosaic_0001>

<bundles_post_ra>
// kernel: tpu_custom_call.1
= control target key start
LH: loop header
LB: loop body
LE: loop exit
PB: predicated region body
PF: predicated region fallthrough
CT: control target
= control target key end

     0   :  { %7 = vsyncpa [#allocation5], 0  ;;  %s5332_s0 = inlined_call_operand.vmem [shape: f32[2,16,16,64], index: 0, kind: input, shape index: {}]   ;;  %s5333_s1 = inlined_call_operand.vmem [shape: f32[576,64], index: 1, kind: input, shape index: {}]   ;;  %s5334_s2 = inlined_call_operand.hbm [shape: f32[2,8,512], index: 2, kind: output, shape index: {}]  }
   0x1   :  { %9 = vsyncpa [#allocation5 + $0x1], 0  ;;  %s3555_s9 = smov 0   ;;  %s3557_s10 = smov 0  }
   0x2   :  { %s3559_s11 = smov 0   ;;  %s3561_s12 = smov 0  }
   0x3 LB: > { %s3576_s13 = sadd.s32 4294967295, %s3534_s12   ;;  %s3096_s14 = sadd.s32 4294967294, %s3534_s12   ;;  %s3534_s12 = sphi %s3561_s12, %s5368_s12   ;;  %s3530_s11 = sphi %s3559_s11, %s5367_s11   ;;  %s3526_s10 = sphi %s3557_s10, %s5366_s10   ;;  %s3522_s9 = sphi %s3555_s9, %s5365_s9  }
   0x4   : > { %s3580_s15 = sadd.s32 1, %s3534_s12   ;;  %s69_s16 = sadd.s32 1, %s3530_s11 }
   0x5   : > { %s66_s17 = ssub.s32 %s3534_s12, %s3580_s15  ;;  %p79_p0 = scmp.ne.s32.totalorder %s3530_s11, %s3526_s10 }
   0x6   : > { %p67_p1 = scmp.eq.s32.totalorder %s66_s17, 0  ;;  %p80_p2 = scmp.eq.s32.totalorder %s3576_s13, 1 }
   0x7   : > { %p85_p3 = scmp.ne.s32.totalorder %s3526_s10, %s3522_s9  ;;  %p86_p4 = scmp.eq.s32.totalorder %s3096_s14, 1 }
   0x8   : > { %s3591_s18 = scalar_select %p67_p1, %s3530_s11, %s69_s16  }
   0x9   : > { %p3593_p5 = por %p80_p2, %p79_p0  ;;  %p3597_p6 = por %p86_p4, %p85_p3 }
   0xa   : > { %p3099_p7 = scmp.ge.s32.totalorder %s3534_s12, 1  ;;  %p115_p8 = scmp.lt.s32.totalorder %s3534_s12, 3 }
   0xc   : > { %p116_p9 = pnand %p3099_p7, %p115_p8 }
   0xe   : > { %119 = sbr.rel (%p116_p9) target bundleno = 848 (0x350), region = 28 }
  0x15   : > { %vm142_vm0 = vcmask 523264   ;;  %vm145_vm1 = vcmask 517120   ;;  %p137_p10 = scmp.lt.s32.totalorder %s3576_s13, 1  ;;  %vm152_vm2 = vcmask 516096   ;;  %v3536_v0 = vmov 0.0   ;;  %v1499_v1 = vld [vmem:[%s5333_s1] sm:$0xff] }
  0x16   : > { %144 = vst.msk [vmem:[#allocation2 + $0x8] sm:$0xff] %vm142_vm0, %v3536_v0  ;;  %143 = vst.msk [vmem:[#allocation2] sm:$0xff] %vm142_vm0, %v3536_v0  ;;  %v1500_v2 = vld [vmem:[%s5333_s1 + $0x8] sm:$0xff]  ;;  %v1531_v3 = vld [vmem:[%s5333_s1 + $0x100] sm:$0xff]  ;;  %v5335_v4 = vmov 0.0|0.0   ;;  %s3538_s7 = smov 64  }
  0x17   : > { %146 = vst.msk [vmem:[#allocation2 + $0x10] sm:$0x3] %vm145_vm1, %v3536_v0  ;;  %150 = vst.msk [vmem:[#allocation2 + $0x1a8] sm:$0x3] %vm145_vm1, %v3536_v0  ;;  %s138_s27 = scalar_select %p137_p10, %s3576_s13, 1  ;;  %3246 = vmatprep.subr.bf16.mxu0 %v5335_v4  ;;  %v3247_v5 = vpack.c.bf16 %v1500_v2, %v1499_v1  ;;  %3358 = vmatprep.subr.bf16.mxu1 %v5335_v4  ;;  %v1532_v6 = vld [vmem:[%s5333_s1 + $0x108] sm:$0xff] }
  0x18   : > { %148 = vst.msk [vmem:[#allocation2 + $0x198] sm:$0xff] %vm142_vm0, %v3536_v0  ;;  %149 = vst.msk [vmem:[#allocation2 + $0x1a0] sm:$0xff] %vm142_vm0, %v3536_v0  ;;  %v1501_v7 = vld [vmem:[%s5333_s1 + $0x10] sm:$0xff]  ;;  %v1502_v8 = vld [vmem:[%s5333_s1 + $0x18] sm:$0xff]  ;;  %v3665_v9 = vpack.c.bf16 %v1532_v6, %v1531_v3  ;;  %vm473_vm3 = vcmask 1048064   ;;  %vm2386_vm4 = vcmask 519168  }
  0x19   : > { %153 = vst.msk [vmem:[#allocation2 + $0x18] sm:$0x1] %vm152_vm2, %v3536_v0  ;;  %154 = vst.msk [vmem:[#allocation2 + $0x30] sm:$0x1] %vm152_vm2, %v3536_v0  ;;  %v1533_v10 = vld [vmem:[%s5333_s1 + $0x110] sm:$0xff]  ;;  %v1534_v11 = vld [vmem:[%s5333_s1 + $0x118] sm:$0xff]  ;;  %3248 = vmatpush1.bf16.msra.mxu0 %v3247_v5  ;;  %v3250_v12 = vpack.c.bf16 %v1502_v8, %v1501_v7 }
  0x1a   : > { %155 = vst.msk [vmem:[#allocation2 + $0x48] sm:$0x1] %vm152_vm2, %v3536_v0  ;;  %156 = vst.msk [vmem:[#allocation2 + $0x60] sm:$0x1] %vm152_vm2, %v3536_v0  ;;  %s3140_s16 = sshll.u32 %s138_s27, 8  ;;  %v1503_v13 = vld [vmem:[%s5333_s1 + $0x20] sm:$0xff]  ;;  %3249 = vmatprep.subr.bf16.mxu0 %v5335_v4  ;;  %3374 = vmatpush1.bf16.msra.mxu1 %v3665_v9  ;;  %v3696_v20 = vpack.c.bf16 %v1534_v11, %v1533_v10 }
  0x1b   : > { %157 = vst.msk [vmem:[#allocation2 + $0x78] sm:$0x1] %vm152_vm2, %v3536_v0  ;;  %158 = vst.msk [vmem:[#allocation2 + $0x90] sm:$0x1] %vm152_vm2, %v3536_v0  ;;  %s3679_s24 = scalar_lea.vmem %s5332_s0, %s3140_s16  ;;  %v1504_v14 = vld [vmem:[%s5333_s1 + $0x28] sm:$0xff]  ;;  %v1535_v15 = vld [vmem:[%s5333_s1 + $0x120] sm:$0xff]  ;;  %3359 = vmatprep.subr.bf16.mxu1 %v5335_v4 }
  0x1c   : > { %159 = vst.msk [vmem:[#allocation2 + $0xa8] sm:$0x1] %vm152_vm2, %v3536_v0  ;;  %160 = vst.msk [vmem:[#allocation2 + $0xc0] sm:$0x1] %vm152_vm2, %v3536_v0  ;;  %v1536_v16 = vld [vmem:[%s5333_s1 + $0x128] sm:$0xff]  ;;  %v195_v17 = vld [vmem:[%s3679_s24 + $0x50] sm:$0xff]  ;;  %v3253_v29 = vpack.c.bf16 %v1504_v14, %v1503_v13 }
  0x1d   : > { %161 = vst.msk [vmem:[#allocation2 + $0xd8] sm:$0x1] %vm152_vm2, %v3536_v0  ;;  %162 = vst.msk [vmem:[#allocation2 + $0xf0] sm:$0x1] %vm152_vm2, %v3536_v0  ;;  %v185_v18 = vld [vmem:[%s3679_s24] sm:$0xff]  ;;  %v186_v19 = vld [vmem:[%s3679_s24 + $0x8] sm:$0xff]  ;;  %3251 = vmatpush1.bf16.msra.mxu0 %v3250_v12  ;;  %v3733_v37 = vpack.c.bf16 %v1536_v16, %v1535_v15 }
  0x1e   : > { %163 = vst.msk [vmem:[#allocation2 + $0x108] sm:$0x1] %vm152_vm2, %v3536_v0  ;;  %164 = vst.msk [vmem:[#allocation2 + $0x120] sm:$0x1] %vm152_vm2, %v3536_v0  ;;  %v193_v21 = vld [vmem:[%s3679_s24 + $0x40] sm:$0xff]  ;;  %v194_v22 = vld [vmem:[%s3679_s24 + $0x48] sm:$0xff]  ;;  %3252 = vmatprep.subr.bf16.mxu0 %v5335_v4  ;;  %3375 = vmatpush1.bf16.msra.mxu1 %v3696_v20 }
  0x1f   : > { %165 = vst.msk [vmem:[#allocation2 + $0x138] sm:$0x1] %vm152_vm2, %v3536_v0  ;;  %166 = vst.msk [vmem:[#allocation2 + $0x150] sm:$0x1] %vm152_vm2, %v3536_v0  ;;  %v187_v23 = vld [vmem:[%s3679_s24 + $0x10] sm:$0xff]  ;;  %v3712_v25 = vld [vmem:[%s5333_s1 + $0x38] sm:$0xff]  ;;  %3360 = vmatprep.subr.bf16.mxu1 %v5335_v4 }
  0x20   : > { %167 = vst.msk [vmem:[#allocation2 + $0x168] sm:$0x1] %vm152_vm2, %v3536_v0  ;;  %168 = vst.msk [vmem:[#allocation2 + $0x180] sm:$0x1] %vm152_vm2, %v3536_v0  ;;  %v3707_v24 = vld [vmem:[%s5333_s1 + $0x30] sm:$0xff]  ;;  %v313_v27 = vld [vmem:[#allocation2 + $0x1] sm:$0xff] }
  0x21   : > { %169 = vst.msk [vmem:[#allocation2 + $0x29] sm:$0x1] %vm152_vm2, %v3536_v0  ;;  %170 = vst.msk [vmem:[#allocation2 + $0x41] sm:$0x1] %vm152_vm2, %v3536_v0  ;;  %v314_v26 = vld [vmem:[#allocation2 + $0x9] sm:$0xff]  ;;  %v196_v28 = vld [vmem:[%s3679_s24 + $0x58] sm:$0xff]  ;;  %377 = vrot.lane.b32.xlu0 %v313_v27, %s3538_s7  ;;  %3254 = vmatpush1.bf16.msra.mxu0 %v3253_v29  ;;  %v3256_v44 = vpack.c.bf16 %v3712_v25, %v3707_v24 }
  0x22   : > { %171 = vst.msk [vmem:[#allocation2 + $0x59] sm:$0x1] %vm152_vm2, %v3536_v0  ;;  %172 = vst.msk [vmem:[#allocation2 + $0x71] sm:$0x1] %vm152_vm2, %v3536_v0  ;;  %379 = vrot.lane.b32.xlu1 %v314_v26, %s3538_s7  ;;  %v197_v30 = vld [vmem:[%s3679_s24 + $0x60] sm:$0xff]  ;;  %v188_v31 = vld [vmem:[%s3679_s24 + $0x18] sm:$0xff]  ;;  %3255 = vmatprep.subr.bf16.mxu0 %v5335_v4 }
  0x23   : > { %173 = vst.msk [vmem:[#allocation2 + $0x89] sm:$0x1] %vm152_vm2, %v3536_v0  ;;  %174 = vst.msk [vmem:[#allocation2 + $0xa1] sm:$0x1] %vm152_vm2, %v3536_v0  ;;  %v1537_v32 = vld [vmem:[%s5333_s1 + $0x130] sm:$0xff]  ;;  %v250_v33 = vld [vmem:[#allocation2 + $0x8] sm:$0xff]  ;;  %3376 = vmatpush1.bf16.msra.mxu1 %v3733_v37 }
  0x24   : > { %175 = vst.msk [vmem:[#allocation2 + $0xb9] sm:$0x1] %vm152_vm2, %v3536_v0  ;;  %176 = vst.msk [vmem:[#allocation2 + $0xd1] sm:$0x1] %vm152_vm2, %v3536_v0  ;;  %v198_v34 = vld [vmem:[%s3679_s24 + $0x68] sm:$0xff]  ;;  %v189_v35 = vld [vmem:[%s3679_s24 + $0x20] sm:$0xff]  ;;  %3361 = vmatprep.subr.bf16.mxu1 %v5335_v4 }
  0x25   : > { %177 = vst.msk [vmem:[#allocation2 + $0xe9] sm:$0x1] %vm152_vm2, %v3536_v0  ;;  %178 = vst.msk [vmem:[#allocation2 + $0x101] sm:$0x1] %vm152_vm2, %v3536_v0  ;;  %v199_v36 = vld [vmem:[%s3679_s24 + $0x70] sm:$0xff]  ;;  %v190_v38 = vld [vmem:[%s3679_s24 + $0x28] sm:$0xff]  ;;  %3257 = vmatpush1.bf16.msra.mxu0 %v3256_v44 }
  0x26   : > { %179 = vst.msk [vmem:[#allocation2 + $0x119] sm:$0x1] %vm152_vm2, %v3536_v0  ;;  %180 = vst.msk [vmem:[#allocation2 + $0x131] sm:$0x1] %vm152_vm2, %v3536_v0  ;;  %v200_v39 = vld [vmem:[%s3679_s24 + $0x78] sm:$0xff]  ;;  %v191_v40 = vld [vmem:[%s3679_s24 + $0x30] sm:$0xff]  ;;  %3258 = vmatprep.subr.bf16.mxu0 %v5335_v4 }
  0x27   : > { %181 = vst.msk [vmem:[#allocation2 + $0x149] sm:$0x1] %vm152_vm2, %v3536_v0  ;;  %182 = vst.msk [vmem:[#allocation2 + $0x161] sm:$0x1] %vm152_vm2, %v3536_v0  ;;  %v201_v41 = vld [vmem:[%s3679_s24 + $0x80] sm:$0xff]  ;;  %v192_v42 = vld [vmem:[%s3679_s24 + $0x38] sm:$0xff] }
  0x28   : > { %183 = vst.msk [vmem:[#allocation2 + $0x179] sm:$0x1] %vm152_vm2, %v3536_v0  ;;  %184 = vst.msk [vmem:[#allocation2 + $0x191] sm:$0x1] %vm152_vm2, %v3536_v0  ;;  %v202_v43 = vld [vmem:[%s3679_s24 + $0x88] sm:$0xff]  ;;  %v203_v45 = vld [vmem:[%s3679_s24 + $0x90] sm:$0xff] }
  0x29   : > { %227 = vst.msk [vmem:[#allocation2 + $0x91] sm:$0xff] %vm142_vm0, %v195_v17  ;;  %217 = vst.msk [vmem:[#allocation2 + $0x19] sm:$0xff] %vm142_vm0, %v185_v18  ;;  %v204_v46 = vld [vmem:[%s3679_s24 + $0x98] sm:$0xff]  ;;  %v1507_v1 = vld [vmem:[%s5333_s1 + $0x40] sm:$0xff]  ;;  %vm2557_vm5 = vcmask 523268   ;;  %vm2630_vm6 = vcmask 523270  }
  0x2a   : > { %218 = vst.msk [vmem:[#allocation2 + $0x21] sm:$0xff] %vm142_vm0, %v186_v19  ;;  %225 = vst.msk [vmem:[#allocation2 + $0x79] sm:$0xff] %vm142_vm0, %v193_v21  ;;  %v1538_v47 = vld [vmem:[%s5333_s1 + $0x138] sm:$0xff]  ;;  %v1508_v2 = vld [vmem:[%s5333_s1 + $0x48] sm:$0xff]  ;;  %vm2443_vm7 = vcmask 521216   ;;  %vm2500_vm8 = vcmask 523266  }
  0x2b   : > { %226 = vst.msk [vmem:[#allocation2 + $0x81] sm:$0xff] %vm142_vm0, %v194_v22  ;;  %219 = vst.msk [vmem:[#allocation2 + $0x31] sm:$0xff] %vm142_vm0, %v187_v23  ;;  %v3765_v51 = vpack.c.bf16 %v1538_v47, %v1537_v32  ;;  %v3259_v3 = vpack.c.bf16 %v1508_v2, %v1507_v1  ;;  %v1539_v5 = vld [vmem:[%s5333_s1 + $0x140] sm:$0xff]  ;;  %v1540_v6 = vld [vmem:[%s5333_s1 + $0x148] sm:$0xff]  ;;  %vm2879_vm9 = vcmask 1041409   ;;  %vm2881_vm10 = vcmask 1042434  }
  0x2c   : > { %228 = vst.msk [vmem:[#allocation2 + $0x99] sm:$0xff] %vm142_vm0, %v196_v28  ;;  %229 = vst.msk [vmem:[#allocation2 + $0xa9] sm:$0xff] %vm142_vm0, %v197_v30  ;;  %v205_v7 = vld [vmem:[%s3679_s24 + $0xa0] sm:$0xff]  ;;  %v3832_v8 = vpack.c.bf16 %v1540_v6, %v1539_v5  ;;  %v1509_v11 = vld [vmem:[%s5333_s1 + $0x50] sm:$0xff]  ;;  %vm2883_vm11 = vcmask 1043459   ;;  %vm2885_vm12 = vcmask 1044484  }
  0x2d   : > { %220 = vst.msk [vmem:[#allocation2 + $0x39] sm:$0xff] %vm142_vm0, %v188_v31  ;;  %282 = vst.msk [vmem:[#allocation3 + $0x28] sm:$0xff] %vm142_vm0, %v250_v33  ;;  %3377 = vmatpush1.bf16.msra.mxu1 %v3765_v51  ;;  %v1510_v12 = vld [vmem:[%s5333_s1 + $0x58] sm:$0xff]  ;;  %3260 = vmatpush1.bf16.msra.mxu0 %v3259_v3  ;;  %v1541_v14 = vld [vmem:[%s5333_s1 + $0x150] sm:$0xff]  ;;  %vm2887_vm13 = vcmask 1045509   ;;  %vm2889_vm14 = vcmask 1046534  }
  0x2e   : > { %230 = vst.msk [vmem:[#allocation2 + $0xb1] sm:$0xff] %vm142_vm0, %v198_v34  ;;  %221 = vst.msk [vmem:[#allocation2 + $0x49] sm:$0xff] %vm142_vm0, %v189_v35  ;;  %3362 = vmatprep.subr.bf16.mxu1 %v5335_v4  ;;  %v3262_v13 = vpack.c.bf16 %v1510_v12, %v1509_v11  ;;  %v1542_v15 = vld [vmem:[%s5333_s1 + $0x158] sm:$0xff]  ;;  %v1511_v17 = vld [vmem:[%s5333_s1 + $0x60] sm:$0xff]  ;;  %3261 = vmatprep.subr.bf16.mxu0 %v5335_v4  ;;  %vm2891_vm15 = vcmask 1047559   ;;  %s3141_s3 = sshll.u32 %s3576_s13, 9 }
  0x2f   : > { %231 = vst.msk [vmem:[#allocation2 + $0xc1] sm:$0xff] %vm142_vm0, %v199_v36  ;;  %222 = vst.msk [vmem:[#allocation2 + $0x51] sm:$0xff] %vm142_vm0, %v190_v38  ;;  %v1512_v18 = vld [vmem:[%s5333_s1 + $0x68] sm:$0xff]  ;;  %v3864_v22 = vpack.c.bf16 %v1542_v15, %v1541_v14  ;;  %v1543_v24 = vld [vmem:[%s5333_s1 + $0x160] sm:$0xff]  ;;  %s5286_s8 = scalar_lea.hbm %s5334_s2, %s3141_s3  ;;  %s3539_s16 = smov [#allocation4]  }
  0x30   : > { %232 = vst.msk [vmem:[#allocation2 + $0xc9] sm:$0xff] %vm142_vm0, %v200_v39  ;;  %223 = vst.msk [vmem:[#allocation2 + $0x61] sm:$0xff] %vm142_vm0, %v191_v40  ;;  %v3760_v48 = vld [vmem:[#allocation2 + $0x91] sm:$0xff]  ;;  %v315_v62 = vld [vmem:[#allocation2 + $0x19] sm:$0xff]  ;;  %v3265_v27 = vpack.c.bf16 %v1512_v18, %v1511_v17  ;;  %s3476_s17 = sshll.u32 %s3539_s16, 4  ;;  %s3477_s17 = int_to_ptr.vmem [resolvable:$false] %s3476_s17 }
  0x31   : > { %233 = vst.msk [vmem:[#allocation2 + $0xd9] sm:$0xff] %vm142_vm0, %v201_v41  ;;  %224 = vst.msk [vmem:[#allocation2 + $0x69] sm:$0xff] %vm142_vm0, %v192_v42  ;;  %v570_v49 = vld [vmem:[#allocation2 + $0x18] sm:$0xff]  ;;  %v571_v50 = vld [vmem:[#allocation2 + $0x20] sm:$0xff]  ;;  %1163 = vrot.lane.b32.xlu1 %v3760_v48, %s3538_s7  ;;  %3378 = vmatpush1.bf16.msra.mxu1 %v3832_v8  ;;  %s3478_s21 = scalar_lea.vmem %s3477_s17, 1024 }
  0x32   : > { %234 = vst.msk [vmem:[#allocation2 + $0xe1] sm:$0xff] %vm142_vm0, %v202_v43  ;;  %235 = vst.msk [vmem:[#allocation2 + $0xf1] sm:$0xff] %vm142_vm0, %v203_v45  ;;  %634 = vrot.lane.b32.xlu0 %v570_v49, %s3538_s7  ;;  %v572_v52 = vld [vmem:[#allocation2 + $0x30] sm:$0xff]  ;;  %v834_v53 = vld [vmem:[#allocation2 + $0x7a] sm:$0xff]  ;;  %3363 = vmatprep.subr.bf16.mxu1 %v5335_v4 }
  0x33   : > { %236 = vst.msk [vmem:[#allocation2 + $0xf9] sm:$0xff] %vm142_vm0, %v204_v46  ;;  %283 = vst.msk [vmem:[#allocation3 + $0x50] sm:$0xff] %vm142_vm0, %v570_v49  ;;  %v3774_v54 = vld [vmem:[#allocation2 + $0x99] sm:$0xff]  ;;  %v3778_v55 = vld [vmem:[#allocation2 + $0xa9] sm:$0xff]  ;;  %3263 = vmatpush1.bf16.msra.mxu0 %v3262_v13 }
  0x34   : > { %804 = vst.msk [vmem:[#allocation3 + $0x1a0] sm:$0xff] %vm142_vm0, %v3760_v48  ;;  %284 = vst.msk [vmem:[#allocation3 + $0x78] sm:$0xff] %vm142_vm0, %v571_v50  ;;  %v573_v56 = vld [vmem:[#allocation2 + $0x38] sm:$0xff]  ;;  %v835_v61 = vld [vmem:[#allocation2 + $0x82] sm:$0xff]  ;;  %3264 = vmatprep.subr.bf16.mxu0 %v5335_v4 }
  0x35   : > { %285 = vst.msk [vmem:[#allocation3 + $0xa0] sm:$0xff] %vm142_vm0, %v572_v52  ;;  %805 = vst.msk [vmem:[#allocation3 + $0x1c8] sm:$0xff] %vm142_vm0, %v3774_v54  ;;  %v3783_v57 = vld [vmem:[#allocation2 + $0xb1] sm:$0xff]  ;;  %v3785_v58 = vld [vmem:[#allocation2 + $0x48] sm:$0xff]  ;;  %636 = vrot.lane.b32.xlu1 %v571_v50, %s3538_s7  ;;  %3379 = vmatpush1.bf16.msra.mxu1 %v3864_v22 }
  0x36   : > { %806 = vst.msk [vmem:[#allocation3 + $0x1f0] sm:$0xff] %vm142_vm0, %v3778_v55  ;;  %286 = vst.msk [vmem:[#allocation3 + $0xc8] sm:$0xff] %vm142_vm0, %v573_v56  ;;  %906 = vrot.lane.b32.xlu0 %v834_v53, %s3538_s7  ;;  %v3793_v59 = vld [vmem:[#allocation2 + $0xc1] sm:$0xff]  ;;  %v3795_v60 = vld [vmem:[#allocation2 + $0x50] sm:$0xff]  ;;  %3364 = vmatprep.subr.bf16.mxu1 %v5335_v4 }
  0x37   : > { %807 = vst.msk [vmem:[#allocation3 + $0x218] sm:$0xff] %vm142_vm0, %v3783_v57  ;;  %287 = vst.msk [vmem:[#allocation3 + $0xf0] sm:$0xff] %vm142_vm0, %v3785_v58  ;;  %v3809_v63 = vld [vmem:[#allocation2 + $0x90] sm:$0xff]  ;;  %v3813_v0 = vld [vmem:[#allocation2 + $0x79] sm:$0xff]  ;;  %3266 = vmatpush1.bf16.msra.mxu0 %v3265_v27 }
  0x38   : > { %808 = vst.msk [vmem:[#allocation3 + $0x240] sm:$0xff] %vm142_vm0, %v3793_v59  ;;  %288 = vst.msk [vmem:[#allocation3 + $0x118] sm:$0xff] %vm142_vm0, %v3795_v60  ;;  %v3835_v10 = vld [vmem:[#allocation2 + $0x98] sm:$0xff]  ;;  %v3854_v16 = vld [vmem:[#allocation2 + $0x81] sm:$0xff]  ;;  %3267 = vmatprep.subr.bf16.mxu0 %v5335_v4 }
  0x39   : > { %638 = vrot.lane.b32.xlu1 %v572_v52, %s3538_s7  ;;  %1059 = vst.msk [vmem:[#allocation3 + $0x158] sm:$0xff] %vm142_vm0, %v3809_v63  ;;  %802 = vst.msk [vmem:[#allocation3 + $0x150] sm:$0xff] %vm142_vm0, %v3813_v0  ;;  %v836_v19 = vld [vmem:[#allocation2 + $0x92] sm:$0xff]  ;;  %v316_v21 = vld [vmem:[#allocation2 + $0x21] sm:$0xff] }
  0x3a   : > { %1165 = vrot.lane.b32.xlu0 %v3774_v54, %s3538_s7  ;;  %237 = vst.msk [vmem:[#allocation2 + $0x109] sm:$0xff] %vm142_vm0, %v205_v7  ;;  %1060 = vst.msk [vmem:[#allocation3 + $0x180] sm:$0xff] %vm142_vm0, %v3835_v10  ;;  %v206_v23 = vld [vmem:[%s3679_s24 + $0xa8] sm:$0xff]  ;;  %v1513_v28 = vld [vmem:[%s5333_s1 + $0x70] sm:$0xff] }
  0x3b   : > { %803 = vst.msk [vmem:[#allocation3 + $0x178] sm:$0xff] %vm142_vm0, %v3854_v16  ;;  %v1544_v25 = vld [vmem:[%s5333_s1 + $0x168] sm:$0xff]  ;;  %238 = vst.msk [vmem:[#allocation2 + $0x111] sm:$0xff] %vm142_vm0, %v206_v23  ;;  %v1514_v29 = vld [vmem:[%s5333_s1 + $0x78] sm:$0xff] }
  0x3c   : > { %v3877_v26 = vld [vmem:[#allocation2 + $0xa8] sm:$0xff]  ;;  %v3889_v30 = vld [vmem:[#allocation2 + $0xb0] sm:$0xff]  ;;  %v3893_v31 = vpack.c.bf16 %v1544_v25, %v1543_v24  ;;  %v1546_v33 = vld [vmem:[%s5333_s1 + $0x178] sm:$0xff]  ;;  %v3268_v35 = vpack.c.bf16 %v1514_v29, %v1513_v28 }
  0x3d   : > { %381 = vrot.lane.b32.xlu1 %v315_v62, %s3538_s7  ;;  %1061 = vst.msk [vmem:[#allocation3 + $0x1a8] sm:$0xff] %vm142_vm0, %v3877_v26  ;;  %1062 = vst.msk [vmem:[#allocation3 + $0x1d0] sm:$0xff] %vm142_vm0, %v3889_v30  ;;  %v1545_v32 = vld [vmem:[%s5333_s1 + $0x170] sm:$0xff]  ;;  %v1515_v36 = vld [vmem:[%s5333_s1 + $0x80] sm:$0xff] }
  0x3e   : > { %908 = vrot.lane.b32.xlu0 %v835_v61, %s3538_s7  ;;  %v207_v34 = vld [vmem:[%s3679_s24 + $0xb0] sm:$0xff]  ;;  %v1516_v38 = vld [vmem:[%s5333_s1 + $0x88] sm:$0xff]  ;;  %v3916_v39 = vld [vmem:[#allocation2 + $0xc0] sm:$0xff]  ;;  %3380 = vmatpush1.bf16.msra.mxu1 %v3893_v31  ;;  %v3920_v42 = vpack.c.bf16 %v1546_v33, %v1545_v32 }
  0x3f   : > { %239 = vst.msk [vmem:[#allocation2 + $0x121] sm:$0xff] %vm142_vm0, %v207_v34  ;;  %v837_v40 = vld [vmem:[#allocation2 + $0x9a] sm:$0xff]  ;;  %v317_v41 = vld [vmem:[#allocation2 + $0x31] sm:$0xff]  ;;  %1063 = vst.msk [vmem:[#allocation3 + $0x1f8] sm:$0xff] %vm142_vm0, %v3916_v39  ;;  %3365 = vmatprep.subr.bf16.mxu1 %v5335_v4  ;;  %3269 = vmatpush1.bf16.msra.mxu0 %v3268_v35  ;;  %v3271_v46 = vpack.c.bf16 %v1516_v38, %v1515_v36 }
  0x40   : > { %v1547_v43 = vld [vmem:[%s5333_s1 + $0x180] sm:$0xff]  ;;  %v1548_v44 = vld [vmem:[%s5333_s1 + $0x188] sm:$0xff]  ;;  %v208_v45 = vld [vmem:[%s3679_s24 + $0xb8] sm:$0xff]  ;;  %3270 = vmatprep.subr.bf16.mxu0 %v5335_v4 }
  0x41   : > { %640 = vrot.lane.b32.xlu1 %v573_v56, %s3538_s7  ;;  %240 = vst.msk [vmem:[#allocation2 + $0x129] sm:$0xff] %vm142_vm0, %v208_v45  ;;  %v1517_v47 = vld [vmem:[%s5333_s1 + $0x90] sm:$0xff]  ;;  %v1518_v49 = vld [vmem:[%s5333_s1 + $0x98] sm:$0xff]  ;;  %v249_v50 = vld [vmem:[#allocation2] sm:$0xff]  ;;  %v3943_v52 = vpack.c.bf16 %v1548_v44, %v1547_v43 }
  0x42   : > { %1167 = vrot.lane.b32.xlu0 %v3778_v55, %s3538_s7  ;;  %3381 = vmatpush1.bf16.msra.mxu1 %v3920_v42  ;;  %281 = vst.msk [vmem:[#allocation3] sm:$0xff] %vm142_vm0, %v249_v50  ;;  %v209_v53 = vld [vmem:[%s3679_s24 + $0xc0] sm:$0xff]  ;;  %v1549_v56 = vld [vmem:[%s5333_s1 + $0x190] sm:$0xff]  ;;  %v3955_v61 = vld [vmem:[#allocation2 + $0xc8] sm:$0xff]  ;;  %v3274_v62 = vpack.c.bf16 %v1518_v49, %v1517_v47 }
  0x43   : > { %3366 = vmatprep.subr.bf16.mxu1 %v5335_v4  ;;  %241 = vst.msk [vmem:[#allocation2 + $0x139] sm:$0xff] %vm142_vm0, %v209_v53  ;;  %3272 = vmatpush1.bf16.msra.mxu0 %v3271_v46  ;;  %v506_v1 = vld [vmem:[#allocation2 + $0x2] sm:$0xff]  ;;  %1064 = vst.msk [vmem:[#allocation3 + $0x220] sm:$0xff] %vm142_vm0, %v3955_v61  ;;  %v507_v5 = vld [vmem:[#allocation2 + $0xa] sm:$0xff] }
  0x44   : > { %v1519_v2 = vld [vmem:[%s5333_s1 + $0xa0] sm:$0xff]  ;;  %v1520_v3 = vld [vmem:[%s5333_s1 + $0xa8] sm:$0xff]  ;;  %538 = vst.msk [vmem:[#allocation3 + $0x8] sm:$0xff] %vm142_vm0, %v506_v1  ;;  %3273 = vmatprep.subr.bf16.mxu0 %v5335_v4  ;;  %539 = vst.msk [vmem:[#allocation3 + $0x30] sm:$0xff] %vm142_vm0, %v507_v5 }
  0x45   : > { %383 = vrot.lane.b32.xlu1 %v316_v21, %s3538_s7  ;;  %v838_v6 = vld [vmem:[#allocation2 + $0xaa] sm:$0xff]  ;;  %v318_v7 = vld [vmem:[#allocation2 + $0x39] sm:$0xff]  ;;  %v3277_v17 = vpack.c.bf16 %v1520_v3, %v1519_v2  ;;  %v4027_v34 = vld [vmem:[#allocation2 + $0x22] sm:$0xff] }
  0x46   : > { %910 = vrot.lane.b32.xlu0 %v836_v19, %s3538_s7  ;;  %3382 = vmatpush1.bf16.msra.mxu1 %v3943_v52  ;;  %v1552_v12 = vld [vmem:[%s5333_s1 + $0x1a8] sm:$0xff]  ;;  %v576_v15 = vld [vmem:[#allocation2 + $0x60] sm:$0xff]  ;;  %v3986_v18 = vld [vmem:[#allocation2 + $0xd8] sm:$0xff]  ;;  %541 = vst.msk [vmem:[#allocation3 + $0x80] sm:$0xff] %vm142_vm0, %v4027_v34 }
  0x47   : > { %3367 = vmatprep.subr.bf16.mxu1 %v5335_v4  ;;  %v210_v13 = vld [vmem:[%s3679_s24 + $0xc8] sm:$0xff]  ;;  %3275 = vmatpush1.bf16.msra.mxu0 %v3274_v62  ;;  %v1521_v19 = vld [vmem:[%s5333_s1 + $0xb0] sm:$0xff]  ;;  %v1522_v21 = vld [vmem:[%s5333_s1 + $0xb8] sm:$0xff]  ;;  %1065 = vst.msk [vmem:[#allocation3 + $0x248] sm:$0xff] %vm142_vm0, %v3986_v18 }
  0x48   : > { %v3983_v14 = vld [vmem:[#allocation2 + $0xc9] sm:$0xff]  ;;  %242 = vst.msk [vmem:[#allocation2 + $0x141] sm:$0xff] %vm142_vm0, %v210_v13  ;;  %v3996_v23 = vld [vmem:[#allocation2 + $0x1a] sm:$0xff]  ;;  %3276 = vmatprep.subr.bf16.mxu0 %v5335_v4  ;;  %v839_v36 = vld [vmem:[#allocation2 + $0xb2] sm:$0xff] }
  0x49   : > { %642 = vrot.lane.b32.xlu1 %v3785_v58, %s3538_s7  ;;  %v1550_v58 = vld [vmem:[%s5333_s1 + $0x198] sm:$0xff]  ;;  %v1553_v25 = vld [vmem:[%s5333_s1 + $0x1b0] sm:$0xff]  ;;  %540 = vst.msk [vmem:[#allocation3 + $0x58] sm:$0xff] %vm142_vm0, %v3996_v23  ;;  %v4017_v29 = vld [vmem:[%s5333_s1 + $0xc0] sm:$0xff] }
  0x4a   : > { %1169 = vrot.lane.b32.xlu0 %v3783_v57, %s3538_s7  ;;  %v3972_v11 = vpack.c.bf16 %v1550_v58, %v1549_v56  ;;  %v1554_v27 = vld [vmem:[%s5333_s1 + $0x1b8] sm:$0xff]  ;;  %v211_v28 = vld [vmem:[%s3679_s24 + $0xd0] sm:$0xff]  ;;  %v4022_v32 = vld [vmem:[%s5333_s1 + $0xc8] sm:$0xff] }
  0x4b   : > { %243 = vst.msk [vmem:[#allocation2 + $0x151] sm:$0xff] %vm142_vm0, %v211_v28  ;;  %v4025_v33 = vld [vmem:[#allocation2 + $0xe0] sm:$0xff]  ;;  %v212_v35 = vld [vmem:[%s3679_s24 + $0xd8] sm:$0xff]  ;;  %v319_v38 = vld [vmem:[#allocation2 + $0x49] sm:$0xff]  ;;  %3278 = vmatpush1.bf16.msra.mxu0 %v3277_v17  ;;  %v4055_v49 = vpack.c.bf16 %v1554_v27, %v1553_v25  ;;  %v3283_v2 = vpack.c.bf16 %v4022_v32, %v4017_v29 }
  0x4c   : > { %3383 = vmatpush1.bf16.msra.mxu1 %v3972_v11  ;;  %244 = vst.msk [vmem:[#allocation2 + $0x159] sm:$0xff] %vm142_vm0, %v212_v35  ;;  %v4035_v43 = vld [vmem:[#allocation2 + $0x32] sm:$0xff]  ;;  %v213_v44 = vld [vmem:[%s3679_s24 + $0xe0] sm:$0xff]  ;;  %1066 = vst.msk [vmem:[#allocation3 + $0x270] sm:$0xff] %vm142_vm0, %v4025_v33  ;;  %3279 = vmatprep.subr.bf16.mxu0 %v5335_v4 }
  0x4d   : > { %385 = vrot.lane.b32.xlu1 %v317_v41, %s3538_s7  ;;  %3368 = vmatprep.subr.bf16.mxu1 %v5335_v4  ;;  %v4033_v41 = vld [vmem:[#allocation2 + $0xf0] sm:$0xff]  ;;  %542 = vst.msk [vmem:[#allocation3 + $0xa8] sm:$0xff] %vm142_vm0, %v4035_v43  ;;  %245 = vst.msk [vmem:[#allocation2 + $0x169] sm:$0xff] %vm142_vm0, %v213_v44  ;;  %v4046_v45 = vld [vmem:[#allocation2 + $0xf8] sm:$0xff] }
  0x4e   : > { %912 = vrot.lane.b32.xlu0 %v837_v40, %s3538_s7  ;;  %v3280_v40 = vpack.c.bf16 %v1522_v21, %v1521_v19  ;;  %v4048_v46 = vld [vmem:[#allocation2 + $0x3a] sm:$0xff]  ;;  %v214_v47 = vld [vmem:[%s3679_s24 + $0xe8] sm:$0xff]  ;;  %1067 = vst.msk [vmem:[#allocation3 + $0x298] sm:$0xff] %vm142_vm0, %v4033_v41  ;;  %v215_v56 = vld [vmem:[%s3679_s24 + $0xf0] sm:$0xff] }
  0x4f   : > { %543 = vst.msk [vmem:[#allocation3 + $0xd0] sm:$0xff] %vm142_vm0, %v4048_v46  ;;  %246 = vst.msk [vmem:[#allocation2 + $0x171] sm:$0xff] %vm142_vm0, %v214_v47  ;;  %v4060_v50 = vld [vmem:[#allocation2 + $0x108] sm:$0xff]  ;;  %v1555_v58 = vld [vmem:[%s5333_s1 + $0x1c0] sm:$0xff] }
  0x50   : > { %v4062_v53 = vld [vmem:[#allocation2 + $0x4a] sm:$0xff]  ;;  %1068 = vst.msk [vmem:[#allocation3 + $0x2c0] sm:$0xff] %vm142_vm0, %v4046_v45  ;;  %247 = vst.msk [vmem:[#allocation2 + $0x181] sm:$0xff] %vm142_vm0, %v215_v56  ;;  %3281 = vmatpush1.bf16.msra.mxu0 %v3280_v40  ;;  %v4086_v5 = vld [vmem:[#allocation2 + $0x52] sm:$0xff] }
  0x51   : > { %644 = vrot.lane.b32.xlu1 %v3795_v60, %s3538_s7  ;;  %v1551_v60 = vld [vmem:[%s5333_s1 + $0x1a0] sm:$0xff]  ;;  %v1556_v62 = vld [vmem:[%s5333_s1 + $0x1c8] sm:$0xff]  ;;  %v1525_v1 = vld [vmem:[%s5333_s1 + $0xd0] sm:$0xff]  ;;  %544 = vst.msk [vmem:[#allocation3 + $0xf8] sm:$0xff] %vm142_vm0, %v4062_v53  ;;  %3282 = vmatprep.subr.bf16.mxu0 %v5335_v4 }
  0x52   : > { %1171 = vrot.lane.b32.xlu0 %v3793_v59, %s3538_s7  ;;  %v4002_v24 = vpack.c.bf16 %v1552_v12, %v1551_v60  ;;  %1069 = vst.msk [vmem:[#allocation3 + $0x2e8] sm:$0xff] %vm142_vm0, %v4060_v50  ;;  %v4084_v3 = vld [vmem:[#allocation2 + $0x110] sm:$0xff]  ;;  %545 = vst.msk [vmem:[#allocation3 + $0x120] sm:$0xff] %vm142_vm0, %v4086_v5  ;;  %v4097_v60 = vld [vmem:[#allocation2 + $0x120] sm:$0xff]  ;;  %v4107_v17 = vpack.c.bf16 %v1556_v62, %v1555_v58 }
  0x53   : > { %v4099_v12 = vld [vmem:[#allocation2 + $0x62] sm:$0xff]  ;;  %1070 = vst.msk [vmem:[#allocation3 + $0x310] sm:$0xff] %vm142_vm0, %v4084_v3  ;;  %v4103_v13 = vld [vmem:[#allocation2 + $0xd9] sm:$0xff]  ;;  %1071 = vst.msk [vmem:[#allocation3 + $0x338] sm:$0xff] %vm142_vm0, %v4097_v60 }
  0x54   : > { %3384 = vmatpush1.bf16.msra.mxu1 %v4002_v24  ;;  %5347 = vst [vmem:[#allocation7_spill] sm:$0xff] %v4099_v12  ;;  %546 = vst.msk [vmem:[#allocation3 + $0x148] sm:$0xff] %vm142_vm0, %v4099_v12  ;;  %v777_v19 = vld [vmem:[#allocation2 + $0xc9] sm:$0xff]  ;;  %v1558_v25 = vld [vmem:[%s5333_s1 + $0x1d8] sm:$0xff]  ;;  %3284 = vmatpush1.bf16.msra.mxu0 %v3283_v2 }
  0x55   : > { %387 = vrot.lane.b32.xlu1 %v318_v7, %s3538_s7  ;;  %3369 = vmatprep.subr.bf16.mxu1 %v5335_v4  ;;  %v1526_v7 = vld [vmem:[%s5333_s1 + $0xd8] sm:$0xff]  ;;  %v1557_v21 = vld [vmem:[%s5333_s1 + $0x1d0] sm:$0xff]  ;;  %809 = vst.msk [vmem:[#allocation3 + $0x268] sm:$0xff] %vm142_vm0, %v777_v19  ;;  %v257_v28 = vld [vmem:[#allocation2 + $0x60] sm:$0xff] }
  0x56   : > { %914 = vrot.lane.b32.xlu0 %v838_v6, %s3538_s7  ;;  %v216_v6 = vld [vmem:[%s3679_s24 + $0xf8] sm:$0xff]  ;;  %v3286_v27 = vpack.c.bf16 %v1526_v7, %v1525_v1  ;;  %v1527_v29 = vld [vmem:[%s5333_s1 + $0xe0] sm:$0xff]  ;;  %v1528_v32 = vld [vmem:[%s5333_s1 + $0xe8] sm:$0xff]  ;;  %289 = vst.msk [vmem:[#allocation3 + $0x140] sm:$0xff] %vm142_vm0, %v257_v28  ;;  %3285 = vmatprep.subr.bf16.mxu0 %v5335_v4 }
  0x57   : > { %248 = vst.msk [vmem:[#allocation2 + $0x189] sm:$0xff] %vm142_vm0, %v216_v6  ;;  %v840_v35 = vld [vmem:[#allocation2 + $0xc2] sm:$0xff]  ;;  %v3289_v56 = vpack.c.bf16 %v1528_v32, %v1527_v29  ;;  %v4148_v58 = vld [vmem:[#allocation2 + $0x6a] sm:$0xff]  ;;  %v1530_v1 = vld [vmem:[%s5333_s1 + $0xf8] sm:$0xff] }
  0x58   : > { %3385 = vmatpush1.bf16.msra.mxu1 %v4055_v49  ;;  %v4135_v40 = vld [vmem:[#allocation2 + $0x128] sm:$0xff]  ;;  %v1559_v44 = vld [vmem:[%s5333_s1 + $0x1e0] sm:$0xff]  ;;  %3287 = vmatpush1.bf16.msra.mxu0 %v3286_v27  ;;  %5348 = vst [vmem:[#allocation8_spill] sm:$0xff] %v4148_v58  ;;  %v1529_v62 = vld [vmem:[%s5333_s1 + $0xf0] sm:$0xff] }
  0x59   : > { %646 = vrot.lane.b32.xlu1 %v576_v15, %s3538_s7  ;;  %v577_v15 = vld [vmem:[#allocation2 + $0x68] sm:$0xff]  ;;  %3370 = vmatprep.subr.bf16.mxu1 %v5335_v4  ;;  %1072 = vst.msk [vmem:[#allocation3 + $0x360] sm:$0xff] %vm142_vm0, %v4135_v40  ;;  %306 = vst.msk [vmem:[#allocation3 + $0x3e8] sm:$0xff] %vm142_vm0, %v4135_v40  ;;  %v578_v6 = vld [vmem:[#allocation2 + $0x78] sm:$0xff]  ;;  %v3292_v27 = vpack.c.bf16 %v1530_v1, %v1529_v62 }
  0x5a   : > { %1173 = vrot.lane.b32.xlu0 %v3983_v14, %s3538_s7  ;;  %v1560_v47 = vld [vmem:[%s5333_s1 + $0x1e8] sm:$0xff]  ;;  %547 = vst.msk [vmem:[#allocation3 + $0x170] sm:$0xff] %vm142_vm0, %v4148_v58  ;;  %3288 = vmatprep.subr.bf16.mxu0 %v5335_v4  ;;  %v1561_v19 = vld [vmem:[%s5333_s1 + $0x1f0] sm:$0xff]  ;;  %v4178_v28 = vld [vmem:[#allocation2 + $0x138] sm:$0xff] }
  0x5b   : > { %v4160_v2 = vld [vmem:[#allocation2 + $0xe1] sm:$0xff]  ;;  %v4164_v7 = vpack.c.bf16 %v1560_v47, %v1559_v44  ;;  %v841_v29 = vld [vmem:[#allocation2 + $0xca] sm:$0xff]  ;;  %1073 = vst.msk [vmem:[#allocation3 + $0x388] sm:$0xff] %vm142_vm0, %v4178_v28  ;;  %307 = vst.msk [vmem:[#allocation3 + $0x410] sm:$0xff] %vm142_vm0, %v4178_v28 }
  0x5c   : > { %3386 = vmatpush1.bf16.msra.mxu1 %v4107_v17  ;;  %3290 = vmatpush1.bf16.msra.mxu0 %v3289_v56  ;;  %v321_v32 = vld [vmem:[#allocation2 + $0x61] sm:$0xff]  ;;  %v4192_v44 = vld [vmem:[#allocation2 + $0xf1] sm:$0xff] }
  0x5d   : > { %389 = vrot.lane.b32.xlu1 %v319_v38, %s3538_s7  ;;  %v4133_v38 = vpack.c.bf16 %v1558_v25, %v1557_v21  ;;  %3371 = vmatprep.subr.bf16.mxu1 %v5335_v4  ;;  %v1562_v21 = vld [vmem:[%s5333_s1 + $0x1f8] sm:$0xff]  ;;  %v258_v25 = vld [vmem:[#allocation2 + $0x68] sm:$0xff]  ;;  %v579_v47 = vld [vmem:[#allocation2 + $0x80] sm:$0xff] }
  0x5e   : > { %916 = vrot.lane.b32.xlu0 %v839_v36, %s3538_s7  ;;  %v320_v36 = vld [vmem:[#allocation2 + $0x51] sm:$0xff]  ;;  %290 = vst.msk [vmem:[#allocation3 + $0x168] sm:$0xff] %vm142_vm0, %v258_v25  ;;  %3291 = vmatprep.subr.bf16.mxu0 %v5335_v4  ;;  %v779_v56 = vld [vmem:[#allocation2 + $0xe1] sm:$0xff]  ;;  %v4216_v25 = vld [vmem:[#allocation2 + $0xf9] sm:$0xff] }
  0x5f   : > { %811 = vst.msk [vmem:[#allocation3 + $0x2b8] sm:$0xff] %vm142_vm0, %v779_v56  ;;  %v259_v62 = vld [vmem:[#allocation2 + $0x78] sm:$0xff]  ;;  %v4198_v1 = vld [vmem:[#allocation2 + $0x140] sm:$0xff]  ;;  %v4230_v56 = vld [vmem:[#allocation2 + $0x168] sm:$0xff] }
  0x60   : > { %3387 = vmatpush1.bf16.msra.mxu1 %v4133_v38  ;;  %3293 = vmatpush1.bf16.msra.mxu0 %v3292_v27  ;;  %291 = vst.msk [vmem:[#allocation3 + $0x190] sm:$0xff] %vm142_vm0, %v259_v62  ;;  %1074 = vst.msk [vmem:[#allocation3 + $0x3b0] sm:$0xff] %vm142_vm0, %v4198_v1  ;;  %v780_v27 = vld [vmem:[#allocation2 + $0xf1] sm:$0xff]  ;;  %v781_v62 = vld [vmem:[#allocation2 + $0xf9] sm:$0xff] }
  0x61   : > { %648 = vrot.lane.b32.xlu1 %v577_v15, %s3538_s7  ;;  %v778_v15 = vld [vmem:[#allocation2 + $0xd9] sm:$0xff]  ;;  %3372 = vmatprep.subr.bf16.mxu1 %v5335_v4  ;;  %308 = vst.msk [vmem:[#allocation3 + $0x438] sm:$0xff] %vm142_vm0, %v4198_v1  ;;  %812 = vst.msk [vmem:[#allocation3 + $0x2e0] sm:$0xff] %vm142_vm0, %v780_v27 }
  0x62   : > { %1175 = vrot.lane.b32.xlu0 %v4103_v13, %s3538_s7  ;;  %810 = vst.msk [vmem:[#allocation3 + $0x290] sm:$0xff] %vm142_vm0, %v778_v15  ;;  %3294 = vmatprep.subr.bf16.mxu0 %v5335_v4  ;;  %v322_v15 = vld [vmem:[#allocation2 + $0x69] sm:$0xff]  ;;  %1077 = vst.msk [vmem:[#allocation3 + $0x428] sm:$0xff] %vm142_vm0, %v4230_v56  ;;  %v4255_v27 = vld [vmem:[#allocation2 + $0x180] sm:$0xff] }
  0x63   : > { %311 = vst.msk [vmem:[#allocation3 + $0x4b0] sm:$0xff] %vm142_vm0, %v4230_v56  ;;  %813 = vst.msk [vmem:[#allocation3 + $0x308] sm:$0xff] %vm142_vm0, %v781_v62  ;;  %v1563_v62 = vld [vmem:[%s5333_s1 + $0x200] sm:$0xff]  ;;  %v267_v12 = vld [vmem:[#allocation2 + $0xd8] sm:$0xff] }
  0x64   : > { %3388 = vmatpush1.bf16.msra.mxu1 %v4164_v7  ;;  %1079 = vst.msk [vmem:[#allocation3 + $0x478] sm:$0xff] %vm142_vm0, %v4255_v27  ;;  %299 = vst.msk [vmem:[#allocation3 + $0x2d0] sm:$0xff] %vm142_vm0, %v267_v12  ;;  %v525_v12 = vld [vmem:[#allocation2 + $0xe2] sm:$0xff] }
  0x65   : > { %391 = vrot.lane.b32.xlu1 %v320_v36, %s3538_s7  ;;  %3373 = vmatprep.subr.bf16.mxu1 %v5335_v4  ;;  %v516_v36 = vld [vmem:[#allocation2 + $0x7a] sm:$0xff]  ;;  %557 = vst.msk [vmem:[#allocation3 + $0x300] sm:$0xff] %vm142_vm0, %v525_v12  ;;  %1322 = vst.msk [vmem:[#allocation3 + $0x278] sm:$0xff] %vm142_vm0, %v525_v12 }
  0x66   : > { %918 = vrot.lane.b32.xlu0 %v840_v35, %s3538_s7  ;;  %v4182_v35 = vpack.c.bf16 %v1562_v21, %v1561_v19  ;;  %548 = vst.msk [vmem:[#allocation3 + $0x198] sm:$0xff] %vm142_vm0, %v516_v36  ;;  %v517_v19 = vld [vmem:[#allocation2 + $0x82] sm:$0xff]  ;;  %v4207_v21 = vld [vmem:[#allocation2 + $0x150] sm:$0xff] }
  0x67   : > { %549 = vst.msk [vmem:[#allocation3 + $0x1c0] sm:$0xff] %vm142_vm0, %v517_v19  ;;  %1075 = vst.msk [vmem:[#allocation3 + $0x3d8] sm:$0xff] %vm142_vm0, %v4207_v21  ;;  %v843_v36 = vld [vmem:[#allocation2 + $0xe2] sm:$0xff]  ;;  %v519_v19 = vld [vmem:[#allocation2 + $0x9a] sm:$0xff] }
  0x68   : > { %3389 = vmatpush1.bf16.msra.mxu1 %v4182_v35  ;;  %309 = vst.msk [vmem:[#allocation3 + $0x460] sm:$0xff] %vm142_vm0, %v4207_v21  ;;  %551 = vst.msk [vmem:[#allocation3 + $0x210] sm:$0xff] %vm142_vm0, %v519_v19 }
  0x69   : > { %650 = vrot.lane.b32.xlu1 %v578_v6, %s3538_s7  ;;  %v842_v6 = vld [vmem:[#allocation2 + $0xda] sm:$0xff]  ;;  %1316 = vst.msk [vmem:[#allocation3 + $0x188] sm:$0xff] %vm142_vm0, %v519_v19  ;;  %v520_v19 = vld [vmem:[#allocation2 + $0xaa] sm:$0xff] }
  0x6a   : > { %1177 = vrot.lane.b32.xlu0 %v4160_v2, %s3538_s7  ;;  %552 = vst.msk [vmem:[#allocation3 + $0x238] sm:$0xff] %vm142_vm0, %v520_v19  ;;  %1317 = vst.msk [vmem:[#allocation3 + $0x1b0] sm:$0xff] %vm142_vm0, %v520_v19  ;;  %v4311_v19 = vld [vmem:[#allocation2 + $0x129] sm:$0xff] }
  0x6d   : > { %393 = vrot.lane.b32.xlu1 %v321_v32, %s3538_s7  ;;  %v4220_v32 = vld [vmem:[#allocation2 + $0x158] sm:$0xff] }
  0x6e   : > { %920 = vrot.lane.b32.xlu0 %v841_v29, %s3538_s7  ;;  %v260_v29 = vld [vmem:[#allocation2 + $0x80] sm:$0xff]  ;;  %1076 = vst.msk [vmem:[#allocation3 + $0x400] sm:$0xff] %vm142_vm0, %v4220_v32  ;;  %310 = vst.msk [vmem:[#allocation3 + $0x488] sm:$0xff] %vm142_vm0, %v4220_v32 }
  0x6f   : > { %292 = vst.msk [vmem:[#allocation3 + $0x1b8] sm:$0xff] %vm142_vm0, %v260_v29  ;;  %v782_v29 = vld [vmem:[#allocation2 + $0x109] sm:$0xff] }
  0x70   : > { %814 = vst.msk [vmem:[#allocation3 + $0x330] sm:$0xff] %vm142_vm0, %v782_v29  ;;  %v4284_v29 = vld [vmem:[#allocation2 + $0x31] sm:$0xff] }
  0x71   : > { %652 = vrot.lane.b32.xlu1 %v579_v47, %s3538_s7  ;;  %v518_v47 = vld [vmem:[#allocation2 + $0x92] sm:$0xff]  ;;  %796 = vst.msk [vmem:[#allocation3 + $0x60] sm:$0xff] %vm142_vm0, %v4284_v29 }
  0x72   : > { %1179 = vrot.lane.b32.xlu0 %v4192_v44, %s3538_s7  ;;  %550 = vst.msk [vmem:[#allocation3 + $0x1e8] sm:$0xff] %vm142_vm0, %v518_v47  ;;  %1315 = vst.msk [vmem:[#allocation3 + $0x160] sm:$0xff] %vm142_vm0, %v518_v47  ;;  %v4268_v47 = vld [vmem:[#allocation2 + $0x188] sm:$0xff] }
  0x73   : > { %1080 = vst.msk [vmem:[#allocation3 + $0x4a0] sm:$0xff] %vm142_vm0, %v4268_v47 }
  0x75   : > { %395 = vrot.lane.b32.xlu1 %v322_v15, %s3538_s7  ;;  %v4245_v15 = vld [vmem:[#allocation2 + $0x170] sm:$0xff] }
  0x76   : > { %922 = vrot.lane.b32.xlu0 %v842_v6, %s3538_s7  ;;  %v261_v6 = vld [vmem:[#allocation2 + $0x90] sm:$0xff]  ;;  %1078 = vst.msk [vmem:[#allocation3 + $0x450] sm:$0xff] %vm142_vm0, %v4245_v15  ;;  %312 = vst.msk [vmem:[#allocation3 + $0x4d8] sm:$0xff] %vm142_vm0, %v4245_v15 }
  0x77   : > { %293 = vst.msk [vmem:[#allocation3 + $0x1e0] sm:$0xff] %vm142_vm0, %v261_v6  ;;  %v1564_v6 = vld [vmem:[%s5333_s1 + $0x208] sm:$0xff] }
  0x79   : > { %654 = vrot.lane.b32.xlu1 %v3809_v63, %s3538_s7  ;;  %v4241_v63 = vld [vmem:[#allocation2 + $0x109] sm:$0xff] }
  0x7a   : > { %1181 = vrot.lane.b32.xlu0 %v4216_v25, %s3538_s7 }
  0x7d   : > { %397 = vrot.lane.b32.xlu1 %v3813_v0, %s3538_s7  ;;  %v844_v0 = vld [vmem:[#allocation2 + $0xf2] sm:$0xff] }
  0x7e   : > { %924 = vrot.lane.b32.xlu0 %v843_v36, %s3538_s7  ;;  %v262_v36 = vld [vmem:[#allocation2 + $0x98] sm:$0xff] }
  0x7f   : > { %294 = vst.msk [vmem:[#allocation3 + $0x208] sm:$0xff] %vm142_vm0, %v262_v36  ;;  %v783_v36 = vld [vmem:[#allocation2 + $0x111] sm:$0xff] }
  0x80   : > { %815 = vst.msk [vmem:[#allocation3 + $0x358] sm:$0xff] %vm142_vm0, %v783_v36  ;;  %v784_v36 = vld [vmem:[#allocation2 + $0x121] sm:$0xff] }
  0x81   : > { %656 = vrot.lane.b32.xlu1 %v3835_v10, %s3538_s7  ;;  %v4264_v10 = vld [vmem:[#allocation2 + $0x111] sm:$0xff]  ;;  %816 = vst.msk [vmem:[#allocation3 + $0x380] sm:$0xff] %vm142_vm0, %v784_v36  ;;  %v4326_v36 = vld [vmem:[#allocation2 + $0x139] sm:$0xff] }
  0x82   : > { %1183 = vrot.lane.b32.xlu0 %v4241_v63, %s3538_s7 }
  0x85   : > { %399 = vrot.lane.b32.xlu1 %v3854_v16, %s3538_s7  ;;  %v845_v16 = vld [vmem:[#allocation2 + $0xfa] sm:$0xff] }
  0x86   : > { %926 = vrot.lane.b32.xlu0 %v844_v0, %s3538_s7  ;;  %v4282_v0 = vpack.c.bf16 %v1564_v6, %v1563_v62  ;;  %v263_v62 = vld [vmem:[#allocation2 + $0xa8] sm:$0xff]  ;;  %v521_v6 = vld [vmem:[#allocation2 + $0xb2] sm:$0xff] }
  0x87   : > { %295 = vst.msk [vmem:[#allocation3 + $0x230] sm:$0xff] %vm142_vm0, %v263_v62  ;;  %553 = vst.msk [vmem:[#allocation3 + $0x260] sm:$0xff] %vm142_vm0, %v521_v6  ;;  %v847_v62 = vld [vmem:[#allocation2 + $0x112] sm:$0xff] }
  0x88   : > { %3343 = vmatprep.subr.bf16.mxu1 %v4282_v0  ;;  %1318 = vst.msk [vmem:[#allocation3 + $0x1d8] sm:$0xff] %vm142_vm0, %v521_v6 }
  0x89   : > { %658 = vrot.lane.b32.xlu1 %v3877_v26, %s3538_s7  ;;  %v4293_v26 = vld [vmem:[#allocation2 + $0x121] sm:$0xff] }
  0x8a   : > { %1185 = vrot.lane.b32.xlu0 %v4264_v10, %s3538_s7 }
  0x8d   : > { %401 = vrot.lane.b32.xlu1 %v3760_v48, %s3538_s7  ;;  %v846_v48 = vld [vmem:[#allocation2 + $0x10a] sm:$0xff] }
  0x8e   : > { %928 = vrot.lane.b32.xlu0 %v845_v16, %s3538_s7  ;;  %v4298_v16 = vld [vmem:[#allocation2 + $0x39] sm:$0xff] }
  0x8f   : > { %797 = vst.msk [vmem:[#allocation3 + $0x88] sm:$0xff] %vm142_vm0, %v4298_v16 }
  0x91   : > { %660 = vrot.lane.b32.xlu1 %v3889_v30, %s3538_s7  ;;  %v264_v30 = vld [vmem:[#allocation2 + $0xb0] sm:$0xff] }
  0x92   : > { %1187 = vrot.lane.b32.xlu0 %v4293_v26, %s3538_s7  ;;  %296 = vst.msk [vmem:[#allocation3 + $0x258] sm:$0xff] %vm142_vm0, %v264_v30  ;;  %v265_v30 = vld [vmem:[#allocation2 + $0xc0] sm:$0xff] }
  0x93   : > { %v378_v6 = vpop.permute.xlu0 %377  ;;  %297 = vst.msk [vmem:[#allocation3 + $0x280] sm:$0xff] %vm142_vm0, %v265_v30 }
  0x94   : > { %474 = vst.msk [vmem:[#allocation3] sm:$0xff] %vm473_vm3, %v378_v6  ;;  %v4341_v6 = vld [vmem:[#allocation2 + $0x141] sm:$0xff] }
  0x95   : > { %403 = vrot.lane.b32.xlu1 %v3774_v54, %s3538_s7  ;;  %v522_v54 = vld [vmem:[#allocation2 + $0xc2] sm:$0xff] }
  0x96   : > { %930 = vrot.lane.b32.xlu0 %v846_v48, %s3538_s7  ;;  %v380_v48 = vpop.permute.xlu1 %379  ;;  %554 = vst.msk [vmem:[#allocation3 + $0x288] sm:$0xff] %vm142_vm0, %v522_v54  ;;  %1319 = vst.msk [vmem:[#allocation3 + $0x200] sm:$0xff] %vm142_vm0, %v522_v54 }
  0x97   : > { %475 = vst.msk [vmem:[#allocation3 + $0x28] sm:$0xff] %vm473_vm3, %v380_v48  ;;  %v523_v48 = vld [vmem:[#allocation2 + $0xca] sm:$0xff] }
  0x98   : > { %555 = vst.msk [vmem:[#allocation3 + $0x2b0] sm:$0xff] %vm142_vm0, %v523_v48  ;;  %1320 = vst.msk [vmem:[#allocation3 + $0x228] sm:$0xff] %vm142_vm0, %v523_v48 }
  0x99   : > { %662 = vrot.lane.b32.xlu1 %v3916_v39, %s3538_s7  ;;  %v785_v39 = vld [vmem:[#allocation2 + $0x129] sm:$0xff] }
  0x9a   : > { %1189 = vrot.lane.b32.xlu0 %v4311_v19, %s3538_s7  ;;  %817 = vst.msk [vmem:[#allocation3 + $0x3a8] sm:$0xff] %vm142_vm0, %v785_v39 }
  0x9d   : > { %405 = vrot.lane.b32.xlu1 %v3778_v55, %s3538_s7  ;;  %v848_v55 = vld [vmem:[#allocation2 + $0x122] sm:$0xff] }
  0x9e   : > { %932 = vrot.lane.b32.xlu0 %v847_v62, %s3538_s7 }
  0xa1   : > { %664 = vrot.lane.b32.xlu1 %v3955_v61, %s3538_s7  ;;  %v786_v61 = vld [vmem:[#allocation2 + $0x139] sm:$0xff] }
  0xa2   : > { %1191 = vrot.lane.b32.xlu0 %v4326_v36, %s3538_s7  ;;  %818 = vst.msk [vmem:[#allocation3 + $0x3d0] sm:$0xff] %vm142_vm0, %v786_v61  ;;  %v1565_v61 = vld [vmem:[%s5333_s1 + $0x210] sm:$0xff] }
  0xa3   : > { %v1164_v62 = vpop.permute.xlu1 %1163 }
  0xa4   : > { %v635_v54 = vpop.permute.xlu0 %634  ;;  %1251 = vst.msk [vmem:[#allocation3 + $0x158] sm:$0xff] %vm473_vm3, %v1164_v62  ;;  %v266_v62 = vld [vmem:[#allocation2 + $0xc8] sm:$0xff] }
  0xa5   : > { %730 = vst.msk [vmem:[#allocation3 + $0x8] sm:$0xff] %vm473_vm3, %v635_v54  ;;  %407 = vrot.lane.b32.xlu1 %v3783_v57, %s3538_s7  ;;  %v849_v57 = vld [vmem:[#allocation2 + $0x12a] sm:$0xff] }
  0xa6   : > { %934 = vrot.lane.b32.xlu0 %v848_v55, %s3538_s7  ;;  %298 = vst.msk [vmem:[#allocation3 + $0x2a8] sm:$0xff] %vm142_vm0, %v266_v62  ;;  %v787_v62 = vld [vmem:[#allocation2 + $0x141] sm:$0xff] }
  0xa7   : > { %v637_v39 = vpop.permute.xlu1 %636  ;;  %819 = vst.msk [vmem:[#allocation3 + $0x3f8] sm:$0xff] %vm142_vm0, %v787_v62 }
  0xa8   : > { %v907_v30 = vpop.permute.xlu0 %906  ;;  %731 = vst.msk [vmem:[#allocation3 + $0x30] sm:$0xff] %vm473_vm3, %v637_v39  ;;  %v1339_v39 = vld [vmem:[#allocation3] sm:$0xff] }
  0xa9   : > { %994 = vst.msk [vmem:[#allocation3 + $0x150] sm:$0xff] %vm473_vm3, %v907_v30  ;;  %666 = vrot.lane.b32.xlu1 %v3986_v18, %s3538_s7  ;;  %v1566_v18 = vld [vmem:[%s5333_s1 + $0x218] sm:$0xff] }
  0xaa   : > { %1193 = vrot.lane.b32.xlu0 %v4341_v6, %s3538_s7  ;;  %v524_v30 = vld [vmem:[#allocation2 + $0xda] sm:$0xff] }
  0xab   : > { %v639_v55 = vpop.permute.xlu1 %638  ;;  %v1382_v4 = vld [vmem:[#allocation3 + $0x158] sm:$0xff]  ;;  %556 = vst.msk [vmem:[#allocation3 + $0x2d8] sm:$0xff] %vm142_vm0, %v524_v30  ;;  %1321 = vst.msk [vmem:[#allocation3 + $0x250] sm:$0xff] %vm142_vm0, %v524_v30 }
  0xac   : > { %v1166_v54 = vpop.permute.xlu0 %1165  ;;  %v1340_v48 = vld [vmem:[#allocation3 + $0x8] sm:$0xff]  ;;  %732 = vst.msk [vmem:[#allocation3 + $0x58] sm:$0xff] %vm473_vm3, %v639_v55  ;;  %1996 = vmatprep.mubr.f32.mxu1 %v1382_v4 }
  0xad   : > { %1252 = vst.msk [vmem:[#allocation3 + $0x180] sm:$0xff] %vm473_vm3, %v1166_v54  ;;  %1731 = vmatprep.mubr.f32.mxu0 %v1340_v48  ;;  %409 = vrot.lane.b32.xlu1 %v3793_v59, %s3538_s7  ;;  %v4364_v55 = vld [vmem:[#allocation2 + $0x151] sm:$0xff] }
  0xae   : > { %936 = vrot.lane.b32.xlu0 %v849_v57, %s3538_s7  ;;  %1732 = vmatmul.mubr.f32.vlgmr.msra.gmra.mrb[0].mxu0 %v1339_v39  ;;  %v5349_v57 = vmov 0.0|0.0   ;;  %v3346_v39 = vpack.c.bf16 %v1566_v18, %v1565_v61  ;;  %v1344_v59 = vld [vmem:[#allocation3 + $0x28] sm:$0xff] }
  0xaf   : > { %3296 = vmatpush1.bf16.msra.mxu0 %v3665_v9  ;;  %v382_v54 = vpop.permute.xlu1 %381  ;;  %v1345_v48 = vld [vmem:[#allocation3 + $0x30] sm:$0xff] }
  0xb0   : > { %v909_v4 = vpop.permute.xlu0 %908  ;;  %v1381_v58 = vld [vmem:[#allocation3 + $0x150] sm:$0xff]  ;;  %3297 = vmatprep.subr.bf16.mxu0 %v5349_v57  ;;  %476 = vst.msk [vmem:[#allocation3 + $0x50] sm:$0xff] %vm473_vm3, %v382_v54  ;;  %1736 = vmatprep.mubr.f32.mxu0 %v1345_v48 }
  0xb1   : > { %995 = vst.msk [vmem:[#allocation3 + $0x178] sm:$0xff] %vm473_vm3, %v909_v4  ;;  %1997 = vmatmul.mubr.f32.vlgmr.msra.gmra.mrb[0].mxu1 %v1381_v58  ;;  %668 = vrot.lane.b32.xlu1 %v4025_v33, %s3538_s7  ;;  %v850_v9 = vld [vmem:[#allocation2 + $0x13a] sm:$0xff]  ;;  %v788_v33 = vld [vmem:[#allocation2 + $0x151] sm:$0xff] }
  0xb2   : > { %1195 = vrot.lane.b32.xlu0 %v4364_v55, %s3538_s7  ;;  %1737 = vmatmul.mubr.f32.gmra.mrb[2].mxu0 %v1344_v59  ;;  %820 = vst.msk [vmem:[#allocation3 + $0x420] sm:$0xff] %vm142_vm0, %v788_v33  ;;  %v268_v48 = vld [vmem:[#allocation2 + $0xe0] sm:$0xff] }
  0xb3   : > { %3345 = vmatpush3.bf16.msra.mxu1 %v4282_v0  ;;  %v641_v18 = vpop.permute.xlu1 %640  ;;  %v1350_v62 = vld [vmem:[#allocation3 + $0x58] sm:$0xff]  ;;  %3299 = vmatpush1.bf16.msra.mxu0 %v3696_v20  ;;  %v4386_v20 = vld [vmem:[#allocation2 + $0x159] sm:$0xff]  ;;  %300 = vst.msk [vmem:[#allocation3 + $0x2f8] sm:$0xff] %vm142_vm0, %v268_v48 }
  0xb4   : > { %v1168_v61 = vpop.permute.xlu0 %1167  ;;  %v1387_v30 = vld [vmem:[#allocation3 + $0x180] sm:$0xff]  ;;  %3347 = vmatprep.subr.bf16.mxu1 %v3346_v39  ;;  %733 = vst.msk [vmem:[#allocation3 + $0x80] sm:$0xff] %vm473_vm3, %v641_v18  ;;  %1741 = vmatprep.mubr.f32.mxu0 %v1350_v62 }
  0xb5   : > { %1253 = vst.msk [vmem:[#allocation3 + $0x1a8] sm:$0xff] %vm473_vm3, %v1168_v61  ;;  %2001 = vmatprep.mubr.f32.mxu1 %v1387_v30  ;;  %3300 = vmatprep.subr.bf16.mxu0 %v5349_v57  ;;  %v526_v62 = vld [vmem:[#allocation2 + $0xf2] sm:$0xff] }
  0xb6   : > { %938 = vrot.lane.b32.xlu0 %v850_v9, %s3538_s7  ;;  %411 = vrot.lane.b32.xlu1 %v3983_v14, %s3538_s7  ;;  %v1567_v14 = vld [vmem:[%s5333_s1 + $0x220] sm:$0xff]  ;;  %558 = vst.msk [vmem:[#allocation3 + $0x328] sm:$0xff] %vm142_vm0, %v526_v62  ;;  %1323 = vst.msk [vmem:[#allocation3 + $0x2a0] sm:$0xff] %vm142_vm0, %v526_v62 }
  0xb7   : > { %3349 = vmatpush3.bf16.msra.mxu1 %v3346_v39  ;;  %v384_v0 = vpop.permute.xlu1 %383  ;;  %v1349_v54 = vld [vmem:[#allocation3 + $0x50] sm:$0xff]  ;;  %3302 = vmatpush1.bf16.msra.mxu0 %v3733_v37  ;;  %v1568_v37 = vld [vmem:[%s5333_s1 + $0x228] sm:$0xff] }
  0xb8   : > { %v911_v58 = vpop.permute.xlu0 %910  ;;  %v1386_v4 = vld [vmem:[#allocation3 + $0x178] sm:$0xff]  ;;  %477 = vst.msk [vmem:[#allocation3 + $0x78] sm:$0xff] %vm473_vm3, %v384_v0  ;;  %1742 = vmatmul.mubr.f32.gmra.mrb[4].mxu0 %v1349_v54  ;;  %3303 = vmatprep.subr.bf16.mxu0 %v5349_v57  ;;  %v3350_v59 = vpack.c.bf16 %v1568_v37, %v1567_v14  ;;  %v527_v37 = vld [vmem:[#allocation2 + $0xfa] sm:$0xff] }
  0xb9   : > { %996 = vst.msk [vmem:[#allocation3 + $0x1a0] sm:$0xff] %vm473_vm3, %v911_v58  ;;  %2002 = vmatmul.mubr.f32.gmra.mrb[2].mxu1 %v1386_v4  ;;  %v851_v39 = vld [vmem:[#allocation2 + $0x142] sm:$0xff]  ;;  %v269_v4 = vld [vmem:[#allocation2 + $0xf0] sm:$0xff] }
  0xba   : > { %1197 = vrot.lane.b32.xlu0 %v4386_v20, %s3538_s7  ;;  %670 = vrot.lane.b32.xlu1 %v4033_v41, %s3538_s7  ;;  %v789_v41 = vld [vmem:[#allocation2 + $0x159] sm:$0xff]  ;;  %301 = vst.msk [vmem:[#allocation3 + $0x320] sm:$0xff] %vm142_vm0, %v269_v4  ;;  %559 = vst.msk [vmem:[#allocation3 + $0x350] sm:$0xff] %vm142_vm0, %v527_v37 }
  0xbb   : > { %v643_v61 = vpop.permute.xlu1 %642  ;;  %v1355_v30 = vld [vmem:[#allocation3 + $0x80] sm:$0xff]  ;;  %3305 = vmatpush1.bf16.msra.mxu0 %v3765_v51  ;;  %3351 = vmatprep.subr.bf16.mxu1 %v3350_v59  ;;  %821 = vst.msk [vmem:[#allocation3 + $0x448] sm:$0xff] %vm142_vm0, %v789_v41  ;;  %1324 = vst.msk [vmem:[#allocation3 + $0x2c8] sm:$0xff] %vm142_vm0, %v527_v37 }
  0xbc   : > { %v1170_v9 = vpop.permute.xlu0 %1169  ;;  %v1392_v18 = vld [vmem:[#allocation3 + $0x1a8] sm:$0xff]  ;;  %734 = vst.msk [vmem:[#allocation3 + $0xa8] sm:$0xff] %vm473_vm3, %v643_v61  ;;  %1746 = vmatprep.mubr.f32.mxu0 %v1355_v30  ;;  %3306 = vmatprep.subr.bf16.mxu0 %v5349_v57  ;;  %v4413_v51 = vld [vmem:[#allocation2 + $0x169] sm:$0xff] }
  0xbd   : > { %1254 = vst.msk [vmem:[#allocation3 + $0x1d0] sm:$0xff] %vm473_vm3, %v1170_v9  ;;  %2006 = vmatprep.mubr.f32.mxu1 %v1392_v18  ;;  %3353 = vmatpush3.bf16.msra.mxu1 %v3350_v59  ;;  %v270_v18 = vld [vmem:[#allocation2 + $0xf8] sm:$0xff] }
  0xbe   : > { %940 = vrot.lane.b32.xlu0 %v851_v39, %s3538_s7  ;;  %413 = vrot.lane.b32.xlu1 %v4103_v13, %s3538_s7  ;;  %v852_v13 = vld [vmem:[#allocation2 + $0x152] sm:$0xff]  ;;  %302 = vst.msk [vmem:[#allocation3 + $0x348] sm:$0xff] %vm142_vm0, %v270_v18 }
  0xbf   : > { %v386_v33 = vpop.permute.xlu1 %385  ;;  %v1354_v0 = vld [vmem:[#allocation3 + $0x78] sm:$0xff]  ;;  %3308 = vmatpush1.bf16.msra.mxu0 %v3832_v8 }
  0xc0   : > { %v913_v12 = vpop.permute.xlu0 %912  ;;  %v1391_v58 = vld [vmem:[#allocation3 + $0x1a0] sm:$0xff]  ;;  %478 = vst.msk [vmem:[#allocation3 + $0xa0] sm:$0xff] %vm473_vm3, %v386_v33  ;;  %1747 = vmatmul.mubr.f32.gmra.mrb[6].mxu0 %v1354_v0  ;;  %3309 = vmatprep.subr.bf16.mxu0 %v5349_v57 }
  0xc1   : > { %997 = vst.msk [vmem:[#allocation3 + $0x1c8] sm:$0xff] %vm473_vm3, %v913_v12  ;;  %2007 = vmatmul.mubr.f32.gmra.mrb[4].mxu1 %v1391_v58  ;;  %v528_v12 = vld [vmem:[#allocation2 + $0x10a] sm:$0xff] }
  0xc2   : > { %1199 = vrot.lane.b32.xlu0 %v4413_v51, %s3538_s7  ;;  %672 = vrot.lane.b32.xlu1 %v4046_v45, %s3538_s7  ;;  %v790_v45 = vld [vmem:[#allocation2 + $0x169] sm:$0xff]  ;;  %560 = vst.msk [vmem:[#allocation3 + $0x378] sm:$0xff] %vm142_vm0, %v528_v12  ;;  %1325 = vst.msk [vmem:[#allocation3 + $0x2f0] sm:$0xff] %vm142_vm0, %v528_v12 }
  0xc3   : > { %v645_v54 = vpop.permute.xlu1 %644  ;;  %v1360_v14 = vld [vmem:[#allocation3 + $0xa8] sm:$0xff]  ;;  %3311 = vmatpush1.bf16.msra.mxu0 %v3864_v22  ;;  %822 = vst.msk [vmem:[#allocation3 + $0x470] sm:$0xff] %vm142_vm0, %v790_v45 }
  0xc4   : > { %v1172_v8 = vpop.permute.xlu0 %1171  ;;  %v1397_v48 = vld [vmem:[#allocation3 + $0x1d0] sm:$0xff]  ;;  %735 = vst.msk [vmem:[#allocation3 + $0xd0] sm:$0xff] %vm473_vm3, %v645_v54  ;;  %1751 = vmatprep.mubr.f32.mxu0 %v1360_v14  ;;  %3312 = vmatprep.subr.bf16.mxu0 %v5349_v57  ;;  %v4434_v22 = vld [vmem:[#allocation2 + $0x171] sm:$0xff] }
  0xc5   : > { %1255 = vst.msk [vmem:[#allocation3 + $0x1f8] sm:$0xff] %vm473_vm3, %v1172_v8  ;;  %2011 = vmatprep.mubr.f32.mxu1 %v1397_v48  ;;  %v1049_v8 = vld [vmem:[#allocation2 + $0x198] sm:$0xff]  ;;  %v854_v54 = vld [vmem:[#allocation2 + $0x16a] sm:$0xff] }
  0xc6   : > { %942 = vrot.lane.b32.xlu0 %v852_v13, %s3538_s7  ;;  %415 = vrot.lane.b32.xlu1 %v4160_v2, %s3538_s7  ;;  %v853_v2 = vld [vmem:[#allocation2 + $0x15a] sm:$0xff]  ;;  %v271_v13 = vld [vmem:[#allocation2 + $0x108] sm:$0xff]  ;;  %1081 = vst.msk [vmem:[#allocation3 + $0x4c8] sm:$0xff] %vm142_vm0, %v1049_v8 }
  0xc7   : > { %v388_v59 = vpop.permute.xlu1 %387  ;;  %v1359_v61 = vld [vmem:[#allocation3 + $0xa0] sm:$0xff]  ;;  %3314 = vmatpush1.bf16.msra.mxu0 %v3893_v31  ;;  %303 = vst.msk [vmem:[#allocation3 + $0x370] sm:$0xff] %vm142_vm0, %v271_v13  ;;  %v273_v13 = vld [vmem:[#allocation2 + $0x120] sm:$0xff] }
  0xc8   : > { %v915_v39 = vpop.permute.xlu0 %914  ;;  %v1396_v9 = vld [vmem:[#allocation3 + $0x1c8] sm:$0xff]  ;;  %479 = vst.msk [vmem:[#allocation3 + $0xc8] sm:$0xff] %vm473_vm3, %v388_v59  ;;  %1752 = vmatmul.mubr.f32.gmra.mrb[8].mxu0 %v1359_v61  ;;  %3315 = vmatprep.subr.bf16.mxu0 %v5349_v57 }
  0xc9   : > { %998 = vst.msk [vmem:[#allocation3 + $0x1f0] sm:$0xff] %vm473_vm3, %v915_v39  ;;  %2012 = vmatmul.mubr.f32.gmra.mrb[6].mxu1 %v1396_v9  ;;  %v529_v59 = vld [vmem:[#allocation2 + $0x112] sm:$0xff]  ;;  %v1112_v9 = vld [vmem:[#allocation2 + $0x189] sm:$0xff] }
  0xca   : > { %1201 = vrot.lane.b32.xlu0 %v4434_v22, %s3538_s7  ;;  %674 = vrot.lane.b32.xlu1 %v4060_v50, %s3538_s7  ;;  %v791_v50 = vld [vmem:[#allocation2 + $0x171] sm:$0xff]  ;;  %561 = vst.msk [vmem:[#allocation3 + $0x3a0] sm:$0xff] %vm142_vm0, %v529_v59  ;;  %1326 = vst.msk [vmem:[#allocation3 + $0x318] sm:$0xff] %vm142_vm0, %v529_v59 }
  0xcb   : > { %v647_v31 = vpop.permute.xlu1 %646  ;;  %v1365_v41 = vld [vmem:[#allocation3 + $0xd0] sm:$0xff]  ;;  %3317 = vmatpush1.bf16.msra.mxu0 %v3920_v42  ;;  %823 = vst.msk [vmem:[#allocation3 + $0x498] sm:$0xff] %vm142_vm0, %v791_v50  ;;  %305 = vst.msk [vmem:[#allocation3 + $0x3c0] sm:$0xff] %vm142_vm0, %v273_v13 }
  0xcc   : > { %v1174_v30 = vpop.permute.xlu0 %1173  ;;  %v1402_v62 = vld [vmem:[#allocation3 + $0x1f8] sm:$0xff]  ;;  %736 = vst.msk [vmem:[#allocation3 + $0xf8] sm:$0xff] %vm473_vm3, %v647_v31  ;;  %1756 = vmatprep.mubr.f32.mxu0 %v1365_v41  ;;  %3318 = vmatprep.subr.bf16.mxu0 %v5349_v57  ;;  %v855_v31 = vld [vmem:[#allocation2 + $0x172] sm:$0xff] }
  0xcd   : > { %1256 = vst.msk [vmem:[#allocation3 + $0x220] sm:$0xff] %vm473_vm3, %v1174_v30  ;;  %2016 = vmatprep.mubr.f32.mxu1 %v1402_v62  ;;  %v1111_v42 = vld [vmem:[#allocation2 + $0x181] sm:$0xff]  ;;  %v272_v30 = vld [vmem:[#allocation2 + $0x110] sm:$0xff] }
  0xce   : > { %944 = vrot.lane.b32.xlu0 %v853_v2, %s3538_s7  ;;  %417 = vrot.lane.b32.xlu1 %v4192_v44, %s3538_s7  ;;  %v1569_v44 = vld [vmem:[%s5333_s1 + $0x230] sm:$0xff]  ;;  %304 = vst.msk [vmem:[#allocation3 + $0x398] sm:$0xff] %vm142_vm0, %v272_v30 }
  0xcf   : > { %v390_v58 = vpop.permute.xlu1 %389  ;;  %v1364_v4 = vld [vmem:[#allocation3 + $0xc8] sm:$0xff]  ;;  %3320 = vmatpush1.bf16.msra.mxu0 %v3943_v52  ;;  %v1280_v30 = vld [vmem:[#allocation2 + $0x6a] sm:$0xff] }
  0xd0   : > { %v917_v33 = vpop.permute.xlu0 %916  ;;  %v1401_v0 = vld [vmem:[#allocation3 + $0x1f0] sm:$0xff]  ;;  %480 = vst.msk [vmem:[#allocation3 + $0xf0] sm:$0xff] %vm473_vm3, %v390_v58  ;;  %1757 = vmatmul.mubr.f32.gmra.mrb[10].mxu0 %v1364_v4  ;;  %3321 = vmatprep.subr.bf16.mxu0 %v5349_v57  ;;  %v1570_v52 = vld [vmem:[%s5333_s1 + $0x238] sm:$0xff] }
  0xd1   : > { %999 = vst.msk [vmem:[#allocation3 + $0x218] sm:$0xff] %vm473_vm3, %v917_v33  ;;  %2017 = vmatmul.mubr.f32.gmra.mrb[8].mxu1 %v1401_v0  ;;  %v3354_v48 = vpack.c.bf16 %v1570_v52, %v1569_v44 }
  0xd2   : > { %1203 = vrot.lane.b32.xlu0 %v1111_v42, %s3538_s7  ;;  %676 = vrot.lane.b32.xlu1 %v4084_v3, %s3538_s7  ;;  %v792_v3 = vld [vmem:[#allocation2 + $0x181] sm:$0xff]  ;;  %v1113_v42 = vld [vmem:[#allocation2 + $0x199] sm:$0xff]  ;;  %1312 = vst.msk [vmem:[#allocation3 + $0xe8] sm:$0xff] %vm142_vm0, %v1280_v30 }
  0xd3   : > { %v649_v37 = vpop.permute.xlu1 %648  ;;  %v1370_v39 = vld [vmem:[#allocation3 + $0xf8] sm:$0xff]  ;;  %3323 = vmatpush1.bf16.msra.mxu0 %v3972_v11  ;;  %3355 = vmatprep.subr.bf16.mxu1 %v3354_v48  ;;  %824 = vst.msk [vmem:[#allocation3 + $0x4c0] sm:$0xff] %vm142_vm0, %v792_v3 }
  0xd4   : > { %v1176_v14 = vpop.permute.xlu0 %1175  ;;  %v1407_v45 = vld [vmem:[#allocation3 + $0x220] sm:$0xff]  ;;  %737 = vst.msk [vmem:[#allocation3 + $0x120] sm:$0xff] %vm473_vm3, %v649_v37  ;;  %1761 = vmatprep.mubr.f32.mxu0 %v1370_v39  ;;  %3357 = vmatpush3.bf16.msra.mxu1 %v3354_v48 }
  0xd5   : > { %1257 = vst.msk [vmem:[#allocation3 + $0x248] sm:$0xff] %vm473_vm3, %v1176_v14  ;;  %2021 = vmatprep.mubr.f32.mxu1 %v1407_v45  ;;  %3324 = vmatprep.subr.bf16.mxu0 %v5349_v57  ;;  %v1275_v48 = vld [vmem:[#allocation2 + $0x32] sm:$0xff]  ;;  %v1114_v14 = vld [vmem:[#allocation2 + $0x1a1] sm:$0xff]  ;;  %v1277_v3 = vld [vmem:[#allocation2 + $0x4a] sm:$0xff] }
  0xd6   : > { %946 = vrot.lane.b32.xlu0 %v854_v54, %s3538_s7  ;;  %419 = vrot.lane.b32.xlu1 %v4216_v25, %s3538_s7  ;;  %v1050_v25 = vld [vmem:[#allocation2 + $0x1a0] sm:$0xff]  ;;  %1307 = vst.msk [vmem:[#allocation3 + $0x20] sm:$0xff] %vm142_vm0, %v1275_v48  ;;  %1309 = vst.msk [vmem:[#allocation3 + $0x70] sm:$0xff] %vm142_vm0, %v1277_v3  ;;  %v1020_v48 = vld [vmem:[#allocation2 + $0x38] sm:$0xff] }
  0xd7   : > { %v392_v61 = vpop.permute.xlu1 %391  ;;  %v1369_v2 = vld [vmem:[#allocation3 + $0xf0] sm:$0xff]  ;;  %3326 = vmatpush1.bf16.msra.mxu0 %v4002_v24  ;;  %1082 = vst.msk [vmem:[#allocation3 + $0x4f0] sm:$0xff] %vm142_vm0, %v1050_v25  ;;  %1052 = vst.msk [vmem:[#allocation3 + $0x40] sm:$0xff] %vm142_vm0, %v1020_v48 }
  0xd8   : > { %v919_v11 = vpop.permute.xlu0 %918  ;;  %v1406_v18 = vld [vmem:[#allocation3 + $0x218] sm:$0xff]  ;;  %481 = vst.msk [vmem:[#allocation3 + $0x118] sm:$0xff] %vm473_vm3, %v392_v61  ;;  %1762 = vmatmul.mubr.f32.gmra.mrb[12].mxu0 %v1369_v2  ;;  %3327 = vmatprep.subr.bf16.mxu0 %v5349_v57 }
  0xd9   : > { %1000 = vst.msk [vmem:[#allocation3 + $0x240] sm:$0xff] %vm473_vm3, %v919_v11  ;;  %2022 = vmatmul.mubr.f32.gmra.mrb[10].mxu1 %v1406_v18  ;;  %v530_v24 = vld [vmem:[#allocation2 + $0x122] sm:$0xff] }
  0xda   : > { %1205 = vrot.lane.b32.xlu0 %v1112_v9, %s3538_s7  ;;  %678 = vrot.lane.b32.xlu1 %v4097_v60, %s3538_s7  ;;  %562 = vst.msk [vmem:[#allocation3 + $0x3c8] sm:$0xff] %vm142_vm0, %v530_v24  ;;  %v793_v60 = vld [vmem:[#allocation2 + $0x189] sm:$0xff]  ;;  %1327 = vst.msk [vmem:[#allocation3 + $0x340] sm:$0xff] %vm142_vm0, %v530_v24 }
  0xdb   : > { %v651_v41 = vpop.permute.xlu1 %650  ;;  %v1375_v50 = vld [vmem:[#allocation3 + $0x120] sm:$0xff]  ;;  %3329 = vmatpush1.bf16.msra.mxu0 %v4055_v49  ;;  %825 = vst.msk [vmem:[#allocation3 + $0x4e8] sm:$0xff] %vm142_vm0, %v793_v60 }
  0xdc   : > { %v1178_v62 = vpop.permute.xlu0 %1177  ;;  %v1412_v12 = vld [vmem:[#allocation3 + $0x248] sm:$0xff]  ;;  %738 = vst.msk [vmem:[#allocation3 + $0x148] sm:$0xff] %vm473_vm3, %v651_v41  ;;  %1766 = vmatprep.mubr.f32.mxu0 %v1375_v50  ;;  %3330 = vmatprep.subr.bf16.mxu0 %v5349_v57  ;;  %v531_v49 = vld [vmem:[#allocation2 + $0x12a] sm:$0xff] }
  0xdd   : > { %1258 = vst.msk [vmem:[#allocation3 + $0x270] sm:$0xff] %vm473_vm3, %v1178_v62  ;;  %2026 = vmatprep.mubr.f32.mxu1 %v1412_v12  ;;  %v857_v9 = vld [vmem:[#allocation2 + $0x18a] sm:$0xff]  ;;  %v1281_v41 = vld [vmem:[#allocation2 + $0x7a] sm:$0xff]  ;;  %v1282_v12 = vld [vmem:[#allocation2 + $0x82] sm:$0xff] }
  0xde   : > { %948 = vrot.lane.b32.xlu0 %v855_v31, %s3538_s7  ;;  %421 = vrot.lane.b32.xlu1 %v4241_v63, %s3538_s7  ;;  %v856_v63 = vld [vmem:[#allocation2 + $0x182] sm:$0xff]  ;;  %563 = vst.msk [vmem:[#allocation3 + $0x3f0] sm:$0xff] %vm142_vm0, %v531_v49  ;;  %1328 = vst.msk [vmem:[#allocation3 + $0x368] sm:$0xff] %vm142_vm0, %v531_v49 }
  0xdf   : > { %v394_v58 = vpop.permute.xlu1 %393  ;;  %v1374_v4 = vld [vmem:[#allocation3 + $0x118] sm:$0xff]  ;;  %3332 = vmatpush1.bf16.msra.mxu0 %v4107_v17  ;;  %v1276_v17 = vld [vmem:[#allocation2 + $0x3a] sm:$0xff]  ;;  %1313 = vst.msk [vmem:[#allocation3 + $0x110] sm:$0xff] %vm142_vm0, %v1281_v41  ;;  %1314 = vst.msk [vmem:[#allocation3 + $0x138] sm:$0xff] %vm142_vm0, %v1282_v12 }
  0xe0   : > { %v921_v33 = vpop.permute.xlu0 %920  ;;  %v1411_v0 = vld [vmem:[#allocation3 + $0x240] sm:$0xff]  ;;  %482 = vst.msk [vmem:[#allocation3 + $0x140] sm:$0xff] %vm473_vm3, %v394_v58  ;;  %1767 = vmatmul.mubr.f32.gmra.mrb[14].mxu0 %v1374_v4  ;;  %3333 = vmatprep.subr.bf16.mxu0 %v5349_v57 }
  0xe1   : > { %1001 = vst.msk [vmem:[#allocation3 + $0x268] sm:$0xff] %vm473_vm3, %v921_v33  ;;  %2027 = vmatmul.mubr.f32.gmra.mrb[12].mxu1 %v1411_v0 }
  0xe2   : > { %1207 = vrot.lane.b32.xlu0 %v1113_v42, %s3538_s7  ;;  %680 = vrot.lane.b32.xlu1 %v4135_v40, %s3538_s7  ;;  %v532_v40 = vld [vmem:[#allocation2 + $0x13a] sm:$0xff]  ;;  %1308 = vst.msk [vmem:[#allocation3 + $0x48] sm:$0xff] %vm142_vm0, %v1276_v17 }
  0xe3   : > { %v653_v52 = vpop.permute.xlu1 %652  ;;  %v1380_v54 = vld [vmem:[#allocation3 + $0x148] sm:$0xff]  ;;  %3335 = vmatpush1.bf16.msra.mxu0 %v4133_v38  ;;  %564 = vst.msk [vmem:[#allocation3 + $0x418] sm:$0xff] %vm142_vm0, %v532_v40  ;;  %1329 = vst.msk [vmem:[#allocation3 + $0x390] sm:$0xff] %vm142_vm0, %v532_v40  ;;  %v763_v17 = vld [vmem:[#allocation2 + $0x21] sm:$0xff] }
  0xe4   : > { %v1180_v44 = vpop.permute.xlu0 %1179  ;;  %v1417_v8 = vld [vmem:[#allocation3 + $0x270] sm:$0xff]  ;;  %739 = vst.msk [vmem:[#allocation3 + $0x170] sm:$0xff] %vm473_vm3, %v653_v52  ;;  %1771 = vmatprep.mubr.f32.mxu0 %v1380_v54  ;;  %3336 = vmatprep.subr.bf16.mxu0 %v5349_v57  ;;  %v1278_v38 = vld [vmem:[#allocation2 + $0x52] sm:$0xff] }
  0xe5   : > { %1259 = vst.msk [vmem:[#allocation3 + $0x298] sm:$0xff] %vm473_vm3, %v1180_v44  ;;  %2031 = vmatprep.mubr.f32.mxu1 %v1417_v8  ;;  %v762_v52 = vld [vmem:[#allocation2 + $0x19] sm:$0xff] }
  0xe6   : > { %950 = vrot.lane.b32.xlu0 %v856_v63, %s3538_s7  ;;  %423 = vrot.lane.b32.xlu1 %v4264_v10, %s3538_s7  ;;  %v533_v10 = vld [vmem:[#allocation2 + $0x142] sm:$0xff]  ;;  %1310 = vst.msk [vmem:[#allocation3 + $0x98] sm:$0xff] %vm142_vm0, %v1278_v38  ;;  %794 = vst.msk [vmem:[#allocation3 + $0x10] sm:$0xff] %vm142_vm0, %v762_v52  ;;  %v5351_v52 = vld [vmem:[#allocation8_spill] sm:$0xff] }
  0xe7   : > { %v396_v45 = vpop.permute.xlu1 %395  ;;  %v1379_v39 = vld [vmem:[#allocation3 + $0x140] sm:$0xff]  ;;  %3338 = vmatpush1.bf16.msra.mxu0 %v4164_v7  ;;  %565 = vst.msk [vmem:[#allocation3 + $0x440] sm:$0xff] %vm142_vm0, %v533_v10  ;;  %1330 = vst.msk [vmem:[#allocation3 + $0x3b8] sm:$0xff] %vm142_vm0, %v533_v10  ;;  %v1279_v7 = vld [vmem:[#allocation2 + $0x62] sm:$0xff] }
  0xe8   : > { %v923_v37 = vpop.permute.xlu0 %922  ;;  %v1416_v59 = vld [vmem:[#allocation3 + $0x268] sm:$0xff]  ;;  %483 = vst.msk [vmem:[#allocation3 + $0x168] sm:$0xff] %vm473_vm3, %v396_v45  ;;  %1772 = vmatmul.mubr.f32.gmra.mrb[16].mxu0 %v1379_v39  ;;  %3339 = vmatprep.subr.bf16.mxu0 %v5349_v57 }
  0xe9   : > { %1002 = vst.msk [vmem:[#allocation3 + $0x290] sm:$0xff] %vm473_vm3, %v923_v37  ;;  %2032 = vmatmul.mubr.f32.gmra.mrb[14].mxu1 %v1416_v59  ;;  %v1022_v59 = vld [vmem:[#allocation2 + $0x50] sm:$0xff] }
  0xea   : > { %1209 = vrot.lane.b32.xlu0 %v1114_v14, %s3538_s7  ;;  %682 = vrot.lane.b32.xlu1 %v4178_v28, %s3538_s7  ;;  %v534_v28 = vld [vmem:[#allocation2 + $0x152] sm:$0xff]  ;;  %1311 = vst.msk [vmem:[#allocation3 + $0xc0] sm:$0xff] %vm142_vm0, %v1279_v7  ;;  %795 = vst.msk [vmem:[#allocation3 + $0x38] sm:$0xff] %vm142_vm0, %v763_v17 }
  0xeb   : > { %v655_v61 = vpop.permute.xlu1 %654  ;;  %v1385_v2 = vld [vmem:[#allocation3 + $0x170] sm:$0xff]  ;;  %3341 = vmatpush1.bf16.msra.mxu0 %v4182_v35  ;;  %566 = vst.msk [vmem:[#allocation3 + $0x468] sm:$0xff] %vm142_vm0, %v534_v28  ;;  %1331 = vst.msk [vmem:[#allocation3 + $0x3e0] sm:$0xff] %vm142_vm0, %v534_v28  ;;  %v767_v7 = vld [vmem:[#allocation2 + $0x51] sm:$0xff] }
  0xec   : > { %v1182_v11 = vpop.permute.xlu0 %1181  ;;  %v1422_v18 = vld [vmem:[#allocation3 + $0x298] sm:$0xff]  ;;  %740 = vst.msk [vmem:[#allocation3 + $0x198] sm:$0xff] %vm473_vm3, %v655_v61  ;;  %1776 = vmatprep.mubr.f32.mxu0 %v1385_v2  ;;  %v535_v35 = vld [vmem:[#allocation2 + $0x15a] sm:$0xff] }
  0xed   : > { %1260 = vst.msk [vmem:[#allocation3 + $0x2c0] sm:$0xff] %vm473_vm3, %v1182_v11  ;;  %2036 = vmatprep.mubr.f32.mxu1 %v1422_v18  ;;  %v1024_v2 = vld [vmem:[#allocation2 + $0x68] sm:$0xff] }
  0xee   : > { %952 = vrot.lane.b32.xlu0 %v857_v9, %s3538_s7  ;;  %425 = vrot.lane.b32.xlu1 %v4293_v26, %s3538_s7  ;;  %567 = vst.msk [vmem:[#allocation3 + $0x490] sm:$0xff] %vm142_vm0, %v535_v35  ;;  %1332 = vst.msk [vmem:[#allocation3 + $0x408] sm:$0xff] %vm142_vm0, %v535_v35  ;;  %v766_v9 = vld [vmem:[#allocation2 + $0x49] sm:$0xff] }
  0xef   : > { %v398_v25 = vpop.permute.xlu1 %397  ;;  %v1384_v31 = vld [vmem:[#allocation3 + $0x168] sm:$0xff]  ;;  %1054 = vst.msk [vmem:[#allocation3 + $0x90] sm:$0xff] %vm142_vm0, %v1022_v59  ;;  %798 = vst.msk [vmem:[#allocation3 + $0xb0] sm:$0xff] %vm142_vm0, %v766_v9 }
  0xf0   : > { %v925_v57 = vpop.permute.xlu0 %924  ;;  %v1421_v62 = vld [vmem:[#allocation3 + $0x290] sm:$0xff]  ;;  %484 = vst.msk [vmem:[#allocation3 + $0x190] sm:$0xff] %vm473_vm3, %v398_v25  ;;  %1777 = vmatmul.mubr.f32.gmra.mrb[18].mxu0 %v1384_v31 }
  0xf1   : > { %1003 = vst.msk [vmem:[#allocation3 + $0x2b8] sm:$0xff] %vm473_vm3, %v925_v57  ;;  %2037 = vmatmul.mubr.f32.gmra.mrb[16].mxu1 %v1421_v62  ;;  %v768_v31 = vld [vmem:[#allocation2 + $0x61] sm:$0xff] }
  0xf2   : > { %684 = vrot.lane.b32.xlu0 %v4198_v1, %s3538_s7  ;;  %427 = vrot.lane.b32.xlu1 %v4311_v19, %s3538_s7  ;;  %v536_v1 = vld [vmem:[#allocation2 + $0x16a] sm:$0xff]  ;;  %1056 = vst.msk [vmem:[#allocation3 + $0xe0] sm:$0xff] %vm142_vm0, %v1024_v2  ;;  %799 = vst.msk [vmem:[#allocation3 + $0xd8] sm:$0xff] %vm142_vm0, %v767_v7 }
  0xf3   : > { %v657_v50 = vpop.permute.xlu1 %656  ;;  %v1390_v60 = vld [vmem:[#allocation3 + $0x198] sm:$0xff]  ;;  %568 = vst.msk [vmem:[#allocation3 + $0x4b8] sm:$0xff] %vm142_vm0, %v536_v1  ;;  %1333 = vst.msk [vmem:[#allocation3 + $0x430] sm:$0xff] %vm142_vm0, %v536_v1 }
  0xf4   : > { %v1184_v26 = vpop.permute.xlu0 %1183  ;;  %v1427_v24 = vld [vmem:[#allocation3 + $0x2c0] sm:$0xff]  ;;  %741 = vst.msk [vmem:[#allocation3 + $0x1c0] sm:$0xff] %vm473_vm3, %v657_v50  ;;  %1781 = vmatprep.mubr.f32.mxu0 %v1390_v60 }
  0xf5   : > { %1261 = vst.msk [vmem:[#allocation3 + $0x2e8] sm:$0xff] %vm473_vm3, %v1184_v26  ;;  %2041 = vmatprep.mubr.f32.mxu1 %v1427_v24  ;;  %v1026_v26 = vld [vmem:[#allocation2 + $0x80] sm:$0xff]  ;;  %v769_v50 = vld [vmem:[#allocation2 + $0x69] sm:$0xff] }
  0xf6   : > { %686 = vrot.lane.b32.xlu0 %v4207_v21, %s3538_s7  ;;  %429 = vrot.lane.b32.xlu1 %v4326_v36, %s3538_s7  ;;  %v537_v21 = vld [vmem:[#allocation2 + $0x172] sm:$0xff]  ;;  %800 = vst.msk [vmem:[#allocation3 + $0x100] sm:$0xff] %vm142_vm0, %v768_v31  ;;  %1058 = vst.msk [vmem:[#allocation3 + $0x130] sm:$0xff] %vm142_vm0, %v1026_v26  ;;  %v1304_v24 = vld [vmem:[#allocation2 + $0x18a] sm:$0xff] }
  0xf7   : > { %v400_v42 = vpop.permute.xlu1 %399  ;;  %v1389_v33 = vld [vmem:[#allocation3 + $0x190] sm:$0xff]  ;;  %569 = vst.msk [vmem:[#allocation3 + $0x4e0] sm:$0xff] %vm142_vm0, %v537_v21  ;;  %1334 = vst.msk [vmem:[#allocation3 + $0x458] sm:$0xff] %vm142_vm0, %v537_v21  ;;  %v1088_v60 = vld [vmem:[#allocation2 + $0x69] sm:$0xff] }
  0xf8   : > { %v927_v19 = vpop.permute.xlu0 %926  ;;  %v1426_v58 = vld [vmem:[#allocation3 + $0x2b8] sm:$0xff]  ;;  %485 = vst.msk [vmem:[#allocation3 + $0x1b8] sm:$0xff] %vm473_vm3, %v400_v42  ;;  %1782 = vmatmul.mubr.f32.gmra.mrb[20].mxu0 %v1389_v33  ;;  %v1305_v33 = vld [vmem:[#allocation2 + $0x19a] sm:$0xff] }
  0xf9   : > { %1004 = vst.msk [vmem:[#allocation3 + $0x2e0] sm:$0xff] %vm473_vm3, %v927_v19  ;;  %2042 = vmatmul.mubr.f32.gmra.mrb[18].mxu1 %v1426_v58  ;;  %v1306_v21 = vld [vmem:[#allocation2 + $0x1a2] sm:$0xff] }
  0xfa   : > { %688 = vrot.lane.b32.xlu0 %v4220_v32, %s3538_s7  ;;  %431 = vrot.lane.b32.xlu1 %v4341_v6, %s3538_s7  ;;  %v1019_v32 = vld [vmem:[#allocation2 + $0x30] sm:$0xff]  ;;  %801 = vst.msk [vmem:[#allocation3 + $0x128] sm:$0xff] %vm142_vm0, %v769_v50  ;;  %1336 = vst.msk [vmem:[#allocation3 + $0x4a8] sm:$0xff] %vm142_vm0, %v1304_v24 }
  0xfb   : > { %v659_v0 = vpop.permute.xlu1 %658  ;;  %v1395_v13 = vld [vmem:[#allocation3 + $0x1c0] sm:$0xff]  ;;  %1051 = vst.msk [vmem:[#allocation3 + $0x18] sm:$0xff] %vm142_vm0, %v1019_v32  ;;  %1337 = vst.msk [vmem:[#allocation3 + $0x4d0] sm:$0xff] %vm142_vm0, %v1305_v33 }
  0xfc   : > { %v1186_v36 = vpop.permute.xlu0 %1185  ;;  %v1432_v4 = vld [vmem:[#allocation3 + $0x2e8] sm:$0xff]  ;;  %742 = vst.msk [vmem:[#allocation3 + $0x1e8] sm:$0xff] %vm473_vm3, %v659_v0  ;;  %1786 = vmatprep.mubr.f32.mxu0 %v1395_v13  ;;  %v5350_v32 = vld [vmem:[#allocation7_spill] sm:$0xff] }
  0xfd   : > { %1262 = vst.msk [vmem:[#allocation3 + $0x310] sm:$0xff] %vm473_vm3, %v1186_v36  ;;  %2046 = vmatprep.mubr.f32.mxu1 %v1432_v4 }
  0xfe   : > { %690 = vrot.lane.b32.xlu0 %v4230_v56, %s3538_s7  ;;  %433 = vrot.lane.b32.xlu1 %v4364_v55, %s3538_s7  ;;  %1338 = vst.msk [vmem:[#allocation3 + $0x4f8] sm:$0xff] %vm142_vm0, %v1306_v21 }
  0xff   : > { %v402_v49 = vpop.permute.xlu1 %401  ;;  %v1394_v63 = vld [vmem:[#allocation3 + $0x1b8] sm:$0xff] }
 0x100   : > { %v929_v6 = vpop.permute.xlu0 %928  ;;  %v1431_v44 = vld [vmem:[#allocation3 + $0x2e0] sm:$0xff]  ;;  %486 = vst.msk [vmem:[#allocation3 + $0x1e0] sm:$0xff] %vm473_vm3, %v402_v49  ;;  %1787 = vmatmul.mubr.f32.gmra.mrb[22].mxu0 %v1394_v63 }
 0x101   : > { %1005 = vst.msk [vmem:[#allocation3 + $0x308] sm:$0xff] %vm473_vm3, %v929_v6  ;;  %2047 = vmatmul.mubr.f32.gmra.mrb[20].mxu1 %v1431_v44  ;;  %v1090_v6 = vld [vmem:[#allocation2 + $0x81] sm:$0xff] }
 0x102   : > { %692 = vrot.lane.b32.xlu0 %v4245_v15, %s3538_s7  ;;  %435 = vrot.lane.b32.xlu1 %v4386_v20, %s3538_s7  ;;  %v1021_v15 = vld [vmem:[#allocation2 + $0x48] sm:$0xff] }
 0x103   : > { %v661_v55 = vpop.permute.xlu1 %660  ;;  %v1400_v54 = vld [vmem:[#allocation3 + $0x1e8] sm:$0xff]  ;;  %1053 = vst.msk [vmem:[#allocation3 + $0x68] sm:$0xff] %vm142_vm0, %v1021_v15 }
 0x104   : > { %v1188_v56 = vpop.permute.xlu0 %1187  ;;  %v1437_v8 = vld [vmem:[#allocation3 + $0x310] sm:$0xff]  ;;  %743 = vst.msk [vmem:[#allocation3 + $0x210] sm:$0xff] %vm473_vm3, %v661_v55  ;;  %1791 = vmatprep.mubr.f32.mxu0 %v1400_v54 }
 0x105   : > { %1263 = vst.msk [vmem:[#allocation3 + $0x338] sm:$0xff] %vm473_vm3, %v1188_v56  ;;  %2051 = vmatprep.mubr.f32.mxu1 %v1437_v8 }
 0x106   : > { %694 = vrot.lane.b32.xlu0 %v4255_v27, %s3538_s7  ;;  %437 = vrot.lane.b32.xlu1 %v4413_v51, %s3538_s7 }
 0x107   : > { %v404_v40 = vpop.permute.xlu1 %403  ;;  %v1399_v14 = vld [vmem:[#allocation3 + $0x1e0] sm:$0xff] }
 0x108   : > { %v931_v20 = vpop.permute.xlu0 %930  ;;  %v1436_v37 = vld [vmem:[#allocation3 + $0x308] sm:$0xff]  ;;  %487 = vst.msk [vmem:[#allocation3 + $0x208] sm:$0xff] %vm473_vm3, %v404_v40  ;;  %1792 = vmatmul.mubr.f32.gmra.mrb[24].mxu0 %v1399_v14 }
 0x109   : > { %1006 = vst.msk [vmem:[#allocation3 + $0x330] sm:$0xff] %vm473_vm3, %v931_v20  ;;  %2052 = vmatmul.mubr.f32.gmra.mrb[22].mxu1 %v1436_v37 }
 0x10a   : > { %696 = vrot.lane.b32.xlu0 %v4268_v47, %s3538_s7  ;;  %439 = vrot.lane.b32.xlu1 %v4434_v22, %s3538_s7  ;;  %v1023_v47 = vld [vmem:[#allocation2 + $0x60] sm:$0xff] }
 0x10b   : > { %v663_v51 = vpop.permute.xlu1 %662  ;;  %v1405_v39 = vld [vmem:[#allocation3 + $0x210] sm:$0xff]  ;;  %1055 = vst.msk [vmem:[#allocation3 + $0xb8] sm:$0xff] %vm142_vm0, %v1023_v47 }
 0x10c   : > { %v1190_v27 = vpop.permute.xlu0 %1189  ;;  %v1442_v45 = vld [vmem:[#allocation3 + $0x338] sm:$0xff]  ;;  %744 = vst.msk [vmem:[#allocation3 + $0x238] sm:$0xff] %vm473_vm3, %v663_v51  ;;  %1796 = vmatprep.mubr.f32.mxu0 %v1405_v39 }
 0x10d   : > { %1264 = vst.msk [vmem:[#allocation3 + $0x360] sm:$0xff] %vm473_vm3, %v1190_v27  ;;  %2056 = vmatprep.mubr.f32.mxu1 %v1442_v45 }
 0x10e   : > { %1147 = vrot.lane.b32.xlu0 %v4284_v29, %s3538_s7  ;;  %890 = vrot.lane.b32.xlu1 %v3996_v23, %s3538_s7  ;;  %v1085_v23 = vld [vmem:[#allocation2 + $0x49] sm:$0xff] }
 0x10f   : > { %v406_v3 = vpop.permute.xlu1 %405  ;;  %v1404_v38 = vld [vmem:[#allocation3 + $0x208] sm:$0xff] }
 0x110   : > { %v933_v22 = vpop.permute.xlu0 %932  ;;  %v1441_v10 = vld [vmem:[#allocation3 + $0x330] sm:$0xff]  ;;  %488 = vst.msk [vmem:[#allocation3 + $0x230] sm:$0xff] %vm473_vm3, %v406_v3  ;;  %1797 = vmatmul.mubr.f32.gmra.mrb[26].mxu0 %v1404_v38 }
 0x111   : > { %1007 = vst.msk [vmem:[#allocation3 + $0x358] sm:$0xff] %vm473_vm3, %v933_v22  ;;  %2057 = vmatmul.mubr.f32.gmra.mrb[24].mxu1 %v1441_v10 }
 0x112   : > { %1149 = vrot.lane.b32.xlu0 %v4298_v16, %s3538_s7  ;;  %892 = vrot.lane.b32.xlu1 %v4027_v34, %s3538_s7  ;;  %v1025_v34 = vld [vmem:[#allocation2 + $0x78] sm:$0xff] }
 0x113   : > { %v665_v11 = vpop.permute.xlu1 %664  ;;  %v1410_v18 = vld [vmem:[#allocation3 + $0x238] sm:$0xff]  ;;  %v1086_v16 = vld [vmem:[#allocation2 + $0x51] sm:$0xff]  ;;  %1057 = vst.msk [vmem:[#allocation3 + $0x108] sm:$0xff] %vm142_vm0, %v1025_v34 }
 0x114   : > { %v1192_v29 = vpop.permute.xlu0 %1191  ;;  %v1447_v61 = vld [vmem:[#allocation3 + $0x360] sm:$0xff]  ;;  %745 = vst.msk [vmem:[#allocation3 + $0x260] sm:$0xff] %vm473_vm3, %v665_v11  ;;  %1801 = vmatprep.mubr.f32.mxu0 %v1410_v18 }
 0x115   : > { %1265 = vst.msk [vmem:[#allocation3 + $0x388] sm:$0xff] %vm473_vm3, %v1192_v29  ;;  %2061 = vmatprep.mubr.f32.mxu1 %v1447_v61 }
 0x116   : > { %1151 = vrot.lane.b32.xlu0 %v1085_v23, %s3538_s7  ;;  %894 = vrot.lane.b32.xlu1 %v4035_v43, %s3538_s7  ;;  %v1087_v43 = vld [vmem:[#allocation2 + $0x61] sm:$0xff] }
 0x117   : > { %v408_v28 = vpop.permute.xlu1 %407  ;;  %v1409_v57 = vld [vmem:[#allocation3 + $0x230] sm:$0xff] }
 0x118   : > { %v935_v30 = vpop.permute.xlu0 %934  ;;  %v1446_v25 = vld [vmem:[#allocation3 + $0x358] sm:$0xff]  ;;  %489 = vst.msk [vmem:[#allocation3 + $0x258] sm:$0xff] %vm473_vm3, %v408_v28  ;;  %1802 = vmatmul.mubr.f32.gmra.mrb[28].mxu0 %v1409_v57 }
 0x119   : > { %1008 = vst.msk [vmem:[#allocation3 + $0x380] sm:$0xff] %vm473_vm3, %v935_v30  ;;  %2062 = vmatmul.mubr.f32.gmra.mrb[26].mxu1 %v1446_v25 }
 0x11a   : > { %1153 = vrot.lane.b32.xlu0 %v1086_v16, %s3538_s7  ;;  %896 = vrot.lane.b32.xlu1 %v4048_v46, %s3538_s7  ;;  %v1303_v46 = vld [vmem:[#allocation2 + $0x182] sm:$0xff] }
 0x11b   : > { %v667_v41 = vpop.permute.xlu1 %666  ;;  %v1415_v35 = vld [vmem:[#allocation3 + $0x260] sm:$0xff]  ;;  %1335 = vst.msk [vmem:[#allocation3 + $0x480] sm:$0xff] %vm142_vm0, %v1303_v46 }
 0x11c   : > { %v1194_v62 = vpop.permute.xlu0 %1193  ;;  %v1452_v12 = vld [vmem:[#allocation3 + $0x388] sm:$0xff]  ;;  %746 = vst.msk [vmem:[#allocation3 + $0x288] sm:$0xff] %vm473_vm3, %v667_v41  ;;  %1806 = vmatprep.mubr.f32.mxu0 %v1415_v35 }
 0x11d   : > { %1266 = vst.msk [vmem:[#allocation3 + $0x3b0] sm:$0xff] %vm473_vm3, %v1194_v62  ;;  %2066 = vmatprep.mubr.f32.mxu1 %v1452_v12 }
 0x11e   : > { %1155 = vrot.lane.b32.xlu0 %v1087_v43, %s3538_s7  ;;  %898 = vrot.lane.b32.xlu1 %v4062_v53, %s3538_s7  ;;  %v1089_v53 = vld [vmem:[#allocation2 + $0x79] sm:$0xff] }
 0x11f   : > { %v1414_v19 = vld [vmem:[#allocation3 + $0x258] sm:$0xff]  ;;  %v410_v58 = vpop.permute.xlu1 %409 }
 0x120   : > { %v937_v1 = vpop.permute.xlu0 %936  ;;  %v1451_v42 = vld [vmem:[#allocation3 + $0x380] sm:$0xff]  ;;  %1807 = vmatmul.mubr.f32.gmra.mrb[30].mxu0 %v1414_v19  ;;  %490 = vst.msk [vmem:[#allocation3 + $0x280] sm:$0xff] %vm473_vm3, %v410_v58 }
 0x121   : > { %1009 = vst.msk [vmem:[#allocation3 + $0x3a8] sm:$0xff] %vm473_vm3, %v937_v1  ;;  %2067 = vmatmul.mubr.f32.gmra.mrb[28].mxu1 %v1451_v42 }
 0x122   : > { %1157 = vrot.lane.b32.xlu0 %v1088_v60, %s3538_s7  ;;  %900 = vrot.lane.b32.xlu1 %v4086_v5, %s3538_s7 }
 0x123   : > { %v1420_v4 = vld [vmem:[#allocation3 + $0x288] sm:$0xff]  ;;  %v669_v13 = vpop.permute.xlu1 %668 }
 0x124   : > { %v1196_v36 = vpop.permute.xlu0 %1195  ;;  %v1457_v0 = vld [vmem:[#allocation3 + $0x3b0] sm:$0xff]  ;;  %1811 = vmatprep.mubr.f32.mxu0 %v1420_v4  ;;  %747 = vst.msk [vmem:[#allocation3 + $0x2b0] sm:$0xff] %vm473_vm3, %v669_v13 }
 0x125   : > { %1267 = vst.msk [vmem:[#allocation3 + $0x3d8] sm:$0xff] %vm473_vm3, %v1196_v36  ;;  %2071 = vmatprep.mubr.f32.mxu1 %v1457_v0 }
 0x126   : > { %1159 = vrot.lane.b32.xlu0 %v1089_v53, %s3538_s7  ;;  %902 = vrot.lane.b32.xlu1 %v5350_v32, %s3538_s7 }
 0x127   : > { %v1419_v44 = vld [vmem:[#allocation3 + $0x280] sm:$0xff] }
 0x128   : > { %v939_v49 = vpop.permute.xlu0 %938  ;;  %v1456_v63 = vld [vmem:[#allocation3 + $0x3a8] sm:$0xff]  ;;  %v412_v5 = vpop.permute.xlu1 %411  ;;  %1812 = vmatmul.mubr.f32.gmra.mrb[32].mxu0 %v1419_v44 }
 0x129   : > { %1010 = vst.msk [vmem:[#allocation3 + $0x3d0] sm:$0xff] %vm473_vm3, %v939_v49  ;;  %2072 = vmatmul.mubr.f32.gmra.mrb[30].mxu1 %v1456_v63  ;;  %491 = vst.msk [vmem:[#allocation3 + $0x2a8] sm:$0xff] %vm473_vm3, %v412_v5  ;;  %v1343_v63 = vld [vmem:[#allocation3 + $0x20] sm:$0xff] }
 0x12a   : > { %1161 = vrot.lane.b32.xlu0 %v1090_v6, %s3538_s7  ;;  %904 = vrot.lane.b32.xlu1 %v5351_v52, %s3538_s7 }
 0x12b   : > { %v1425_v54 = vld [vmem:[#allocation3 + $0x2b0] sm:$0xff] }
 0x12c   : > { %v1198_v56 = vpop.permute.xlu0 %1197  ;;  %v1462_v55 = vld [vmem:[#allocation3 + $0x3d8] sm:$0xff]  ;;  %v671_v8 = vpop.permute.xlu1 %670  ;;  %1816 = vmatprep.mubr.f32.mxu0 %v1425_v54 }
 0x12d   : > { %1268 = vst.msk [vmem:[#allocation3 + $0x400] sm:$0xff] %vm473_vm3, %v1198_v56  ;;  %2076 = vmatprep.mubr.f32.mxu1 %v1462_v55  ;;  %748 = vst.msk [vmem:[#allocation3 + $0x2d8] sm:$0xff] %vm473_vm3, %v671_v8  ;;  %v1348_v55 = vld [vmem:[#allocation3 + $0x48] sm:$0xff]  ;;  %v1353_v8 = vld [vmem:[#allocation3 + $0x70] sm:$0xff] }
 0x130   : > { %v941_v48 = vpop.permute.xlu0 %940  ;;  %v1461_v17 = vld [vmem:[#allocation3 + $0x3d0] sm:$0xff]  ;;  %v414_v15 = vpop.permute.xlu1 %413  ;;  %v1424_v20 = vld [vmem:[#allocation3 + $0x2a8] sm:$0xff] }
 0x131   : > { %1011 = vst.msk [vmem:[#allocation3 + $0x3f8] sm:$0xff] %vm473_vm3, %v941_v48  ;;  %2077 = vmatmul.mubr.f32.gmra.mrb[32].mxu1 %v1461_v17  ;;  %492 = vst.msk [vmem:[#allocation3 + $0x2d0] sm:$0xff] %vm473_vm3, %v414_v15  ;;  %1817 = vmatmul.mubr.f32.gmra.mrb[34].mxu0 %v1424_v20  ;;  %v1358_v20 = vld [vmem:[#allocation3 + $0x98] sm:$0xff] }
 0x134   : > { %v1200_v40 = vpop.permute.xlu0 %1199  ;;  %v1467_v14 = vld [vmem:[#allocation3 + $0x400] sm:$0xff]  ;;  %v673_v37 = vpop.permute.xlu1 %672  ;;  %v1430_v27 = vld [vmem:[#allocation3 + $0x2d8] sm:$0xff] }
 0x135   : > { %1269 = vst.msk [vmem:[#allocation3 + $0x428] sm:$0xff] %vm473_vm3, %v1200_v40  ;;  %2081 = vmatprep.mubr.f32.mxu1 %v1467_v14  ;;  %749 = vst.msk [vmem:[#allocation3 + $0x300] sm:$0xff] %vm473_vm3, %v673_v37  ;;  %1821 = vmatprep.mubr.f32.mxu0 %v1430_v27  ;;  %v1363_v40 = vld [vmem:[#allocation3 + $0xc0] sm:$0xff] }
 0x138   : > { %v943_v51 = vpop.permute.xlu0 %942  ;;  %v1466_v45 = vld [vmem:[#allocation3 + $0x3f8] sm:$0xff]  ;;  %v416_v39 = vpop.permute.xlu1 %415  ;;  %v1429_v59 = vld [vmem:[#allocation3 + $0x2d0] sm:$0xff] }
 0x139   : > { %1012 = vst.msk [vmem:[#allocation3 + $0x420] sm:$0xff] %vm473_vm3, %v943_v51  ;;  %2082 = vmatmul.mubr.f32.gmra.mrb[34].mxu1 %v1466_v45  ;;  %493 = vst.msk [vmem:[#allocation3 + $0x2f8] sm:$0xff] %vm473_vm3, %v416_v39  ;;  %1822 = vmatmul.mubr.f32.gmra.mrb[36].mxu0 %v1429_v59  ;;  %v1368_v45 = vld [vmem:[#allocation3 + $0xe8] sm:$0xff]  ;;  %v1373_v39 = vld [vmem:[#allocation3 + $0x110] sm:$0xff] }
 0x13c   : > { %v1202_v47 = vpop.permute.xlu0 %1201  ;;  %v1472_v22 = vld [vmem:[#allocation3 + $0x428] sm:$0xff]  ;;  %v675_v3 = vpop.permute.xlu1 %674  ;;  %v1435_v38 = vld [vmem:[#allocation3 + $0x300] sm:$0xff] }
 0x13d   : > { %1270 = vst.msk [vmem:[#allocation3 + $0x450] sm:$0xff] %vm473_vm3, %v1202_v47  ;;  %2086 = vmatprep.mubr.f32.mxu1 %v1472_v22  ;;  %750 = vst.msk [vmem:[#allocation3 + $0x328] sm:$0xff] %vm473_vm3, %v675_v3  ;;  %1826 = vmatprep.mubr.f32.mxu0 %v1435_v38  ;;  %v1378_v38 = vld [vmem:[#allocation3 + $0x138] sm:$0xff] }
 0x140   : > { %v945_v10 = vpop.permute.xlu0 %944  ;;  %v1471_v9 = vld [vmem:[#allocation3 + $0x420] sm:$0xff]  ;;  %v418_v23 = vpop.permute.xlu1 %417  ;;  %v1434_v29 = vld [vmem:[#allocation3 + $0x2f8] sm:$0xff] }
 0x141   : > { %1013 = vst.msk [vmem:[#allocation3 + $0x448] sm:$0xff] %vm473_vm3, %v945_v10  ;;  %2087 = vmatmul.mubr.f32.gmra.mrb[36].mxu1 %v1471_v9  ;;  %494 = vst.msk [vmem:[#allocation3 + $0x320] sm:$0xff] %vm473_vm3, %v418_v23  ;;  %1827 = vmatmul.mubr.f32.gmra.mrb[38].mxu0 %v1434_v29  ;;  %v1383_v10 = vld [vmem:[#allocation3 + $0x160] sm:$0xff] }
 0x144   : > { %v1204_v11 = vpop.permute.xlu0 %1203  ;;  %v1477_v61 = vld [vmem:[#allocation3 + $0x450] sm:$0xff]  ;;  %v677_v18 = vpop.permute.xlu1 %676  ;;  %v1440_v2 = vld [vmem:[#allocation3 + $0x328] sm:$0xff] }
 0x145   : > { %1271 = vst.msk [vmem:[#allocation3 + $0x478] sm:$0xff] %vm473_vm3, %v1204_v11  ;;  %2091 = vmatprep.mubr.f32.mxu1 %v1477_v61  ;;  %751 = vst.msk [vmem:[#allocation3 + $0x350] sm:$0xff] %vm473_vm3, %v677_v18  ;;  %1831 = vmatprep.mubr.f32.mxu0 %v1440_v2  ;;  %v1388_v61 = vld [vmem:[#allocation3 + $0x188] sm:$0xff]  ;;  %v1393_v18 = vld [vmem:[#allocation3 + $0x1b0] sm:$0xff] }
 0x148   : > { %v947_v7 = vpop.permute.xlu0 %946  ;;  %v1476_v34 = vld [vmem:[#allocation3 + $0x448] sm:$0xff]  ;;  %v420_v16 = vpop.permute.xlu1 %419  ;;  %v1439_v30 = vld [vmem:[#allocation3 + $0x320] sm:$0xff] }
 0x149   : > { %1014 = vst.msk [vmem:[#allocation3 + $0x470] sm:$0xff] %vm473_vm3, %v947_v7  ;;  %2092 = vmatmul.mubr.f32.gmra.mrb[38].mxu1 %v1476_v34  ;;  %495 = vst.msk [vmem:[#allocation3 + $0x348] sm:$0xff] %vm473_vm3, %v420_v16  ;;  %1832 = vmatmul.mubr.f32.gmra.mrb[40].mxu0 %v1439_v30  ;;  %v1398_v30 = vld [vmem:[#allocation3 + $0x1d8] sm:$0xff] }
 0x14c   : > { %v1206_v28 = vpop.permute.xlu0 %1205  ;;  %v1482_v57 = vld [vmem:[#allocation3 + $0x478] sm:$0xff]  ;;  %v679_v25 = vpop.permute.xlu1 %678  ;;  %v1445_v31 = vld [vmem:[#allocation3 + $0x350] sm:$0xff] }
 0x14d   : > { %1272 = vst.msk [vmem:[#allocation3 + $0x4a0] sm:$0xff] %vm473_vm3, %v1206_v28  ;;  %2096 = vmatprep.mubr.f32.mxu1 %v1482_v57  ;;  %752 = vst.msk [vmem:[#allocation3 + $0x378] sm:$0xff] %vm473_vm3, %v679_v25  ;;  %1836 = vmatprep.mubr.f32.mxu0 %v1445_v31  ;;  %v1403_v28 = vld [vmem:[#allocation3 + $0x200] sm:$0xff] }
 0x150   : > { %v949_v43 = vpop.permute.xlu0 %948  ;;  %v1481_v62 = vld [vmem:[#allocation3 + $0x470] sm:$0xff]  ;;  %v422_v41 = vpop.permute.xlu1 %421  ;;  %v1444_v12 = vld [vmem:[#allocation3 + $0x348] sm:$0xff] }
 0x151   : > { %1015 = vst.msk [vmem:[#allocation3 + $0x498] sm:$0xff] %vm473_vm3, %v949_v43  ;;  %2097 = vmatmul.mubr.f32.gmra.mrb[40].mxu1 %v1481_v62  ;;  %496 = vst.msk [vmem:[#allocation3 + $0x370] sm:$0xff] %vm473_vm3, %v422_v41  ;;  %1837 = vmatmul.mubr.f32.gmra.mrb[42].mxu0 %v1444_v12  ;;  %v1408_v62 = vld [vmem:[#allocation3 + $0x228] sm:$0xff]  ;;  %v1413_v41 = vld [vmem:[#allocation3 + $0x250] sm:$0xff] }
 0x154   : > { %v1208_v35 = vpop.permute.xlu0 %1207  ;;  %v1487_v26 = vld [vmem:[#allocation3 + $0x4a0] sm:$0xff]  ;;  %v681_v50 = vpop.permute.xlu1 %680  ;;  %v1450_v46 = vld [vmem:[#allocation3 + $0x378] sm:$0xff] }
 0x155   : > { %1273 = vst.msk [vmem:[#allocation3 + $0x4c8] sm:$0xff] %vm473_vm3, %v1208_v35  ;;  %2101 = vmatprep.mubr.f32.mxu1 %v1487_v26  ;;  %753 = vst.msk [vmem:[#allocation3 + $0x3a0] sm:$0xff] %vm473_vm3, %v681_v50  ;;  %1841 = vmatprep.mubr.f32.mxu0 %v1450_v46 }
 0x158   : > { %v951_v24 = vpop.permute.xlu0 %950  ;;  %v1486_v60 = vld [vmem:[#allocation3 + $0x498] sm:$0xff]  ;;  %v424_v1 = vpop.permute.xlu1 %423  ;;  %v1449_v19 = vld [vmem:[#allocation3 + $0x370] sm:$0xff] }
 0x159   : > { %1016 = vst.msk [vmem:[#allocation3 + $0x4c0] sm:$0xff] %vm473_vm3, %v951_v24  ;;  %2102 = vmatmul.mubr.f32.gmra.mrb[42].mxu1 %v1486_v60  ;;  %497 = vst.msk [vmem:[#allocation3 + $0x398] sm:$0xff] %vm473_vm3, %v424_v1  ;;  %1842 = vmatmul.mubr.f32.gmra.mrb[44].mxu0 %v1449_v19  ;;  %v1418_v60 = vld [vmem:[#allocation3 + $0x278] sm:$0xff]  ;;  %v1423_v1 = vld [vmem:[#allocation3 + $0x2a0] sm:$0xff] }
 0x15c   : > { %v1210_v42 = vpop.permute.xlu0 %1209  ;;  %v1492_v33 = vld [vmem:[#allocation3 + $0x4c8] sm:$0xff]  ;;  %v683_v58 = vpop.permute.xlu1 %682  ;;  %v1455_v21 = vld [vmem:[#allocation3 + $0x3a0] sm:$0xff] }
 0x15d   : > { %1274 = vst.msk [vmem:[#allocation3 + $0x4f0] sm:$0xff] %vm473_vm3, %v1210_v42  ;;  %2106 = vmatprep.mubr.f32.mxu1 %v1492_v33  ;;  %754 = vst.msk [vmem:[#allocation3 + $0x3c8] sm:$0xff] %vm473_vm3, %v683_v58  ;;  %1846 = vmatprep.mubr.f32.mxu0 %v1455_v21  ;;  %v1428_v21 = vld [vmem:[#allocation3 + $0x2c8] sm:$0xff] }
 0x160   : > { %v953_v53 = vpop.permute.xlu0 %952  ;;  %v1491_v36 = vld [vmem:[#allocation3 + $0x4c0] sm:$0xff]  ;;  %v426_v0 = vpop.permute.xlu1 %425  ;;  %v1454_v4 = vld [vmem:[#allocation3 + $0x398] sm:$0xff] }
 0x161   : > { %1017 = vst.msk [vmem:[#allocation3 + $0x4e8] sm:$0xff] %vm473_vm3, %v953_v53  ;;  %2107 = vmatmul.mubr.f32.gmra.mrb[44].mxu1 %v1491_v36  ;;  %498 = vst.msk [vmem:[#allocation3 + $0x3c0] sm:$0xff] %vm473_vm3, %v426_v0  ;;  %1847 = vmatmul.mubr.f32.gmra.mrb[46].mxu0 %v1454_v4  ;;  %v1433_v53 = vld [vmem:[#allocation3 + $0x2f0] sm:$0xff] }
 0x164   : > { %v685_v13 = vpop.permute.xlu0 %684  ;;  %v1497_v32 = vld [vmem:[#allocation3 + $0x4f0] sm:$0xff]  ;;  %v428_v6 = vpop.permute.xlu1 %427  ;;  %v1460_v49 = vld [vmem:[#allocation3 + $0x3c8] sm:$0xff] }
 0x165   : > { %755 = vst.msk [vmem:[#allocation3 + $0x3f0] sm:$0xff] %vm473_vm3, %v685_v13  ;;  %2111 = vmatprep.mubr.f32.mxu1 %v1497_v32  ;;  %499 = vst.msk [vmem:[#allocation3 + $0x3e8] sm:$0xff] %vm473_vm3, %v428_v6  ;;  %1851 = vmatprep.mubr.f32.mxu0 %v1460_v49  ;;  %v1438_v49 = vld [vmem:[#allocation3 + $0x318] sm:$0xff] }
 0x168   : > { %v687_v5 = vpop.permute.xlu0 %686  ;;  %v1496_v44 = vld [vmem:[#allocation3 + $0x4e8] sm:$0xff]  ;;  %v430_v52 = vpop.permute.xlu1 %429  ;;  %v1459_v56 = vld [vmem:[#allocation3 + $0x3c0] sm:$0xff] }
 0x169   : > { %756 = vst.msk [vmem:[#allocation3 + $0x418] sm:$0xff] %vm473_vm3, %v687_v5  ;;  %2112 = vmatmul.mubr.f32.gmra.mrb[46].mxu1 %v1496_v44  ;;  %500 = vst.msk [vmem:[#allocation3 + $0x410] sm:$0xff] %vm473_vm3, %v430_v52  ;;  %1852 = vmatmul.mubr.f32.gmra.mrb[48].mxu0 %v1459_v56 }
 0x16a   : > { %3198 = vmatprep.mubr.msk.f32.mxu1 %vm142_vm0, %v1343_v63  ;;  %v1443_v63 = vld [vmem:[#allocation3 + $0x340] sm:$0xff] }
 0x16c   : > { %v689_v54 = vpop.permute.xlu0 %688  ;;  %v1465_v48 = vld [vmem:[#allocation3 + $0x3f0] sm:$0xff]  ;;  %v432_v17 = vpop.permute.xlu1 %431  ;;  %v1464_v15 = vld [vmem:[#allocation3 + $0x3e8] sm:$0xff] }
 0x16d   : > { %757 = vst.msk [vmem:[#allocation3 + $0x440] sm:$0xff] %vm473_vm3, %v689_v54  ;;  %3199 = vmatmul.mubr.msk.f32.vlgmr.msra.gmra.mrb[48].mxu1 %vm142_vm0, %v1348_v55  ;;  %1856 = vmatprep.mubr.f32.mxu0 %v1465_v48  ;;  %501 = vst.msk [vmem:[#allocation3 + $0x438] sm:$0xff] %vm473_vm3, %v432_v17  ;;  %v1448_v55 = vld [vmem:[#allocation3 + $0x368] sm:$0xff] }
 0x16e   : > { %1857 = vmatmul.mubr.f32.gmra.mrb[50].mxu0 %v1464_v15  ;;  %3201 = vmatprep.mubr.msk.f32.mxu1 %vm142_vm0, %v1353_v8  ;;  %v1453_v8 = vld [vmem:[#allocation3 + $0x390] sm:$0xff] }
 0x170   : > { %v691_v14 = vpop.permute.xlu0 %690  ;;  %v1470_v37 = vld [vmem:[#allocation3 + $0x418] sm:$0xff]  ;;  %v434_v27 = vpop.permute.xlu1 %433  ;;  %v1469_v51 = vld [vmem:[#allocation3 + $0x410] sm:$0xff] }
 0x171   : > { %758 = vst.msk [vmem:[#allocation3 + $0x468] sm:$0xff] %vm473_vm3, %v691_v14  ;;  %3202 = vmatmul.mubr.msk.f32.gmra.mrb[50].mxu1 %vm142_vm0, %v1358_v20  ;;  %1861 = vmatprep.mubr.f32.mxu0 %v1470_v37  ;;  %502 = vst.msk [vmem:[#allocation3 + $0x460] sm:$0xff] %vm473_vm3, %v434_v27  ;;  %v1458_v14 = vld [vmem:[#allocation3 + $0x3b8] sm:$0xff]  ;;  %v1463_v37 = vld [vmem:[#allocation3 + $0x3e0] sm:$0xff] }
 0x172   : > { %1862 = vmatmul.mubr.f32.gmra.mrb[52].mxu0 %v1469_v51  ;;  %3204 = vmatprep.mubr.msk.f32.mxu1 %vm142_vm0, %v1363_v40 }
 0x174   : > { %v693_v59 = vpop.permute.xlu0 %692  ;;  %v1475_v47 = vld [vmem:[#allocation3 + $0x440] sm:$0xff]  ;;  %v436_v22 = vpop.permute.xlu1 %435  ;;  %v1474_v3 = vld [vmem:[#allocation3 + $0x438] sm:$0xff] }
 0x175   : > { %759 = vst.msk [vmem:[#allocation3 + $0x490] sm:$0xff] %vm473_vm3, %v693_v59  ;;  %3205 = vmatmul.mubr.msk.f32.gmra.mrb[52].mxu1 %vm142_vm0, %v1368_v45  ;;  %1866 = vmatprep.mubr.f32.mxu0 %v1475_v47  ;;  %503 = vst.msk [vmem:[#allocation3 + $0x488] sm:$0xff] %vm473_vm3, %v436_v22  ;;  %v1468_v59 = vld [vmem:[#allocation3 + $0x408] sm:$0xff]  ;;  %v1473_v47 = vld [vmem:[#allocation3 + $0x430] sm:$0xff] }
 0x176   : > { %1867 = vmatmul.mubr.f32.gmra.mrb[54].mxu0 %v1474_v3  ;;  %3207 = vmatprep.mubr.msk.f32.mxu1 %vm142_vm0, %v1373_v39 }
 0x178   : > { %v695_v9 = vpop.permute.xlu0 %694  ;;  %v1480_v23 = vld [vmem:[#allocation3 + $0x468] sm:$0xff]  ;;  %v438_v29 = vpop.permute.xlu1 %437  ;;  %v1479_v11 = vld [vmem:[#allocation3 + $0x460] sm:$0xff] }
 0x179   : > { %760 = vst.msk [vmem:[#allocation3 + $0x4b8] sm:$0xff] %vm473_vm3, %v695_v9  ;;  %3208 = vmatmul.mubr.msk.f32.gmra.mrb[54].mxu1 %vm142_vm0, %v1378_v38  ;;  %1871 = vmatprep.mubr.f32.mxu0 %v1480_v23  ;;  %504 = vst.msk [vmem:[#allocation3 + $0x4b0] sm:$0xff] %vm473_vm3, %v438_v29  ;;  %v1478_v29 = vld [vmem:[#allocation3 + $0x458] sm:$0xff] }
 0x17a   : > { %1872 = vmatmul.mubr.f32.gmra.mrb[56].mxu0 %v1479_v11  ;;  %3210 = vmatprep.mubr.msk.f32.mxu1 %vm142_vm0, %v1383_v10  ;;  %v1483_v11 = vld [vmem:[#allocation3 + $0x480] sm:$0xff] }
 0x17c   : > { %v697_v2 = vpop.permute.xlu0 %696  ;;  %v1485_v7 = vld [vmem:[#allocation3 + $0x490] sm:$0xff]  ;;  %v440_v34 = vpop.permute.xlu1 %439  ;;  %v1484_v16 = vld [vmem:[#allocation3 + $0x488] sm:$0xff] }
 0x17d   : > { %761 = vst.msk [vmem:[#allocation3 + $0x4e0] sm:$0xff] %vm473_vm3, %v697_v2  ;;  %3211 = vmatmul.mubr.msk.f32.gmra.mrb[56].mxu1 %vm142_vm0, %v1388_v61  ;;  %1876 = vmatprep.mubr.f32.mxu0 %v1485_v7  ;;  %505 = vst.msk [vmem:[#allocation3 + $0x4d8] sm:$0xff] %vm473_vm3, %v440_v34  ;;  %v1488_v2 = vld [vmem:[#allocation3 + $0x4a8] sm:$0xff]  ;;  %v1493_v7 = vld [vmem:[#allocation3 + $0x4d0] sm:$0xff] }
 0x17e   : > { %1877 = vmatmul.mubr.f32.gmra.mrb[58].mxu0 %v1484_v16  ;;  %3213 = vmatprep.mubr.msk.f32.mxu1 %vm142_vm0, %v1393_v18 }
 0x180   : > { %v1148_v57 = vpop.permute.xlu0 %1147  ;;  %v1490_v25 = vld [vmem:[#allocation3 + $0x4b8] sm:$0xff]  ;;  %v891_v31 = vpop.permute.xlu1 %890  ;;  %v1489_v43 = vld [vmem:[#allocation3 + $0x4b0] sm:$0xff] }
 0x181   : > { %1243 = vst.msk [vmem:[#allocation3 + $0x18] sm:$0xff] %vm473_vm3, %v1148_v57  ;;  %3214 = vmatmul.mubr.msk.f32.gmra.mrb[58].mxu1 %vm142_vm0, %v1398_v30  ;;  %1881 = vmatprep.mubr.f32.mxu0 %v1490_v25  ;;  %986 = vst.msk [vmem:[#allocation3 + $0x10] sm:$0xff] %vm473_vm3, %v891_v31  ;;  %v1498_v57 = vld [vmem:[#allocation3 + $0x4f8] sm:$0xff] }
 0x182   : > { %1882 = vmatmul.mubr.f32.gmra.mrb[60].mxu0 %v1489_v43  ;;  %3216 = vmatprep.mubr.msk.f32.mxu1 %vm142_vm0, %v1403_v28 }
 0x184   : > { %v4709_v12 = vpop.f32.mrb[0].mxu1  ;;  %v1150_v35 = vpop.permute.xlu0 %1149  ;;  %v1495_v26 = vld [vmem:[#allocation3 + $0x4e0] sm:$0xff]  ;;  %v1494_v24 = vld [vmem:[#allocation3 + $0x4d8] sm:$0xff] }
 0x185   : > { %1244 = vst.msk [vmem:[#allocation3 + $0x40] sm:$0xff] %vm473_vm3, %v1150_v35  ;;  %v2000_v50 = vpop.f32.mrb[1].mxu1  ;;  %3217 = vmatmul.mubr.msk.f32.gmra.mrb[60].mxu1 %vm142_vm0, %v1408_v62  ;;  %v893_v46 = vpop.permute.xlu1 %892  ;;  %1886 = vmatprep.mubr.f32.mxu0 %v1495_v26 }
 0x186   : > { %987 = vst.msk [vmem:[#allocation3 + $0x38] sm:$0xff] %vm473_vm3, %v893_v46  ;;  %1887 = vmatmul.mubr.f32.gmra.mrb[62].mxu0 %v1494_v24  ;;  %3219 = vmatprep.mubr.msk.f32.mxu1 %vm142_vm0, %v1413_v41 }
 0x188   : > { %v1152_v19 = vpop.permute.xlu0 %1151  ;;  %v1342_v42 = vld [vmem:[#allocation3 + $0x18] sm:$0xff]  ;;  %v1341_v58 = vld [vmem:[#allocation3 + $0x10] sm:$0xff] }
 0x189   : > { %1245 = vst.msk [vmem:[#allocation3 + $0x68] sm:$0xff] %vm473_vm3, %v1152_v19  ;;  %3220 = vmatmul.mubr.msk.f32.gmra.mrb[62].mxu1 %vm142_vm0, %v1418_v60  ;;  %v895_v33 = vpop.permute.xlu1 %894  ;;  %1956 = vmatprep.mubr.f32.mxu0 %v1342_v42 }
 0x18a   : > { %988 = vst.msk [vmem:[#allocation3 + $0x60] sm:$0xff] %vm473_vm3, %v895_v33  ;;  %1957 = vmatmul.mubr.f32.vlgmr.msra.gmra.mrb[0].mxu0 %v1341_v58  ;;  %3222 = vmatprep.mubr.msk.f32.mxu1 %vm142_vm0, %v1423_v1 }
 0x18c   : > { %v4719_v36 = vpop.f32.mrb[2].mxu1  ;;  %v1154_v0 = vpop.permute.xlu0 %1153  ;;  %v1347_v4 = vld [vmem:[#allocation3 + $0x40] sm:$0xff] }
 0x18d   : > { %1246 = vst.msk [vmem:[#allocation3 + $0x90] sm:$0xff] %vm473_vm3, %v1154_v0  ;;  %v2005_v13 = vpop.f32.mrb[3].mxu1  ;;  %3223 = vmatmul.mubr.msk.f32.gmra.mrb[64].mxu1 %vm142_vm0, %v1428_v21  ;;  %v897_v32 = vpop.permute.xlu1 %896  ;;  %1961 = vmatprep.mubr.f32.mxu0 %v1347_v4  ;;  %v1346_v6 = vld [vmem:[#allocation3 + $0x38] sm:$0xff] }
 0x18e   : > { %989 = vst.msk [vmem:[#allocation3 + $0x88] sm:$0xff] %vm473_vm3, %v897_v32  ;;  %1962 = vmatmul.mubr.f32.gmra.mrb[2].mxu0 %v1346_v6  ;;  %3225 = vmatprep.mubr.msk.f32.mxu1 %vm142_vm0, %v1433_v53 }
 0x190   : > { %v1156_v5 = vpop.permute.xlu0 %1155  ;;  %v1352_v44 = vld [vmem:[#allocation3 + $0x68] sm:$0xff] }
 0x191   : > { %1247 = vst.msk [vmem:[#allocation3 + $0xb8] sm:$0xff] %vm473_vm3, %v1156_v5  ;;  %3226 = vmatmul.mubr.msk.f32.gmra.mrb[66].mxu1 %vm142_vm0, %v1438_v49  ;;  %v899_v52 = vpop.permute.xlu1 %898  ;;  %1966 = vmatprep.mubr.f32.mxu0 %v1352_v44  ;;  %v1351_v56 = vld [vmem:[#allocation3 + $0x60] sm:$0xff] }
 0x192   : > { %990 = vst.msk [vmem:[#allocation3 + $0xb0] sm:$0xff] %vm473_vm3, %v899_v52  ;;  %1967 = vmatmul.mubr.f32.gmra.mrb[4].mxu0 %v1351_v56  ;;  %3228 = vmatprep.mubr.msk.f32.mxu1 %vm142_vm0, %v1443_v63 }
 0x194   : > { %v4729_v54 = vpop.f32.mrb[4].mxu1  ;;  %v1158_v48 = vpop.permute.xlu0 %1157  ;;  %v1357_v17 = vld [vmem:[#allocation3 + $0x90] sm:$0xff] }
 0x195   : > { %1248 = vst.msk [vmem:[#allocation3 + $0xe0] sm:$0xff] %vm473_vm3, %v1158_v48  ;;  %v2010_v15 = vpop.f32.mrb[5].mxu1  ;;  %3229 = vmatmul.mubr.msk.f32.gmra.mrb[68].mxu1 %vm142_vm0, %v1448_v55  ;;  %v901_v20 = vpop.permute.xlu1 %900  ;;  %1971 = vmatprep.mubr.f32.mxu0 %v1357_v17  ;;  %v1356_v40 = vld [vmem:[#allocation3 + $0x88] sm:$0xff] }
 0x196   : > { %991 = vst.msk [vmem:[#allocation3 + $0xd8] sm:$0xff] %vm473_vm3, %v901_v20  ;;  %1972 = vmatmul.mubr.f32.gmra.mrb[6].mxu0 %v1356_v40  ;;  %3231 = vmatprep.mubr.msk.f32.mxu1 %vm142_vm0, %v1453_v8 }
 0x198   : > { %v1160_v27 = vpop.permute.xlu0 %1159  ;;  %v1362_v51 = vld [vmem:[#allocation3 + $0xb8] sm:$0xff] }
 0x199   : > { %1249 = vst.msk [vmem:[#allocation3 + $0x108] sm:$0xff] %vm473_vm3, %v1160_v27  ;;  %3232 = vmatmul.mubr.msk.f32.gmra.mrb[70].mxu1 %vm142_vm0, %v1458_v14  ;;  %v903_v45 = vpop.permute.xlu1 %902  ;;  %1976 = vmatprep.mubr.f32.mxu0 %v1362_v51  ;;  %v1361_v39 = vld [vmem:[#allocation3 + $0xb0] sm:$0xff] }
 0x19a   : > { %992 = vst.msk [vmem:[#allocation3 + $0x100] sm:$0xff] %vm473_vm3, %v903_v45  ;;  %1977 = vmatmul.mubr.f32.gmra.mrb[8].mxu0 %v1361_v39  ;;  %3234 = vmatprep.mubr.msk.f32.mxu1 %vm142_vm0, %v1463_v37 }
 0x19c   : > { %v2013_v22 = vpop.f32.mrb[6].mxu1  ;;  %v1162_v3 = vpop.permute.xlu0 %1161  ;;  %v1367_v38 = vld [vmem:[#allocation3 + $0xe0] sm:$0xff] }
 0x19d   : > { %1250 = vst.msk [vmem:[#allocation3 + $0x130] sm:$0xff] %vm473_vm3, %v1162_v3  ;;  %v2015_v10 = vpop.f32.mrb[7].mxu1  ;;  %3235 = vmatmul.mubr.msk.f32.gmra.mrb[72].mxu1 %vm142_vm0, %v1468_v59  ;;  %v905_v9 = vpop.permute.xlu1 %904  ;;  %1981 = vmatprep.mubr.f32.mxu0 %v1367_v38  ;;  %v1366_v23 = vld [vmem:[#allocation3 + $0xd8] sm:$0xff] }
 0x19e   : > { %993 = vst.msk [vmem:[#allocation3 + $0x128] sm:$0xff] %vm473_vm3, %v905_v9  ;;  %1982 = vmatmul.mubr.f32.gmra.mrb[10].mxu0 %v1366_v23  ;;  %3237 = vmatprep.mubr.msk.f32.mxu1 %vm142_vm0, %v1473_v47 }
 0x1a0   : > { %v1372_v61 = vld [vmem:[#allocation3 + $0x108] sm:$0xff] }
 0x1a1   : > { %1986 = vmatprep.mubr.f32.mxu0 %v1372_v61  ;;  %3238 = vmatmul.mubr.msk.f32.gmra.mrb[74].mxu1 %vm142_vm0, %v1478_v29  ;;  %v1371_v18 = vld [vmem:[#allocation3 + $0x100] sm:$0xff] }
 0x1a2   : > { %1987 = vmatmul.mubr.f32.gmra.mrb[12].mxu0 %v1371_v18  ;;  %3240 = vmatprep.mubr.msk.f32.mxu1 %vm142_vm0, %v1483_v11 }
 0x1a4   : > { %v2018_v34 = vpop.f32.mrb[8].mxu1  ;;  %v1377_v16 = vld [vmem:[#allocation3 + $0x130] sm:$0xff] }
 0x1a5   : > { %1991 = vmatprep.mubr.f32.mxu0 %v1377_v16  ;;  %v2020_v30 = vpop.f32.mrb[9].mxu1  ;;  %3241 = vmatmul.mubr.msk.f32.gmra.mrb[76].mxu1 %vm142_vm0, %v1488_v2  ;;  %v1376_v28 = vld [vmem:[#allocation3 + $0x128] sm:$0xff] }
 0x1a6   : > { %1992 = vmatmul.mubr.f32.gmra.mrb[14].mxu0 %v1376_v28  ;;  %3243 = vmatprep.mubr.msk.f32.mxu1 %vm142_vm0, %v1493_v7 }
 0x1a9   : > { %3244 = vmatmul.mubr.msk.f32.gmra.mrb[78].mxu1 %vm142_vm0, %v1498_v57 }
 0x1ac   : > { %v2023_v25 = vpop.f32.mrb[10].mxu1 }
 0x1ad   : > { %v2025_v31 = vpop.f32.mrb[11].mxu1 }
 0x1b4   : > { %v2028_v43 = vpop.f32.mrb[12].mxu1 }
 0x1b5   : > { %v2030_v62 = vpop.f32.mrb[13].mxu1 }
 0x1bb   : > { %v1773_v41 = vpop.f32.mrb[16].mxu0 }
 0x1bc   : > { %v2033_v35 = vpop.f32.mrb[14].mxu1  ;;  %v4749_v26 = vadd.f32 %v4709_v12, %v1773_v41  ;;  %v1775_v50 = vpop.f32.mrb[17].mxu0 }
 0x1bd   : > { %v2035_v46 = vpop.f32.mrb[15].mxu1 }
 0x1c3   : > { %v1778_v24 = vpop.f32.mrb[18].mxu0 }
 0x1c4   : > { %v2038_v60 = vpop.f32.mrb[16].mxu1  ;;  %v4752_v1 = vadd.f32 %v4719_v36, %v1778_v24  ;;  %v1780_v19 = vpop.f32.mrb[19].mxu0 }
 0x1c5   : > { %v2040_v42 = vpop.f32.mrb[17].mxu1 }
 0x1cb   : > { %v1783_v33 = vpop.f32.mrb[20].mxu0 }
 0x1cc   : > { %v2043_v58 = vpop.f32.mrb[18].mxu1  ;;  %v4755_v21 = vadd.f32 %v4729_v54, %v1783_v33  ;;  %v1785_v53 = vpop.f32.mrb[21].mxu0 }
 0x1cd   : > { %v2045_v0 = vpop.f32.mrb[19].mxu1 }
 0x1d3   : > { %v1788_v4 = vpop.f32.mrb[22].mxu0 }
 0x1d4   : > { %v2048_v13 = vpop.f32.mrb[20].mxu1  ;;  %v4757_v12 = vadd.f32 %v2013_v22, %v1788_v4  ;;  %v1790_v32 = vpop.f32.mrb[23].mxu0 }
 0x1d5   : > { %v2050_v6 = vpop.f32.mrb[21].mxu1 }
 0x1db   : > { %v1793_v49 = vpop.f32.mrb[24].mxu0 }
 0x1dc   : > { %v2053_v63 = vpop.f32.mrb[22].mxu1  ;;  %v4759_v5 = vadd.f32 %v2018_v34, %v1793_v49  ;;  %v1795_v36 = vpop.f32.mrb[25].mxu0 }
 0x1dd   : > { %v2055_v44 = vpop.f32.mrb[23].mxu1 }
 0x1e3   : > { %v1798_v52 = vpop.f32.mrb[26].mxu0 }
 0x1e4   : > { %v2058_v56 = vpop.f32.mrb[24].mxu1  ;;  %v4761_v55 = vadd.f32 %v2023_v25, %v1798_v52  ;;  %v1800_v8 = vpop.f32.mrb[27].mxu0 }
 0x1e5   : > { %v2060_v54 = vpop.f32.mrb[25].mxu1 }
 0x1eb   : > { %v1803_v48 = vpop.f32.mrb[28].mxu0 }
 0x1ec   : > { %v2063_v17 = vpop.f32.mrb[26].mxu1  ;;  %v4763_v15 = vadd.f32 %v2028_v43, %v1803_v48  ;;  %v1805_v20 = vpop.f32.mrb[29].mxu0 }
 0x1ed   : > { %v2065_v40 = vpop.f32.mrb[27].mxu1 }
 0x1f3   : > { %v1808_v14 = vpop.f32.mrb[30].mxu0 }
 0x1f4   : > { %v2068_v37 = vpop.f32.mrb[28].mxu1  ;;  %v4765_v27 = vadd.f32 %v2033_v35, %v1808_v14  ;;  %v1810_v51 = vpop.f32.mrb[31].mxu0 }
 0x1f5   : > { %v2070_v45 = vpop.f32.mrb[29].mxu1 }
 0x1fb   : > { %v1813_v59 = vpop.f32.mrb[32].mxu0 }
 0x1fc   : > { %v2073_v39 = vpop.f32.mrb[30].mxu1  ;;  %v4767_v22 = vadd.f32 %v2038_v60, %v1813_v59  ;;  %v1815_v3 = vpop.f32.mrb[33].mxu0 }
 0x1fd   : > { %v2075_v47 = vpop.f32.mrb[31].mxu1 }
 0x204   : > { %v2078_v38 = vpop.f32.mrb[32].mxu1  ;;  %v1818_v10 = vpop.f32.mrb[34].mxu0 }
 0x205   : > { %v2080_v9 = vpop.f32.mrb[33].mxu1  ;;  %v4769_v23 = vadd.f32 %v2043_v58, %v1818_v10  ;;  %v1820_v29 = vpop.f32.mrb[35].mxu0 }
 0x20c   : > { %v2083_v11 = vpop.f32.mrb[34].mxu1  ;;  %v1823_v61 = vpop.f32.mrb[36].mxu0 }
 0x20d   : > { %v2085_v18 = vpop.f32.mrb[35].mxu1  ;;  %v4771_v2 = vadd.f32 %v2048_v13, %v1823_v61  ;;  %v1825_v7 = vpop.f32.mrb[37].mxu0 }
 0x214   : > { %v2088_v34 = vpop.f32.mrb[36].mxu1  ;;  %v1828_v16 = vpop.f32.mrb[38].mxu0 }
 0x215   : > { %v2090_v30 = vpop.f32.mrb[37].mxu1  ;;  %v4773_v28 = vadd.f32 %v2053_v63, %v1828_v16  ;;  %v1830_v57 = vpop.f32.mrb[39].mxu0 }
 0x21c   : > { %v2093_v25 = vpop.f32.mrb[38].mxu1  ;;  %v1833_v31 = vpop.f32.mrb[40].mxu0 }
 0x21d   : > { %v2095_v43 = vpop.f32.mrb[39].mxu1  ;;  %v4775_v62 = vadd.f32 %v2058_v56, %v1833_v31  ;;  %v1835_v41 = vpop.f32.mrb[41].mxu0 }
 0x224   : > { %v2098_v35 = vpop.f32.mrb[40].mxu1  ;;  %v1838_v50 = vpop.f32.mrb[42].mxu0 }
 0x225   : > { %v2100_v46 = vpop.f32.mrb[41].mxu1  ;;  %v4777_v24 = vadd.f32 %v2063_v17, %v1838_v50  ;;  %v1840_v60 = vpop.f32.mrb[43].mxu0 }
 0x22c   : > { %v2103_v19 = vpop.f32.mrb[42].mxu1  ;;  %v1843_v42 = vpop.f32.mrb[44].mxu0 }
 0x22d   : > { %v2105_v33 = vpop.f32.mrb[43].mxu1  ;;  %v4779_v58 = vadd.f32 %v2068_v37, %v1843_v42  ;;  %v1845_v53 = vpop.f32.mrb[45].mxu0 }
 0x234   : > { %v2108_v0 = vpop.f32.mrb[44].mxu1  ;;  %v1848_v4 = vpop.f32.mrb[46].mxu0 }
 0x235   : > { %v2110_v13 = vpop.f32.mrb[45].mxu1  ;;  %v4781_v32 = vadd.f32 %v2073_v39, %v1848_v4  ;;  %v1850_v6 = vpop.f32.mrb[47].mxu0 }
 0x23c   : > { %v2113_v49 = vpop.f32.mrb[46].mxu1  ;;  %v1853_v63 = vpop.f32.mrb[48].mxu0 }
 0x23d   : > { %v2115_v36 = vpop.f32.mrb[47].mxu1  ;;  %v4783_v44 = vadd.f32 %v2078_v38, %v1853_v63  ;;  %v1855_v52 = vpop.f32.mrb[49].mxu0 }
 0x240   : > { %v3200_v56 = vpop.f32.mrb[48].mxu1 }
 0x241   : > { %v1858_v8 = vpop.f32.mrb[50].mxu0  ;;  %v2183_v54 = vpop.f32.mrb[49].mxu1 }
 0x242   : > { %v4785_v48 = vadd.f32 %v2083_v11, %v1858_v8  ;;  %v1860_v17 = vpop.f32.mrb[51].mxu0 }
 0x244   : > { %v4787_v20 = vpop.f32.mrb[50].mxu1 }
 0x245   : > { %v1863_v40 = vpop.f32.mrb[52].mxu0  ;;  %v2193_v14 = vpop.f32.mrb[51].mxu1 }
 0x246   : > { %v4789_v37 = vadd.f32 %v2088_v34, %v1863_v40  ;;  %v1865_v51 = vpop.f32.mrb[53].mxu0 }
 0x248   : > { %v4791_v45 = vpop.f32.mrb[52].mxu1 }
 0x249   : > { %v1868_v39 = vpop.f32.mrb[54].mxu0  ;;  %v4793_v59 = vpop.f32.mrb[53].mxu1 }
 0x24a   : > { %v4795_v47 = vadd.f32 %v2093_v25, %v1868_v39  ;;  %v1870_v3 = vpop.f32.mrb[55].mxu0 }
 0x24c   : > { %v4797_v38 = vpop.f32.mrb[54].mxu1 }
 0x24d   : > { %v1873_v10 = vpop.f32.mrb[56].mxu0  ;;  %v4799_v9 = vpop.f32.mrb[55].mxu1 }
 0x24e   : > { %v4801_v29 = vadd.f32 %v2098_v35, %v1873_v10  ;;  %v1875_v11 = vpop.f32.mrb[57].mxu0 }
 0x250   : > { %v3212_v61 = vpop.f32.mrb[56].mxu1 }
 0x251   : > { %v2229_v18 = vadd.f32 %v3212_v61, %v4752_v1  ;;  %v1878_v7 = vpop.f32.mrb[58].mxu0  ;;  %v2223_v34 = vpop.f32.mrb[57].mxu1 }
 0x252   : > { %v4804_v16 = vadd.f32 %v2103_v19, %v1878_v7  ;;  %v2224_v30 = vadd.f32 %v2223_v34, %v4749_v26  ;;  %v1880_v57 = vpop.f32.mrb[59].mxu0 }
 0x254   : > { %v3215_v25 = vpop.f32.mrb[58].mxu1 }
 0x255   : > { %v2239_v31 = vadd.f32 %v3215_v25, %v4757_v12  ;;  %v1883_v43 = vpop.f32.mrb[60].mxu0  ;;  %v2233_v41 = vpop.f32.mrb[59].mxu1 }
 0x256   : > { %v4808_v50 = vadd.f32 %v2108_v0, %v1883_v43  ;;  %v2234_v35 = vadd.f32 %v2233_v41, %v4755_v21  ;;  %v1885_v46 = vpop.f32.mrb[61].mxu0 }
 0x257   : > { %v4811_v60 = vmax.f32 %v2229_v18, %v2239_v31 }
 0x258   : > { %v4813_v1 = vmax.f32 %v2224_v30, %v2234_v35  ;;  %v3218_v42 = vpop.f32.mrb[60].mxu1 }
 0x259   : > { %v2249_v19 = vadd.f32 %v3218_v42, %v4761_v55  ;;  %v1888_v33 = vpop.f32.mrb[62].mxu0  ;;  %v2243_v26 = vpop.f32.mrb[61].mxu1 }
 0x25a   : > { %v4816_v53 = vadd.f32 %v2113_v49, %v1888_v33  ;;  %v2244_v12 = vadd.f32 %v2243_v26, %v4759_v5  ;;  %v1890_v4 = vpop.f32.mrb[63].mxu0 }
 0x25c   : > { %v3221_v13 = vpop.f32.mrb[62].mxu1 }
 0x25d   : > { %v2259_v0 = vadd.f32 %v3221_v13, %v4765_v27  ;;  %v1958_v6 = vpop.f32.mrb[0].mxu0  ;;  %v2253_v21 = vpop.f32.mrb[63].mxu1 }
 0x25e   : > { %v2184_v63 = vadd.f32 %v2183_v54, %v1958_v6  ;;  %v2254_v36 = vadd.f32 %v2253_v21, %v4763_v15  ;;  %v1960_v52 = vpop.f32.mrb[1].mxu0 }
 0x25f   : > { %v4821_v8 = vmax.f32 %v2249_v19, %v2259_v0 }
 0x260   : > { %v4823_v17 = vmax.f32 %v2244_v12, %v2254_v36  ;;  %v3224_v55 = vpop.f32.mrb[64].mxu1 }
 0x261   : > { %v2269_v49 = vadd.f32 %v3224_v55, %v4769_v23  ;;  %v1963_v40 = vpop.f32.mrb[2].mxu0  ;;  %v2263_v51 = vpop.f32.mrb[65].mxu1 }
 0x262   : > { %v2189_v5 = vadd.f32 %v3200_v56, %v1963_v40  ;;  %v2264_v39 = vadd.f32 %v2263_v51, %v4767_v22  ;;  %v1965_v3 = vpop.f32.mrb[3].mxu0 }
 0x264   : > { %v3227_v27 = vpop.f32.mrb[66].mxu1 }
 0x265   : > { %v2279_v10 = vadd.f32 %v3227_v27, %v4773_v28  ;;  %v1968_v54 = vpop.f32.mrb[4].mxu0  ;;  %v2273_v11 = vpop.f32.mrb[67].mxu1 }
 0x266   : > { %v2194_v15 = vadd.f32 %v2193_v14, %v1968_v54  ;;  %v2274_v61 = vadd.f32 %v2273_v11, %v4771_v2  ;;  %v1970_v18 = vpop.f32.mrb[5].mxu0 }
 0x267   : > { %v4829_v7 = vmax.f32 %v2269_v49, %v2279_v10 }
 0x268   : > { %v4831_v34 = vmax.f32 %v2184_v63, %v2194_v15  ;;  %v4833_v23 = vmax.f32 %v2264_v39, %v2274_v61  ;;  %v3230_v30 = vpop.f32.mrb[68].mxu1 }
 0x269   : > { %v2363_v22 = vmax.f32 %v4811_v60, %v4829_v7  ;;  %v2289_v56 = vadd.f32 %v3230_v30, %v4777_v24  ;;  %v1973_v57 = vpop.f32.mrb[6].mxu0  ;;  %v2283_v28 = vpop.f32.mrb[69].mxu1 }
 0x26a   : > { %v2358_v14 = vmax.f32 %v4831_v34, %v4813_v1  ;;  %v2362_v2 = vmax.f32 %v4813_v1, %v4833_v23  ;;  %v2199_v25 = vadd.f32 %v4787_v20, %v1973_v57  ;;  %v2284_v31 = vadd.f32 %v2283_v28, %v4775_v62  ;;  %v1975_v43 = vpop.f32.mrb[7].mxu0 }
 0x26b   : > { %v4845_v41 = vmax.f32 %v4821_v8, %v2363_v22 }
 0x26c   : > { %v4848_v35 = vmax.f32 %v4823_v17, %v2362_v2  ;;  %v4850_v24 = vmax.f32 %v2189_v5, %v2199_v25  ;;  %v3233_v46 = vpop.f32.mrb[70].mxu1 }
 0x26d   : > { %5352 = vst [vmem:[#allocation7_spill] sm:$0xff] %v4845_v41  ;;  %v1978_v42 = vpop.f32.mrb[8].mxu0  ;;  %v2293_v19 = vpop.f32.mrb[71].mxu1  ;;  %v2586_v20 = vsel %vm145_vm1, %v4845_v41, -inf  ;;  %v2659_v62 = vsel %vm2386_vm4, %v4845_v41, -inf  ;;  %v2299_v21 = vadd.f32 %v3233_v46, %v4781_v32 }
 0x26e   : > { %v1980_v33 = vpop.f32.mrb[9].mxu0  ;;  %v2585_v26 = vsel %vm2557_vm5, %v4848_v35, -inf  ;;  %v2658_v12 = vsel %vm2630_vm6, %v4848_v35, -inf  ;;  %v2359_v6 = vmax.f32 %v4850_v24, %v4811_v60  ;;  %v2204_v52 = vadd.f32 %v4793_v59, %v1978_v42 }
 0x26f   : > { %v2587_v13 = vmax.f32 %v2585_v26, %v2586_v20  ;;  %v4860_v0 = vmax.f32 %v2658_v12, %v2659_v62  ;;  %v2294_v55 = vadd.f32 %v2293_v19, %v4779_v58  ;;  %v4871_v5 = vmax.f32 %v2289_v56, %v2299_v21 }
 0x270   : > { %v3236_v4 = vpop.f32.mrb[72].mxu1  ;;  %v2724_v56 = vsel %vm2443_vm7, %v4845_v41, -inf }
 0x271   : > { %5353 = vst [vmem:[#allocation8_spill] sm:$0xff] %v4860_v0  ;;  %v1983_v63 = vpop.f32.mrb[10].mxu0  ;;  %v2303_v36 = vpop.f32.mrb[73].mxu1  ;;  %v2309_v49 = vadd.f32 %v3236_v4, %v4785_v48  ;;  %v4874_v3 = vmax.f32 %v2284_v31, %v2294_v55  ;;  %v2365_v27 = vmax.f32 %v4821_v8, %v4871_v5  ;;  %v2465_v48 = vsel %vm2443_vm7, %v4848_v35, -inf }
 0x272   : > { %v4869_v40 = vadd.f32 %v4791_v45, %v1983_v63  ;;  %v1985_v51 = vpop.f32.mrb[11].mxu0  ;;  %v2304_v39 = vadd.f32 %v2303_v36, %v4783_v44  ;;  %v2466_v57 = vrot.slane %v2465_v48, 4  ;;  %v2725_v20 = vrot.slane %v2724_v56, 4 }
 0x273   : > { %v2364_v45 = vmax.f32 %v4823_v17, %v4874_v3  ;;  %v4886_v15 = vmax.f32 %v4829_v7, %v2365_v27 }
 0x274   : > { %v3239_v32 = vpop.f32.mrb[74].mxu1  ;;  %v2467_v12 = vmax.f32 %v2465_v48, %v2466_v57  ;;  %v2726_v51 = vmax.f32 %v2724_v56, %v2725_v20 }
 0x275   : > { %v2319_v59 = vadd.f32 %v3239_v32, %v4795_v47  ;;  %v1988_v58 = vpop.f32.mrb[12].mxu0  ;;  %v2313_v10 = vpop.f32.mrb[75].mxu1  ;;  %v4891_v47 = vmax.f32 %v4833_v23, %v2364_v45 }
 0x276   : > { %v2214_v54 = vadd.f32 %v4799_v9, %v1988_v58  ;;  %v2314_v44 = vadd.f32 %v2313_v10, %v4789_v37  ;;  %v1990_v11 = vpop.f32.mrb[13].mxu0  ;;  %v2468_v55 = vrot.slane %v2467_v12, 2  ;;  %v2727_v45 = vrot.slane %v2726_v51, 2 }
 0x277   : > { %v4888_v61 = vmax.f32 %v2309_v49, %v2319_v59  ;;  %5354 = vst [vmem:[#allocation9_spill] sm:$0xff] %v4891_v47 }
 0x278   : > { %v2344_v18 = vmax.f32 %v2204_v52, %v2214_v54  ;;  %v4893_v30 = vmax.f32 %v2304_v39, %v2314_v44  ;;  %v3242_v22 = vpop.f32.mrb[76].mxu1  ;;  %v4931_v10 = vmax.f32 %v2467_v12, %v2468_v55 }
 0x279   : > { %v2367_v37 = vmax.f32 %v4829_v7, %v4888_v61  ;;  %v2329_v9 = vadd.f32 %v3242_v22, %v4804_v16  ;;  %v1993_v28 = vpop.f32.mrb[14].mxu0  ;;  %v2323_v2 = vpop.f32.mrb[77].mxu1  ;;  %v2836_v16 = vsel %vm2557_vm5, %v4845_v41, -inf }
 0x27a   : > { %v2360_v25 = vmax.f32 %v2344_v18, %v4823_v17  ;;  %v4902_v31 = vmax.f32 %v4831_v34, %v2344_v18  ;;  %v1995_v43 = vpop.f32.mrb[15].mxu0  ;;  %v4907_v42 = vmax.f32 %v2344_v18, %v2358_v14  ;;  %v2366_v19 = vmax.f32 %v4833_v23, %v4893_v30 }
 0x27b   : > { %v4905_v46 = vmax.f32 %v4871_v5, %v2367_v37  ;;  %v2219_v7 = vadd.f32 %v4797_v38, %v1993_v28  ;;  %v2588_v23 = vrot.slane %v2587_v13, 4  ;;  %v2408_v38 = vsel %vm2386_vm4, %v4848_v35, -inf }
 0x27c   : > { %v4915_v17 = vmax.f32 %v4813_v1, %v2360_v25  ;;  %v2444_v34 = vsel %vm2443_vm7, %v4902_v31, -inf  ;;  %v3245_v62 = vpop.f32.mrb[78].mxu1  ;;  %v2451_v14 = vsel %vm2443_vm7, %v4907_v42, -inf  ;;  %v2387_v21 = vsel %vm2386_vm4, %v4902_v31, -inf }
 0x27d   : > { %v2445_v33 = vrot.slane %v2444_v34, 4  ;;  %v2333_v26 = vpop.f32.mrb[79].mxu1  ;;  %v2452_v4 = vrot.slane %v2451_v14, 4  ;;  %v2394_v1 = vsel %vm2386_vm4, %v4907_v42, -inf  ;;  %v2837_v36 = vrot.slane %v2836_v16, 4 }
 0x27e   : > { %v2409_v52 = vrot.slane %v2408_v38, 4  ;;  %v4927_v49 = vmax.f32 %v2587_v13, %v2588_v23  ;;  %v2388_v39 = vrot.slane %v2387_v21, 4  ;;  %v2395_v32 = vrot.slane %v2394_v1, 4 }
 0x27f   : > { %v2446_v63 = vmax.f32 %v2444_v34, %v2445_v33  ;;  %v2453_v27 = vmax.f32 %v2451_v14, %v2452_v4  ;;  %v4929_v58 = vmax.f32 %v2836_v16, %v2837_v36  ;;  %v2458_v13 = vsel %vm2443_vm7, %v4915_v17, -inf }
 0x280   : > { %v4934_v54 = vmax.f32 %v2408_v38, %v2409_v52  ;;  %v2389_v44 = vmax.f32 %v2387_v21, %v2388_v39  ;;  %v2396_v11 = vmax.f32 %v2394_v1, %v2395_v32  ;;  %v4939_v56 = vmax.f32 %v4874_v3, %v2366_v19 }
 0x281   : > { %v2447_v59 = vrot.slane %v2446_v63, 2  ;;  %v2454_v18 = vrot.slane %v2453_v27, 2  ;;  %v2345_v57 = vmax.f32 %v4869_v40, %v2219_v7  ;;  %v2324_v37 = vadd.f32 %v2323_v2, %v4801_v29 }
 0x282   : > { %v2558_v28 = vsel %vm2557_vm5, %v4902_v31, -inf  ;;  %v2567_v25 = vsel %vm2557_vm5, %v4907_v42, -inf  ;;  %v2339_v43 = vadd.f32 %v3245_v62, %v4816_v53  ;;  %v2334_v20 = vadd.f32 %v2333_v26, %v4808_v50 }
 0x283   : > { %v2448_v22 = vmax.f32 %v2446_v63, %v2447_v59  ;;  %v2576_v16 = vsel %vm2557_vm5, %v4915_v17, -inf  ;;  %v2361_v19 = vmax.f32 %v2345_v57, %v4821_v8  ;;  %v4953_v34 = vmax.f32 %v4850_v24, %v2345_v57 }
 0x284   : > { %v4958_v29 = vmax.f32 %v2345_v57, %v2359_v6  ;;  %v2631_v40 = vsel %vm2630_vm6, %v4902_v31, -inf  ;;  %v2640_v53 = vsel %vm2630_vm6, %v4907_v42, -inf  ;;  %v4964_v50 = vmax.f32 %v2329_v9, %v2339_v43 }
 0x285   : > { %v4966_v2 = vmax.f32 %v2324_v37, %v2334_v20  ;;  %v4969_v8 = vmax.f32 %v4811_v60, %v2361_v19  ;;  %v2559_v7 = vsel %vm145_vm1, %v4953_v34, -inf  ;;  %v2632_v6 = vsel %vm2386_vm4, %v4953_v34, -inf }
 0x286   : > { %v2568_v24 = vsel %vm145_vm1, %v4958_v29, -inf  ;;  %v2560_v62 = vmax.f32 %v2558_v28, %v2559_v7  ;;  %v4977_v14 = vmax.f32 %v2631_v40, %v2632_v6  ;;  %v2641_v9 = vsel %vm2386_vm4, %v4958_v29, -inf }
 0x287   : > { %5355 = vst [vmem:[#allocation10_spill] sm:$0xff] %v4969_v8  ;;  %v2569_v33 = vmax.f32 %v2567_v25, %v2568_v24  ;;  %v2577_v60 = vsel %vm145_vm1, %v4969_v8, -inf  ;;  %v4983_v26 = vmax.f32 %v2640_v53, %v2641_v9  ;;  %v2650_v12 = vsel %vm2386_vm4, %v4969_v8, -inf }
 0x288   : > { %v2703_v23 = vsel %vm2443_vm7, %v4953_v34, -inf  ;;  %v4991_v38 = vsel %vm2500_vm8, %v4902_v31, -inf  ;;  %v2649_v4 = vsel %vm2630_vm6, %v4915_v17, -inf  ;;  %v4995_v21 = vmax.f32 %v2576_v16, %v2577_v60 }
 0x289   : > { %v4997_v1 = vmax.f32 %v2726_v51, %v2727_v45  ;;  %v2459_v63 = vrot.slane %v2458_v13, 4  ;;  %v4999_v36 = vmax.f32 %v2649_v4, %v2650_v12  ;;  %v2704_v52 = vrot.slane %v2703_v23, 4 }
 0x28a   : > { %v2710_v55 = vsel %vm2443_vm7, %v4958_v29, -inf  ;;  %v2390_v39 = vrot.slane %v2389_v44, 2  ;;  %v2397_v32 = vrot.slane %v2396_v11, 2  ;;  %v5005_v31 = vsel %vm2500_vm8, %v4907_v42, -inf }
 0x28b   : > { %5356 = vst [vmem:[#allocation11_spill] sm:$0xff] %v4999_v36  ;;  %v2561_v59 = vrot.slane %v2560_v62, 4  ;;  %v2455_v57 = vmax.f32 %v2453_v27, %v2454_v18  ;;  %v2570_v37 = vrot.slane %v2569_v33, 4  ;;  %v2711_v28 = vrot.slane %v2710_v55, 4 }
 0x28c   : > { %v2449_v25 = vrot.slane %v2448_v22, 1  ;;  %v5009_v51 = vsel %vm145_vm1, %v4886_v15, -inf  ;;  %v5013_v45 = vsel %vm2557_vm5, %v4891_v47, -inf  ;;  %v5017_v43 = vsel %vm2386_vm4, %v4915_v17, -inf }
 0x28d   : > { %v2705_v20 = vmax.f32 %v2703_v23, %v2704_v52  ;;  %v2460_v42 = vmax.f32 %v2458_v13, %v2459_v63  ;;  %v2712_v27 = vmax.f32 %v2710_v55, %v2711_v28  ;;  %v2717_v18 = vsel %vm2443_vm7, %v4969_v8, -inf }
 0x28e   : > { %v5022_v19 = vmax.f32 %v2389_v44, %v2390_v39  ;;  %v2562_v53 = vmax.f32 %v2560_v62, %v2561_v59  ;;  %v2815_v7 = vsel %vm2557_vm5, %v4953_v34, -inf  ;;  %v5027_v24 = vmax.f32 %v2396_v11, %v2397_v32 }
 0x28f   : > { %v2571_v6 = vmax.f32 %v2569_v33, %v2570_v37  ;;  %v2450_v9 = vmax.f32 %v2448_v22, %v2449_v25  ;;  %v2456_v60 = vrot.slane %v2455_v57, 1  ;;  %v2706_v13 = vrot.slane %v2705_v20, 2 }
 0x290   : > { %v2718_v12 = vrot.slane %v2717_v18, 4  ;;  %v2816_v23 = vrot.slane %v2815_v7, 4  ;;  %v2822_v4 = vsel %vm2557_vm5, %v4958_v29, -inf  ;;  %v2713_v44 = vrot.slane %v2712_v27, 2 }
 0x291   : > { %v2823_v63 = vrot.slane %v2822_v4, 4  ;;  %v2829_v62 = vsel %vm2557_vm5, %v4969_v8, -inf  ;;  %v2461_v52 = vrot.slane %v2460_v42, 2  ;;  %v2563_v55 = vrot.slane %v2562_v53, 2 }
 0x292   : > { %v2579_v11 = vrot.slane %v4995_v21, 4  ;;  %v2817_v39 = vmax.f32 %v2815_v7, %v2816_v23  ;;  %v2830_v33 = vrot.slane %v2829_v62, 4  ;;  %v2572_v22 = vrot.slane %v2571_v6, 2 }
 0x293   : > { %v2824_v32 = vmax.f32 %v2822_v4, %v2823_v63  ;;  %v2369_v59 = vmax.f32 %v4871_v5, %v4964_v50  ;;  %v5038_v37 = vmax.f32 %v4964_v50, %v4888_v61  ;;  %v5040_v28 = vmax.f32 %v2705_v20, %v2706_v13 }
 0x294   : > { %v5042_v25 = vmax.f32 %v2717_v18, %v2718_v12  ;;  %v2818_v40 = vrot.slane %v2817_v39, 2  ;;  %v2368_v7 = vmax.f32 %v4874_v3, %v4966_v2  ;;  %v5046_v23 = vmax.f32 %v2712_v27, %v2713_v44 }
 0x295   : > { %v2825_v16 = vrot.slane %v2824_v32, 2  ;;  %v5049_v4 = vmax.f32 %v4888_v61, %v2369_v59  ;;  %v5053_v5 = vmax.f32 %v4966_v2, %v4893_v30  ;;  %v5057_v20 = vmax.f32 %v2829_v62, %v2830_v33 }
 0x296   : > { %v5055_v50 = vmax.f32 %v2817_v39, %v2818_v40  ;;  %v5060_v18 = vmax.f32 %v4893_v30, %v2368_v7  ;;  %v2457_v13 = vmax.f32 %v2455_v57, %v2456_v60  ;;  %v2462_v3 = vmax.f32 %v2460_v42, %v2461_v52 }
 0x297   : > { %v5062_v12 = vmax.f32 %v2824_v32, %v2825_v16  ;;  %v2470_v27 = vrot.slane %v4931_v10, 1  ;;  %v2472_v61 = vsel %vm2443_vm7, %v4891_v47, -inf  ;;  %v2479_v2 = vsel %vm2443_vm7, %v4939_v56, -inf }
 0x298   : > { %v2473_v44 = vrot.slane %v2472_v61, 4  ;;  %v2486_v40 = vsel %vm2443_vm7, %v5060_v18, -inf  ;;  %v2493_v30 = vsel %vm2443_vm7, %v5053_v5, -inf  ;;  %v2463_v63 = vrot.slane %v2462_v3, 1 }
 0x299   : > { %v2471_v57 = vmax.f32 %v4931_v10, %v2470_v27  ;;  %v2480_v16 = vrot.slane %v2479_v2, 4  ;;  %v2487_v42 = vrot.slane %v2486_v40, 4  ;;  %v2494_v62 = vrot.slane %v2493_v30, 4 }
 0x29a   : > { %v2474_v60 = vmax.f32 %v2472_v61, %v2473_v44  ;;  %v2902_v52 = vsel %vm2879_vm9, %v2457_v13, %v2450_v9  ;;  %v2564_v39 = vmax.f32 %v2562_v53, %v2563_v55  ;;  %v2464_v33 = vmax.f32 %v2462_v3, %v2463_v63 }
 0x29b   : > { %v2481_v32 = vmax.f32 %v2479_v2, %v2480_v16  ;;  %v2488_v59 = vmax.f32 %v2486_v40, %v2487_v42  ;;  %v2573_v7 = vmax.f32 %v2571_v6, %v2572_v22  ;;  %v2495_v47 = vmax.f32 %v2493_v30, %v2494_v62 }
 0x29c   : > { %v2475_v48 = vrot.slane %v2474_v60, 2  ;;  %v2565_v41 = vrot.slane %v2564_v39, 1  ;;  %v2580_v10 = vmax.f32 %v4995_v21, %v2579_v11  ;;  %v2903_v61 = vsel %vm2881_vm10, %v2464_v33, %v2902_v52 }
 0x29d   : > { %v2482_v27 = vrot.slane %v2481_v32, 2  ;;  %v2489_v36 = vrot.slane %v2488_v59, 2  ;;  %v2574_v44 = vrot.slane %v2573_v7, 1  ;;  %v2496_v0 = vrot.slane %v2495_v47, 2 }
 0x29e   : > { %v2476_v8 = vmax.f32 %v2474_v60, %v2475_v48  ;;  %v2904_v53 = vsel %vm2883_vm11, %v2471_v57, %v2903_v61  ;;  %v2566_v9 = vmax.f32 %v2564_v39, %v2565_v41  ;;  %v2581_v6 = vrot.slane %v2580_v10, 2 }
 0x29f   : > { %v2483_v55 = vmax.f32 %v2481_v32, %v2482_v27  ;;  %v2490_v13 = vmax.f32 %v2488_v59, %v2489_v36  ;;  %v2575_v3 = vmax.f32 %v2573_v7, %v2574_v44  ;;  %v2497_v2 = vmax.f32 %v2495_v47, %v2496_v0 }
 0x2a0   : > { %v2477_v22 = vrot.slane %v2476_v8, 1  ;;  %v5357_v40 = vrot.slane %v4927_v49, 2  ;;  %v2596_v11 = vmax.f32 %v5013_v45, %v5009_v51  ;;  %v2582_v48 = vmax.f32 %v2580_v10, %v2581_v6 }
 0x2a1   : > { %v2484_v30 = vrot.slane %v2483_v55, 1  ;;  %v2491_v63 = vrot.slane %v2490_v13, 1  ;;  %v2603_v57 = vsel %vm2557_vm5, %v4939_v56, -inf  ;;  %v2498_v16 = vrot.slane %v2497_v2, 1 }
 0x2a2   : > { %v2591_v21 = vmax.f32 %v4927_v49, %v5357_v40  ;;  %v2478_v41 = vmax.f32 %v2476_v8, %v2477_v22  ;;  %v2597_v42 = vrot.slane %v2596_v11, 4  ;;  %v2583_v0 = vrot.slane %v2582_v48, 1 }
 0x2a3   : > { %v2485_v60 = vmax.f32 %v2483_v55, %v2484_v30  ;;  %v2492_v62 = vmax.f32 %v2490_v13, %v2491_v63  ;;  %v2604_v47 = vsel %vm145_vm1, %v4905_v46, -inf  ;;  %v2499_v49 = vmax.f32 %v2497_v2, %v2498_v16 }
 0x2a4   : > { %v2592_v36 = vrot.slane %v2591_v21, 1  ;;  %v2905_v52 = vsel %vm2885_vm12, %v2478_v41, %v2904_v53  ;;  %v2598_v45 = vmax.f32 %v2596_v11, %v2597_v42  ;;  %v2584_v33 = vmax.f32 %v2582_v48, %v2583_v0 }
 0x2a5   : > { %v2906_v39 = vsel %vm2887_vm13, %v2485_v60, %v2905_v52  ;;  %v2605_v32 = vmax.f32 %v2603_v57, %v2604_v47  ;;  %v2612_v8 = vsel %vm2557_vm5, %v5060_v18, -inf  ;;  %v2613_v10 = vsel %vm145_vm1, %v5049_v4, -inf }
 0x2a6   : > { %v2593_v51 = vmax.f32 %v2591_v21, %v2592_v36  ;;  %v2907_v59 = vsel %vm2889_vm14, %v2492_v62, %v2906_v39  ;;  %v2599_v7 = vrot.slane %v2598_v45, 2  ;;  %v2621_v27 = vsel %vm2557_vm5, %v5053_v5, -inf }
 0x2a7   : > { %v2908_v61 = vsel %vm2891_vm15, %v2499_v49, %v2907_v59  ;;  %v2606_v44 = vrot.slane %v2605_v32, 4  ;;  %v2614_v53 = vmax.f32 %v2612_v8, %v2613_v10  ;;  %v2622_v55 = vsel %vm145_vm1, %v5038_v37, -inf }
 0x2a8   : > { %2909 = vrot.lane.b32.xlu0 %v2908_v61, %s3538_s7  ;;  %v2600_v13 = vmax.f32 %v2598_v45, %v2599_v7  ;;  %v2623_v6 = vmax.f32 %v2621_v27, %v2622_v55  ;;  %v2936_v22 = vsel %vm2879_vm9, %v2575_v3, %v2566_v9  ;;  %v2708_v2 = vrot.slane %v5040_v28, 1 }
 0x2a9   : > { %v2607_v40 = vmax.f32 %v2605_v32, %v2606_v44  ;;  %v2615_v21 = vrot.slane %v2614_v53, 4  ;;  %v2937_v11 = vsel %vm2881_vm10, %v2584_v33, %v2936_v22  ;;  %v2715_v30 = vrot.slane %v5046_v23, 1 }
 0x2aa   : > { %v2601_v63 = vrot.slane %v2600_v13, 1  ;;  %v2624_v48 = vrot.slane %v2623_v6, 4  ;;  %v2938_v57 = vsel %vm2883_vm11, %v2593_v51, %v2937_v11  ;;  %v2709_v41 = vmax.f32 %v5040_v28, %v2708_v2 }
 0x2ab   : > { %v2608_v16 = vrot.slane %v2607_v40, 2  ;;  %v2616_v36 = vmax.f32 %v2614_v53, %v2615_v21  ;;  %v2716_v42 = vmax.f32 %v5046_v23, %v2715_v30  ;;  %v2720_v9 = vrot.slane %v5042_v25, 2 }
 0x2ac   : > { %v2602_v3 = vmax.f32 %v2600_v13, %v2601_v63  ;;  %v2625_v60 = vmax.f32 %v2623_v6, %v2624_v48  ;;  %v2729_v62 = vrot.slane %v4997_v1, 1  ;;  %v2731_v0 = vsel %vm2443_vm7, %v4886_v15, -inf }
 0x2ad   : > { %v2609_v47 = vmax.f32 %v2607_v40, %v2608_v16  ;;  %v2617_v49 = vrot.slane %v2616_v36, 2  ;;  %v2721_v52 = vmax.f32 %v5042_v25, %v2720_v9  ;;  %v2732_v51 = vrot.slane %v2731_v0, 4 }
 0x2ae   : > { %v2626_v45 = vrot.slane %v2625_v60, 2  ;;  %v2939_v28 = vsel %vm2885_vm12, %v2602_v3, %v2938_v57  ;;  %v2730_v39 = vmax.f32 %v4997_v1, %v2729_v62  ;;  %v2738_v23 = vsel %vm2443_vm7, %v4905_v46, -inf }
 0x2af   : > { %v2610_v33 = vrot.slane %v2609_v47, 1  ;;  %v2618_v32 = vmax.f32 %v2616_v36, %v2617_v49  ;;  %v2722_v8 = vrot.slane %v2721_v52, 1  ;;  %v2733_v59 = vmax.f32 %v2731_v0, %v2732_v51 }
 0x2b0   : > { %v2627_v7 = vmax.f32 %v2625_v60, %v2626_v45  ;;  %v2739_v10 = vrot.slane %v2738_v23, 4  ;;  %v2745_v27 = vsel %vm2443_vm7, %v5049_v4, -inf  ;;  %v2752_v25 = vsel %vm2443_vm7, %v5038_v37, -inf }
 0x2b1   : > { %v2611_v61 = vmax.f32 %v2609_v47, %v2610_v33  ;;  %v2619_v44 = vrot.slane %v2618_v32, 1  ;;  %v2723_v53 = vmax.f32 %v2721_v52, %v2722_v8  ;;  %v2734_v55 = vrot.slane %v2733_v59, 2 }
 0x2b2   : > { %v2628_v1 = vrot.slane %v2627_v7, 1  ;;  %v2740_v13 = vmax.f32 %v2738_v23, %v2739_v10  ;;  %v2746_v6 = vrot.slane %v2745_v27, 4  ;;  %v2753_v22 = vrot.slane %v2752_v25, 4 }
 0x2b3   : > { %v2620_v2 = vmax.f32 %v2618_v32, %v2619_v44  ;;  %v2940_v40 = vsel %vm2887_vm13, %v2611_v61, %v2939_v28  ;;  %v2735_v21 = vmax.f32 %v2733_v59, %v2734_v55  ;;  %v2970_v11 = vsel %vm2879_vm9, %v2716_v42, %v2709_v41 }
 0x2b4   : > { %v2629_v30 = vmax.f32 %v2627_v7, %v2628_v1  ;;  %v2741_v63 = vrot.slane %v2740_v13, 2  ;;  %v2747_v48 = vmax.f32 %v2745_v27, %v2746_v6  ;;  %v2754_v57 = vmax.f32 %v2752_v25, %v2753_v22 }
 0x2b5   : > { %v2941_v16 = vsel %vm2889_vm14, %v2620_v2, %v2940_v40  ;;  %v2736_v36 = vrot.slane %v2735_v21, 1  ;;  %v2971_v9 = vsel %vm2881_vm10, %v2723_v53, %v2970_v11  ;;  %v2820_v3 = vrot.slane %v5055_v50, 1 }
 0x2b6   : > { %v2942_v60 = vsel %vm2891_vm15, %v2629_v30, %v2941_v16  ;;  %v2742_v62 = vmax.f32 %v2740_v13, %v2741_v63  ;;  %v2748_v0 = vrot.slane %v2747_v48, 2  ;;  %v2755_v47 = vrot.slane %v2754_v57, 2 }
 0x2b7   : > { %2943 = vrot.lane.b32.xlu1 %v2942_v60, %s3538_s7  ;;  %v2737_v49 = vmax.f32 %v2735_v21, %v2736_v36  ;;  %v2972_v41 = vsel %vm2883_vm11, %v2730_v39, %v2971_v9  ;;  %v2821_v42 = vmax.f32 %v5055_v50, %v2820_v3  ;;  %v2827_v52 = vrot.slane %v5062_v12, 1 }
 0x2b8   : > { %v2743_v51 = vrot.slane %v2742_v62, 1  ;;  %v2749_v45 = vmax.f32 %v2747_v48, %v2748_v0  ;;  %v2756_v28 = vmax.f32 %v2754_v57, %v2755_v47  ;;  %v2832_v23 = vrot.slane %v5057_v20, 2 }
 0x2b9   : > { %v2973_v33 = vsel %vm2885_vm12, %v2737_v49, %v2972_v41  ;;  %v2828_v32 = vmax.f32 %v5062_v12, %v2827_v52  ;;  %v2839_v8 = vrot.slane %v4929_v58, 2  ;;  %v2843_v59 = vsel %vm2557_vm5, %v4886_v15, -inf }
 0x2ba   : > { %v2744_v7 = vmax.f32 %v2742_v62, %v2743_v51  ;;  %v2750_v39 = vrot.slane %v2749_v45, 1  ;;  %v2757_v10 = vrot.slane %v2756_v28, 1  ;;  %v2833_v50 = vmax.f32 %v5057_v20, %v2832_v23 }
 0x2bb   : > { %v2840_v27 = vmax.f32 %v4929_v58, %v2839_v8  ;;  %v2844_v25 = vrot.slane %v2843_v59, 4  ;;  %v2850_v61 = vsel %vm2557_vm5, %v4905_v46, -inf  ;;  %v2857_v44 = vsel %vm2557_vm5, %v5049_v4, -inf }
 0x2bc   : > { %v2751_v12 = vmax.f32 %v2749_v45, %v2750_v39  ;;  %v2758_v53 = vmax.f32 %v2756_v28, %v2757_v10  ;;  %v2974_v55 = vsel %vm2887_vm13, %v2744_v7, %v2973_v33  ;;  %v2834_v1 = vrot.slane %v2833_v50, 1 }
 0x2bd   : > { %v2841_v13 = vrot.slane %v2840_v27, 1  ;;  %v2845_v6 = vmax.f32 %v2843_v59, %v2844_v25  ;;  %v2851_v22 = vrot.slane %v2850_v61, 4  ;;  %v2858_v2 = vrot.slane %v2857_v44, 4 }
 0x2be   : > { %v2975_v20 = vsel %vm2889_vm14, %v2751_v12, %v2974_v55  ;;  %v2835_v40 = vmax.f32 %v2833_v50, %v2834_v1  ;;  %v2864_v58 = vsel %vm2557_vm5, %v5038_v37, -inf  ;;  %v3004_v21 = vsel %vm2879_vm9, %v2828_v32, %v2821_v42 }
 0x2bf   : > { %v2976_v11 = vsel %vm2891_vm15, %v2758_v53, %v2975_v20  ;;  %v2842_v30 = vmax.f32 %v2840_v27, %v2841_v13  ;;  %v2846_v63 = vrot.slane %v2845_v6, 2  ;;  %v2852_v48 = vmax.f32 %v2850_v61, %v2851_v22 }
 0x2c0   : > { %v2402_v57 = vrot.slane %v5017_v43, 4  ;;  %2977 = vrot.lane.b32.xlu0 %v2976_v11, %s3538_s7  ;;  %v2859_v16 = vmax.f32 %v2857_v44, %v2858_v2  ;;  %v2865_v36 = vrot.slane %v2864_v58, 4  ;;  %v3005_v9 = vsel %vm2881_vm10, %v2835_v40, %v3004_v21 }
 0x2c1   : > { %v5358_v3 = vrot.slane %v4991_v38, 4  ;;  %v2847_v62 = vmax.f32 %v2845_v6, %v2846_v63  ;;  %v2853_v0 = vrot.slane %v2852_v48, 2  ;;  %v3006_v47 = vsel %vm2883_vm11, %v2842_v30, %v3005_v9 }
 0x2c2   : > { %v5359_v49 = vrot.slane %v5005_v31, 4  ;;  %v2515_v42 = vsel %vm2500_vm8, %v4915_v17, -inf  ;;  %v2860_v52 = vrot.slane %v2859_v16, 2  ;;  %v2866_v51 = vmax.f32 %v2864_v58, %v2865_v36 }
 0x2c3   : > { %v2503_v60 = vmax.f32 %v4991_v38, %v5358_v3  ;;  %v2848_v45 = vrot.slane %v2847_v62, 1  ;;  %v2854_v28 = vmax.f32 %v2852_v48, %v2853_v0  ;;  %v2392_v23 = vrot.slane %v5022_v19, 1 }
 0x2c4   : > { %v2510_v41 = vmax.f32 %v5005_v31, %v5359_v49  ;;  %v2399_v33 = vrot.slane %v5027_v24, 1  ;;  %v2403_v38 = vmax.f32 %v5017_v43, %v2402_v57  ;;  %v2861_v32 = vmax.f32 %v2859_v16, %v2860_v52 }
 0x2c5   : > { %v2867_v8 = vrot.slane %v2866_v51, 2  ;;  %v2504_v59 = vrot.slane %v2503_v60, 2  ;;  %v2849_v7 = vmax.f32 %v2847_v62, %v2848_v45  ;;  %v2855_v39 = vrot.slane %v2854_v28, 1 }
 0x2c6   : > { %v2411_v31 = vrot.slane %v4934_v54, 2  ;;  %v2511_v10 = vrot.slane %v2510_v41, 2  ;;  %v2516_v50 = vrot.slane %v2515_v42, 4  ;;  %v2862_v17 = vrot.slane %v2861_v32, 1 }
 0x2c7   : > { %v2868_v27 = vmax.f32 %v2866_v51, %v2867_v8  ;;  %v2856_v25 = vmax.f32 %v2854_v28, %v2855_v39  ;;  %v3007_v61 = vsel %vm2885_vm12, %v2849_v7, %v3006_v47  ;;  %v2393_v44 = vmax.f32 %v5022_v19, %v2392_v23 }
 0x2c8   : > { %v2400_v12 = vmax.f32 %v5027_v24, %v2399_v33  ;;  %v2863_v53 = vmax.f32 %v2861_v32, %v2862_v17  ;;  %v2522_v55 = vsel %vm2500_vm8, %v4848_v35, -inf  ;;  %v2505_v1 = vmax.f32 %v2503_v60, %v2504_v59 }
 0x2c9   : > { %v2869_v43 = vrot.slane %v2868_v27, 1  ;;  %v3008_v13 = vsel %vm2887_vm13, %v2856_v25, %v3007_v61  ;;  %v2412_v6 = vmax.f32 %v4934_v54, %v2411_v31  ;;  %v2512_v22 = vmax.f32 %v2510_v41, %v2511_v10  ;;  %v5360_v10 = vld [vmem:[#allocation8_spill] sm:$0xff]  ;;  %v5361_v25 = vld [vmem:[#allocation10_spill] sm:$0xff] }
 0x2ca   : > { %v2517_v2 = vmax.f32 %v2515_v42, %v2516_v50  ;;  %v3009_v40 = vsel %vm2889_vm14, %v2863_v53, %v3008_v13  ;;  %v2880_v58 = vsel %vm2879_vm9, %v2400_v12, %v2393_v44  ;;  %v2404_v19 = vrot.slane %v2403_v38, 2 }
 0x2cb   : > { %v2870_v20 = vmax.f32 %v2868_v27, %v2869_v43  ;;  %v2523_v21 = vrot.slane %v2522_v55, 4  ;;  %v2634_v11 = vrot.slane %v4977_v14, 4  ;;  %v2643_v35 = vrot.slane %v4983_v26, 4 }
 0x2cc   : > { %v2413_v30 = vrot.slane %v2412_v6, 1  ;;  %v2405_v63 = vmax.f32 %v2403_v38, %v2404_v19  ;;  %v2506_v54 = vrot.slane %v2505_v1, 1  ;;  %v2513_v48 = vrot.slane %v2512_v22, 1 }
 0x2cd   : > { %v3010_v24 = vsel %vm2891_vm15, %v2870_v20, %v3009_v40  ;;  %v2518_v57 = vrot.slane %v2517_v2, 2  ;;  %v2524_v9 = vmax.f32 %v2522_v55, %v2523_v21  ;;  %v2635_v3 = vmax.f32 %v4977_v14, %v2634_v11 }
 0x2ce   : > { %3011 = vrot.lane.b32.xlu1 %v3010_v24, %s3538_s7  ;;  %v2406_v16 = vrot.slane %v2405_v63, 1  ;;  %v2644_v60 = vmax.f32 %v4983_v26, %v2643_v35  ;;  %v2414_v62 = vmax.f32 %v2412_v6, %v2413_v30  ;;  %v2507_v47 = vmax.f32 %v2505_v1, %v2506_v54  ;;  %s134_s7 = sand.u32 1, %s3526_s10  }
 0x2cf   : > { %v2519_v36 = vmax.f32 %v2517_v2, %v2518_v57  ;;  %v2514_v49 = vmax.f32 %v2512_v22, %v2513_v48  ;;  %v2525_v42 = vrot.slane %v2524_v9, 2  ;;  %v2636_v23 = vrot.slane %v2635_v3, 2  ;;  %v5363_v2 = vld [vmem:[#allocation7_spill] sm:$0xff]  ;;  %s3100_s24 = sshll.u32 %s134_s7, 5  ;;  %s3023_s13 = scalar_lea.sflag [#allocation5], %s134_s7 }
 0x2d0   : > { %v2407_v0 = vmax.f32 %v2405_v63, %v2406_v16  ;;  %v2645_v33 = vrot.slane %v2644_v60, 2  ;;  %v2759_v26 = vsel %vm2500_vm8, %v4953_v34, -inf  ;;  %v2766_v32 = vsel %vm2500_vm8, %v4958_v29, -inf  ;;  %v5362_v29 = vld [vmem:[#allocation11_spill] sm:$0xff]  ;;  %s5251_s30 = scalar_lea.vmem [#allocation4], %s3100_s24 }
 0x2d1   : > { %v2520_v41 = vrot.slane %v2519_v36, 1  ;;  %v2526_v28 = vmax.f32 %v2524_v9, %v2525_v42  ;;  %v2920_v14 = vsel %vm2879_vm9, %v2514_v49, %v2507_v47  ;;  %v2637_v7 = vmax.f32 %v2635_v3, %v2636_v23  ;;  %s3037_s4 = sshll.u32 %s5251_s30, 4  ;;  %s5288_s4 = int_to_ptr.vmem [resolvable:$true] %s3037_s4 }
 0x2d2   : > { %v2882_v52 = vsel %vm2881_vm10, %v2407_v0, %v2880_v58  ;;  %v2646_v31 = vmax.f32 %v2644_v60, %v2645_v33  ;;  %v2661_v50 = vrot.slane %v5360_v10, 4  ;;  %v2760_v17 = vrot.slane %v2759_v26, 4  ;;  %s3472_s14 = scalar_lea.vmem %s5288_s4, 512  ;;  %p3479_p0 = scmp.lt.s32.totalorder %s5288_s4, %s3477_s17 }
 0x2d3   : > { %v5181_v51 = vsel %vm2883_vm11, %v2414_v62, %v2882_v52  ;;  %v2521_v45 = vmax.f32 %v2519_v36, %v2520_v41  ;;  %v2527_v38 = vrot.slane %v2526_v28, 1  ;;  %v2767_v27 = vrot.slane %v2766_v32, 4  ;;  %p3473_p11 = scmp.ne.s32.totalorder %s5288_s4, %s3472_s14  ;;  %p3480_p1 = scmp.lt.s32.totalorder %s3478_s21, %s3472_s14 }
 0x2d4   : > { %v2773_v61 = vsel %vm2500_vm8, %v5361_v25, -inf  ;;  %v2638_v44 = vrot.slane %v2637_v7, 1  ;;  %v2647_v34 = vrot.slane %v2646_v31, 1  ;;  %v2662_v12 = vmax.f32 %v5360_v10, %v2661_v50 }
 0x2d5   : > { %v2528_v8 = vmax.f32 %v2526_v28, %v2527_v38  ;;  %v2921_v59 = vsel %vm2881_vm10, %v2521_v45, %v2920_v14  ;;  %v2652_v53 = vrot.slane %v5362_v29, 4  ;;  %v2774_v43 = vrot.slane %v2773_v61, 4  ;;  %p3474_p12 = pnand %p3473_p11, %p3593_p5  ;;  %p3481_p2 = por %p3480_p1, %p3479_p0 }
 0x2d6   : > { %v2761_v55 = vmax.f32 %v2759_v26, %v2760_v17  ;;  %v2768_v1 = vmax.f32 %v2766_v32, %v2767_v27  ;;  %v2639_v13 = vmax.f32 %v2637_v7, %v2638_v44  ;;  %v2648_v6 = vmax.f32 %v2646_v31, %v2647_v34 }
 0x2d7   : > { %v5190_v39 = vsel %vm2883_vm11, %v2528_v8, %v2921_v59  ;;  %v2663_v22 = vrot.slane %v2662_v12, 2  ;;  %v2780_v20 = vsel %vm2500_vm8, %v5363_v2, -inf  ;;  %v2775_v40 = vmax.f32 %v2773_v61, %v2774_v43  ;;  %v5364_v59 = vld [vmem:[#allocation9_spill] sm:$0xff]  ;;  %p3475_p13 = pneg %p3474_p12 }
 0x2d8   : > { %v2762_v58 = vrot.slane %v2761_v55, 2  ;;  %v2769_v19 = vrot.slane %v2768_v1, 2  ;;  %v2954_v21 = vsel %vm2879_vm9, %v2648_v6, %v2639_v13  ;;  %v2653_v24 = vmax.f32 %v5362_v29, %v2652_v53 }
 0x2d9   : > { %v2664_v11 = vmax.f32 %v2662_v12, %v2663_v22  ;;  %v2781_v35 = vrot.slane %v2780_v20, 4  ;;  %v2776_v63 = vrot.slane %v2775_v40, 2  ;;  %v2415_v7 = vsel %vm2386_vm4, %v5364_v59, -inf  ;;  %p3482_p3 = pnand %p3481_p2, %p3475_p13 }
 0x2da   : > { %v2654_v30 = vrot.slane %v2653_v24, 2  ;;  %v2763_v54 = vmax.f32 %v2761_v55, %v2762_v58  ;;  %v2770_v48 = vmax.f32 %v2768_v1, %v2769_v19  ;;  %v2422_v31 = vsel %vm2386_vm4, %v4939_v56, -inf }
 0x2db   : > { %v2665_v16 = vrot.slane %v2664_v11, 1  ;;  %v2777_v9 = vmax.f32 %v2775_v40, %v2776_v63  ;;  %v2782_v3 = vmax.f32 %v2780_v20, %v2781_v35  ;;  %v2429_v10 = vsel %vm2386_vm4, %v5060_v18, -inf }
 0x2dc   : > { %v2655_v57 = vmax.f32 %v2653_v24, %v2654_v30  ;;  %v2764_v62 = vrot.slane %v2763_v54, 1  ;;  %v2771_v0 = vrot.slane %v2770_v48, 1  ;;  %v2416_v50 = vrot.slane %v2415_v7, 4 }
 0x2dd   : > { %v2783_v47 = vrot.slane %v2782_v3, 2  ;;  %v2666_v49 = vmax.f32 %v2664_v11, %v2665_v16  ;;  %v2778_v42 = vrot.slane %v2777_v9, 1  ;;  %v2423_v17 = vrot.slane %v2422_v31, 4 }
 0x2de   : > { %v2656_v36 = vrot.slane %v2655_v57, 1  ;;  %v2765_v28 = vmax.f32 %v2763_v54, %v2764_v62  ;;  %v2772_v23 = vmax.f32 %v2770_v48, %v2771_v0  ;;  %v2430_v27 = vrot.slane %v2429_v10, 4 }
 0x2df   : > { %v2784_v52 = vmax.f32 %v2782_v3, %v2783_v47  ;;  %v2779_v33 = vmax.f32 %v2777_v9, %v2778_v42  ;;  %v2436_v25 = vsel %vm2386_vm4, %v5053_v5, -inf  ;;  %v2417_v61 = vmax.f32 %v2415_v7, %v2416_v50 }
 0x2e0   : > { %v2657_v60 = vmax.f32 %v2655_v57, %v2656_v36  ;;  %v2988_v14 = vsel %vm2879_vm9, %v2772_v23, %v2765_v28  ;;  %v2424_v44 = vmax.f32 %v2422_v31, %v2423_v17  ;;  %v2431_v34 = vmax.f32 %v2429_v10, %v2430_v27 }
 0x2e1   : > { %v2785_v38 = vrot.slane %v2784_v52, 1  ;;  %v2989_v32 = vsel %vm2881_vm10, %v2779_v33, %v2988_v14  ;;  %v2437_v12 = vrot.slane %v2436_v25, 4  ;;  %v2418_v29 = vrot.slane %v2417_v61, 2 }
 0x2e2   : > { %v2955_v41 = vsel %vm2881_vm10, %v2657_v60, %v2954_v21  ;;  %v2425_v53 = vrot.slane %v2424_v44, 2  ;;  %v2432_v43 = vrot.slane %v2431_v34, 2  ;;  %v2529_v13 = vsel %vm2500_vm8, %v5364_v59, -inf }
 0x2e3   : > { %v5203_v45 = vsel %vm2883_vm11, %v2666_v49, %v2955_v41  ;;  %v2786_v26 = vmax.f32 %v2784_v52, %v2785_v38  ;;  %v2438_v55 = vmax.f32 %v2436_v25, %v2437_v12  ;;  %v2419_v1 = vmax.f32 %v2417_v61, %v2418_v29 }
 0x2e4   : > { %v2426_v6 = vmax.f32 %v2424_v44, %v2425_v53  ;;  %v2433_v22 = vmax.f32 %v2431_v34, %v2432_v43  ;;  %v2536_v20 = vsel %vm2500_vm8, %v4939_v56, -inf  ;;  %v2543_v40 = vsel %vm2500_vm8, %v5060_v18, -inf }
 0x2e5   : > { %v5208_v8 = vsel %vm2883_vm11, %v2786_v26, %v2989_v32  ;;  %v2439_v2 = vrot.slane %v2438_v55, 2  ;;  %v2668_v58 = vsel %vm2386_vm4, %v4886_v15, -inf  ;;  %v2667_v19 = vsel %vm2630_vm6, %v5364_v59, -inf }
 0x2e6   : > { %v2530_v21 = vrot.slane %v2529_v13, 4  ;;  %v2420_v24 = vrot.slane %v2419_v1, 1  ;;  %v2427_v11 = vrot.slane %v2426_v6, 1  ;;  %v2434_v35 = vrot.slane %v2433_v22, 1 }
 0x2e7   : > { %v2537_v30 = vrot.slane %v2536_v20, 4  ;;  %v2544_v63 = vrot.slane %v2543_v40, 4  ;;  %v2440_v54 = vmax.f32 %v2438_v55, %v2439_v2  ;;  %v2669_v48 = vmax.f32 %v2667_v19, %v2668_v58 }
 0x2e8   : > { %v2676_v57 = vsel %vm2630_vm6, %v4939_v56, -inf  ;;  %v2677_v16 = vsel %vm2386_vm4, %v4905_v46, -inf  ;;  %v2531_v36 = vmax.f32 %v2529_v13, %v2530_v21  ;;  %v2550_v9 = vsel %vm2500_vm8, %v5053_v5, -inf }
 0x2e9   : > { %v2685_v3 = vsel %vm2630_vm6, %v5060_v18, -inf  ;;  %v2686_v60 = vsel %vm2386_vm4, %v5049_v4, -inf  ;;  %v2421_v62 = vmax.f32 %v2419_v1, %v2420_v24  ;;  %v2435_v0 = vmax.f32 %v2433_v22, %v2434_v35 }
 0x2ea   : > { %v2538_v47 = vmax.f32 %v2536_v20, %v2537_v30  ;;  %v2545_v49 = vmax.f32 %v2543_v40, %v2544_v63  ;;  %v2678_v41 = vmax.f32 %v2676_v57, %v2677_v16  ;;  %v2551_v42 = vrot.slane %v2550_v9, 4 }
 0x2eb   : > { %v2886_v56 = vsel %vm2885_vm12, %v2421_v62, %v5181_v51  ;;  %v2670_v52 = vrot.slane %v2669_v48, 4  ;;  %v2687_v28 = vmax.f32 %v2685_v3, %v2686_v60  ;;  %v2428_v23 = vmax.f32 %v2426_v6, %v2427_v11 }
 0x2ec   : > { %v2441_v33 = vrot.slane %v2440_v54, 1  ;;  %v2532_v38 = vrot.slane %v2531_v36, 2  ;;  %v2694_v18 = vsel %vm2630_vm6, %v5053_v5, -inf  ;;  %v2695_v14 = vsel %vm2386_vm4, %v5038_v37, -inf }
 0x2ed   : > { %v2888_v26 = vsel %vm2887_vm13, %v2428_v23, %v2886_v56  ;;  %v2539_v32 = vrot.slane %v2538_v47, 2  ;;  %v2546_v59 = vrot.slane %v2545_v49, 2  ;;  %v2679_v7 = vrot.slane %v2678_v41, 4 }
 0x2ee   : > { %v2890_v51 = vsel %vm2889_vm14, %v2435_v0, %v2888_v26  ;;  %v2552_v31 = vmax.f32 %v2550_v9, %v2551_v42  ;;  %v2671_v10 = vmax.f32 %v2669_v48, %v2670_v52  ;;  %v2688_v50 = vrot.slane %v2687_v28, 4 }
 0x2ef   : > { %v2442_v17 = vmax.f32 %v2440_v54, %v2441_v33  ;;  %v2533_v27 = vmax.f32 %v2531_v36, %v2532_v38  ;;  %v2696_v25 = vmax.f32 %v2694_v18, %v2695_v14  ;;  %v2540_v44 = vmax.f32 %v2538_v47, %v2539_v32 }
 0x2f0   : > { %v2547_v34 = vmax.f32 %v2545_v49, %v2546_v59  ;;  %v2680_v12 = vmax.f32 %v2678_v41, %v2679_v7  ;;  %v2553_v53 = vrot.slane %v2552_v31, 2  ;;  %v2672_v43 = vrot.slane %v2671_v10, 2 }
 0x2f1   : > { %v2892_v5 = vsel %vm2891_vm15, %v2442_v17, %v2890_v51  ;;  %v2689_v55 = vmax.f32 %v2687_v28, %v2688_v50  ;;  %v2534_v1 = vrot.slane %v2533_v27, 1  ;;  %v2697_v13 = vrot.slane %v2696_v25, 4 }
 0x2f2   : > { %v2787_v6 = vsel %vm2500_vm8, %v4886_v15, -inf  ;;  %v2541_v22 = vrot.slane %v2540_v44, 1  ;;  %v2548_v2 = vrot.slane %v2547_v34, 1  ;;  %v2681_v20 = vrot.slane %v2680_v12, 2 }
 0x2f3   : > { %v2554_v40 = vmax.f32 %v2552_v31, %v2553_v53  ;;  %v2673_v58 = vmax.f32 %v2671_v10, %v2672_v43  ;;  %v2690_v19 = vrot.slane %v2689_v55, 2  ;;  %v2535_v21 = vmax.f32 %v2533_v27, %v2534_v1 }
 0x2f4   : > { %v2698_v24 = vmax.f32 %v2696_v25, %v2697_v13  ;;  %v2788_v11 = vrot.slane %v2787_v6, 4  ;;  %v2794_v35 = vsel %vm2500_vm8, %v4905_v46, -inf  ;;  %v2801_v30 = vsel %vm2500_vm8, %v5049_v4, -inf }
 0x2f5   : > { %v2542_v63 = vmax.f32 %v2540_v44, %v2541_v22  ;;  %v2549_v54 = vmax.f32 %v2547_v34, %v2548_v2  ;;  %v2923_v15 = vsel %vm2885_vm12, %v2535_v21, %v5190_v39  ;;  %v2682_v48 = vmax.f32 %v2680_v12, %v2681_v20 }
 0x2f6   : > { %v2555_v57 = vrot.slane %v2554_v40, 1  ;;  %v2674_v16 = vrot.slane %v2673_v58, 1  ;;  %v2691_v36 = vmax.f32 %v2689_v55, %v2690_v19  ;;  %v2795_v9 = vrot.slane %v2794_v35, 4 }
 0x2f7   : > { %v2699_v3 = vrot.slane %v2698_v24, 2  ;;  %v2789_v60 = vmax.f32 %v2787_v6, %v2788_v11  ;;  %v2802_v62 = vrot.slane %v2801_v30, 4  ;;  %v2924_v0 = vsel %vm2887_vm13, %v2542_v63, %v2923_v15 }
 0x2f8   : > { %v2925_v46 = vsel %vm2889_vm14, %v2549_v54, %v2924_v0  ;;  %v2683_v47 = vrot.slane %v2682_v48, 1  ;;  %v2808_v4 = vsel %vm2500_vm8, %v5038_v37, -inf  ;;  %v2556_v49 = vmax.f32 %v2554_v40, %v2555_v57 }
 0x2f9   : > { %v2675_v41 = vmax.f32 %v2673_v58, %v2674_v16  ;;  %v2692_v39 = vrot.slane %v2691_v36, 1  ;;  %v2796_v56 = vmax.f32 %v2794_v35, %v2795_v9  ;;  %v2700_v42 = vmax.f32 %v2698_v24, %v2699_v3 }
 0x2fa   : > { %v2790_v52 = vrot.slane %v2789_v60, 2  ;;  %v2803_v28 = vmax.f32 %v2801_v30, %v2802_v62  ;;  %v2926_v23 = vsel %vm2891_vm15, %v2556_v49, %v2925_v46  ;;  %v2809_v18 = vrot.slane %v2808_v4, 4 }
 0x2fb   : > { %v2957_v38 = vsel %vm2885_vm12, %v2675_v41, %v5203_v45  ;;  %v2684_v26 = vmax.f32 %v2682_v48, %v2683_v47  ;;  %v2693_v32 = vmax.f32 %v2691_v36, %v2692_v39  ;;  %v2797_v37 = vrot.slane %v2796_v56, 2 }
 0x2fc   : > { %v2701_v59 = vrot.slane %v2700_v42, 1  ;;  %v2791_v51 = vmax.f32 %v2789_v60, %v2790_v52  ;;  %v2804_v31 = vrot.slane %v2803_v28, 2  ;;  %v2810_v10 = vmax.f32 %v2808_v4, %v2809_v18 }
 0x2fd   : > { %v2958_v7 = vsel %vm2887_vm13, %v2684_v26, %v2957_v38  ;;  %v2798_v17 = vmax.f32 %v2796_v56, %v2797_v37 }
 0x2fe   : > { %v2959_v50 = vsel %vm2889_vm14, %v2693_v32, %v2958_v7  ;;  %v2702_v27 = vmax.f32 %v2700_v42, %v2701_v59  ;;  %v2792_v25 = vrot.slane %v2791_v51, 1  ;;  %v2805_v45 = vmax.f32 %v2803_v28, %v2804_v31 }
 0x2ff   : > { %v2799_v12 = vrot.slane %v2798_v17, 1 }
 0x300   : > { %v2960_v44 = vsel %vm2891_vm15, %v2702_v27, %v2959_v50  ;;  %v2806_v53 = vrot.slane %v2805_v45, 1 }
 0x301   : > { %v2800_v1 = vmax.f32 %v2798_v17, %v2799_v12 }
 0x302   : > { %v2807_v13 = vmax.f32 %v2805_v45, %v2806_v53 }
 0x31a   : > { %v2910_v61 = vpop.permute.xlu0 %2909 }
 0x31b   : > { %v3014_v29 = vsel %vm142_vm0, %v2892_v5, %v2910_v61  ;;  %v2811_v61 = vrot.slane %v2810_v10, 2 }
 0x31c   : > { %3018 = vst [vmem:[%s5251_s30] sm:$0xff] %v3014_v29  ;;  %v2793_v29 = vmax.f32 %v2791_v51, %v2792_v25 }
 0x31d   : > { %v2812_v43 = vmax.f32 %v2810_v10, %v2811_v61 }
 0x31e   : > { %v2991_v55 = vsel %vm2885_vm12, %v2793_v29, %v5208_v8 }
 0x31f   : > { %v2813_v6 = vrot.slane %v2812_v43, 1  ;;  %v2992_v22 = vsel %vm2887_vm13, %v2800_v1, %v2991_v55 }
 0x320   : > { %v2993_v2 = vsel %vm2889_vm14, %v2807_v13, %v2992_v22 }
 0x321   : > { %v2814_v20 = vmax.f32 %v2812_v43, %v2813_v6 }
 0x323   : > { %v2994_v40 = vsel %vm2891_vm15, %v2814_v20, %v2993_v2 }
 0x329   : > { %v2944_v33 = vpop.permute.xlu1 %2943 }
 0x32a   : > { %v3015_v14 = vsel %vm142_vm0, %v2926_v23, %v2944_v33 }
 0x32b   : > { %3019 = vst [vmem:[%s5251_s30 + $0x8] sm:$0xff] %v3015_v14 }
 0x332   : > { %v2978_v5 = vpop.permute.xlu0 %2977 }
 0x333   : > { %v3016_v34 = vsel %vm142_vm0, %v2960_v44, %v2978_v5 }
 0x334   : > { %3020 = vst [vmem:[%s5251_s30 + $0x10] sm:$0xff] %v3016_v34 }
 0x340   : > { %v3012_v58 = vpop.permute.xlu1 %3011 }
 0x341   : > { %v3017_v8 = vsel %vm142_vm0, %v2994_v40, %v3012_v58 }
 0x342   : > { %3021 = vst [vmem:[%s5251_s30 + $0x18] sm:$0xff] %v3017_v8 }
 0x343   : > { %3485 = shalt.err (!%p3482_p3)
}
 0x344   : > { %s3486_s22 = scalar_lea.hbm %s5286_s8, 512  ;;  %s3490_s26 = scalar_lea.hbm %s5334_s2, 1024 }
 0x345   : > { %p3487_p4 = scmp.ne.s32.totalorder %s5286_s8, %s3486_s22  ;;  %p3491_p9 = scmp.lt.u32.totalorder %s5286_s8, %s5334_s2 }
 0x346   : > { %p3492_p10 = scmp.lt.u32.totalorder %s3490_s26, %s3486_s22  ;;  %p3494_p12 = scmp.lt.u32.totalorder %s3486_s22, %s5286_s8 }
 0x347   : > { %p3488_p7 = pnand %p3487_p4, %p3593_p5 }
 0x348   : > { %p3493_p11 = por %p3492_p10, %p3491_p9 }
 0x349   : > { %p3489_p8 = pneg %p3488_p7 }
 0x34a   : > { %p3495_p13 = por %p3494_p12, %p3493_p11 }
 0x34c   : > { %p3496_p0 = pnand %p3495_p13, %p3489_p8 }
 0x34e   : > { %3499 = shalt.err (!%p3496_p0)
}
 0x34f   : > { %3430 = dma.vmem_to_hbm [thread:$0]  (%p3593_p5), %s5288_s4, 512, %s5286_s8, %s3023_s13  }
 0x350 PF: > { %p3436_p1 = scmp.ge.s32.totalorder %s3534_s12, 2  ;;  %s3049_s29 = sand.u32 1, %s3522_s9  }
 0x351   : > { %s3050_s7 = scalar_lea.sflag [#allocation5], %s3049_s29 }
 0x352   : > { %p3433_p2 = pnand %p3436_p1, %p3597_p6 }
 0x354   : > { %3517 = dma.done.wait (!%p3433_p2), %s3050_s7, 512  }
 0x355   : > { %3519 = vsyncadd (!%p3433_p2), %s3050_s7, 4294966784  ;;  %p12_p3 = scmp.ge.s32.totalorder %s3580_s15, 4   ;;  %s5365_s9 = smov %s3526_s10 }
 0x356   : > { %s5366_s10 = smov %s3530_s11  ;;  %s5367_s11 = smov %s3591_s18 }
 0x357   : > { %s5368_s12 = smov %s3580_s15  ;;  %14 = sbr.rel (!%p12_p3) target bundleno = 3 (0x3), region = 66 }
 0x35e   :  { %3055 = vsyncpa [#allocation5], 1 }
 0x35f   :  { %3057 = vsyncpa [#allocation5 + $0x1], 1 }

</bundles_post_ra>
